<compile_context>
chip_gen: v6e
topology: v6e:2x2x1
jax: 0.10.0
libtpu: 0.0.40
codegen_flags: <defaults>
</compile_context>

<pallas_src>
import functools

import jax
import jax.numpy as jnp
from jax.experimental import pallas as pl
from jax.experimental.pallas import tpu as pltpu


def _round_up(x, m):
    return ((x + m - 1) // m) * m


def _cdiv(a, b):
    return (a + b - 1) // b


def _tpu_generation():
    """Best-effort TPU generation from device_kind (0 if unknown)."""
    try:
        kind = jax.devices()[0].device_kind.lower()
    except Exception:
        return 0
    for g in (7, 6, 5, 4, 3, 2):
        if f"v{g}" in kind or f"tpu{g}" in kind:
            return g
    return 0


_TPU_GEN = _tpu_generation()
_WIDE_MXU = _TPU_GEN >= 6               # 256-wide MXU on v6e / v7x
_MIN_M_BLOCKS = 2 if _TPU_GEN >= 7 else 1   # v7x: 2 TensorCores per chip


# ----------------------------------------------------------------------------
# Pallas GEMM kernels:  Y = act(X @ W + b),  bf16 operands, f32 epilogue.
# ----------------------------------------------------------------------------
def _gemm_bias_act_kernel(x_ref, w_ref, b_ref, o_ref, *, apply_relu):
    """Single-K-block path: no accumulator scratch, direct store."""
    y = jnp.dot(x_ref[...], w_ref[...], preferred_element_type=jnp.float32)
    y = y + b_ref[...]                                  # (1, tn) f32 broadcast
    if apply_relu:
        y = jnp.maximum(y, 0.0)
    o_ref[...] = y.astype(o_ref.dtype)


def _gemm_bias_act_ksplit_kernel(x_ref, w_ref, b_ref, o_ref, acc_ref, *,
                                 apply_relu):
    """General path with K as trailing 'arbitrary' grid axis + f32 VMEM acc."""
    @pl.when(pl.program_id(2) == 0)
    def _init():
        acc_ref[...] = jnp.zeros_like(acc_ref)

    acc_ref[...] += jnp.dot(x_ref[...], w_ref[...],
                            preferred_element_type=jnp.float32)

    @pl.when(pl.program_id(2) == pl.num_programs(2) - 1)
    def _finalize():
        y = acc_ref[...] + b_ref[...]
        if apply_relu:
            y = jnp.maximum(y, 0.0)
        o_ref[...] = y.astype(o_ref.dtype)


def _choose_tm(M, tm_pref=256, min_blocks=1):
    """Pick tm (multiple of 16 for bf16 packing) minimizing zero-row padding."""
    if M < 32:
        min_blocks = 1
    nb = max(min_blocks, _cdiv(M, tm_pref))
    tm = max(16, _round_up(_cdiv(M, nb), 16))
    return tm, tm * nb


def pallas_gemm(x, w_p, b_p, *, relu, n_valid, out_dtype=jnp.bfloat16,
                tm_pref=256, tk_pref=1024):
    """y[:M, :n_valid] = act(x @ W + b).

    x:   [M, K]   bf16 (or cast here); zero-padded to tile multiples.
    w_p: [Kp, Np] bf16, pre-packed/padded once at parameter-prep time.
    b_p: [1, Np]  f32,  pre-padded.
    """
    M, K = x.shape
    Kp, Np = w_p.shape

    # N tile (Np is a multiple of 128 by construction).
    if Np <= 256:
        tn = Np
    elif _WIDE_MXU and Np % 256 == 0:
        tn = 256                          # full MXU width on v6e / v7x
    else:
        tn = 128                          # v5e / fallback

    tm, Mp = _choose_tm(M, tm_pref, _MIN_M_BLOCKS)

    xp = x if x.dtype == jnp.bfloat16 else x.astype(jnp.bfloat16)
    xp = jnp.pad(xp, ((0, Mp - M), (0, Kp - K)))

    m_blocks, n_blocks = Mp // tm, Np // tn
    out_bytes = jnp.dtype(out_dtype).itemsize
    flops = 2 * Mp * Kp * Np
    bytes_accessed = (2 * Mp * Kp * n_blocks          # x re-read per N block
                      + 2 * Kp * Np * m_blocks        # w re-read per M block
                      + 4 * Np * m_blocks             # bias re-read per M block
                      + out_bytes * Mp * Np)

    if Kp <= tk_pref:
        # Single K block (true for every conv layer here): 2-D grid, no scratch.
        out = pl.pallas_call(
            functools.partial(_gemm_bias_act_kernel, apply_relu=relu),
            out_shape=jax.ShapeDtypeStruct((Mp, Np), out_dtype),
            grid=(m_blocks, n_blocks),
            in_specs=[
                pl.BlockSpec((tm, Kp), lambda i, j: (i, 0)),
                pl.BlockSpec((Kp, tn), lambda i, j: (0, j)),
                pl.BlockSpec((1, tn), lambda i, j: (0, j)),
            ],
            out_specs=pl.BlockSpec((tm, tn), lambda i, j: (i, j)),
            compiler_params=pltpu.CompilerParams(
                dimension_semantics=("parallel", "parallel")),
            cost_estimate=pl.CostEstimate(
                flops=flops, transcendentals=0, bytes_accessed=bytes_accessed),
        )(xp, w_p, b_p)
    else:
        tk = 512 if Kp % 512 == 0 else (256 if Kp % 256 == 0 else 128)
        out = pl.pallas_call(
            functools.partial(_gemm_bias_act_ksplit_kernel, apply_relu=relu),
            out_shape=jax.ShapeDtypeStruct((Mp, Np), out_dtype),
            grid=(m_blocks, n_blocks, Kp // tk),
            in_specs=[
                pl.BlockSpec((tm, tk), lambda i, j, k: (i, k)),
                pl.BlockSpec((tk, tn), lambda i, j, k: (k, j)),
                pl.BlockSpec((1, tn), lambda i, j, k: (0, j)),
            ],
            out_specs=pl.BlockSpec((tm, tn), lambda i, j, k: (i, j)),
            scratch_shapes=[pltpu.VMEM((tm, tn), jnp.float32)],
            compiler_params=pltpu.CompilerParams(
                dimension_semantics=("parallel", "parallel", "arbitrary")),
            cost_estimate=pl.CostEstimate(
                flops=flops, transcendentals=0, bytes_accessed=bytes_accessed),
        )(xp, w_p, b_p)

    return out[:M, :n_valid]


# ----------------------------------------------------------------------------
# Fused fc1(ReLU) + fc2 kernel: hidden [tm, 512] never leaves VMEM.
# ----------------------------------------------------------------------------
def _fused_fc_kernel(x_ref, w1_ref, b1_ref, w2_ref, b2_ref, o_ref):
    h = jnp.dot(x_ref[...], w1_ref[...], preferred_element_type=jnp.float32)
    h = jnp.maximum(h + b1_ref[...], 0.0)                    # f32 epilogue
    q = jnp.dot(h.astype(jnp.bfloat16), w2_ref[...],
                preferred_element_type=jnp.float32)
    o_ref[...] = q + b2_ref[...]


def pallas_fused_fc(x, w1_p, b1_p, w2_p, b2_p, *, n_valid):
    M, K = x.shape
    K1p, N1 = w1_p.shape          # (3200, 512)
    K2, N2p = w2_p.shape          # (512, 128)
    tm, Mp = _choose_tm(M, 256, _MIN_M_BLOCKS)

    xp = x if x.dtype == jnp.bfloat16 else x.astype(jnp.bfloat16)
    xp = jnp.pad(xp, ((0, Mp - M), (0, K1p - K)))
    m_blocks = Mp // tm

    # NOTE(v7x): if tiles ever grow, cap buffering of the constant-index weight
    # operands with pipeline_mode=pl.Buffered(1); current sizes fit everywhere
    # (fc1 weight ~3.3 MiB bf16, well under the 32 MiB scoped VMEM default).
    out = pl.pallas_call(
        _fused_fc_kernel,
        out_shape=jax.ShapeDtypeStruct((Mp, N2p), jnp.float32),
        grid=(m_blocks,),
        in_specs=[
            pl.BlockSpec((tm, K1p), lambda i: (i, 0)),
            pl.BlockSpec((K1p, N1), lambda i: (0, 0)),
            pl.BlockSpec((1, N1), lambda i: (0, 0)),
            pl.BlockSpec((K2, N2p), lambda i: (0, 0)),
            pl.BlockSpec((1, N2p), lambda i: (0, 0)),
        ],
        out_specs=pl.BlockSpec((tm, N2p), lambda i: (i, 0)),
        compiler_params=pltpu.CompilerParams(
            dimension_semantics=("parallel",)),
        cost_estimate=pl.CostEstimate(
            flops=2 * Mp * (K1p * N1 + K2 * N2p),
            transcendentals=0,
            bytes_accessed=(2 * Mp * K1p
                            + m_blocks * (2 * K1p * N1 + 4 * N1
                                          + 2 * K2 * N2p + 4 * N2p)
                            + 4 * Mp * N2p)),
    )(xp, w1_p, b1_p, w2_p, b2_p)
    return out[:M, :n_valid]


# ----------------------------------------------------------------------------
# Conv2d (valid padding) as fused XLA patch extraction + Pallas GEMM.
# ----------------------------------------------------------------------------
def conv2d_relu(x, w_p, b_p, *, kh, kw, cout, stride, dn):
    """Valid conv + bias + ReLU.  x layout is dn[0]; returns NHWC bf16.

    conv_general_dilated_patches emits [B, Ho, Wo, Cin*kh*kw] with the feature
    axis ordered (Cin, kh, kw) — exactly the native torch weight flatten order.
    """
    cols = jax.lax.conv_general_dilated_patches(
        x, filter_shape=(kh, kw), window_strides=(stride, stride),
        padding="VALID", dimension_numbers=dn)
    B, Ho, Wo, K = cols.shape
    y = pallas_gemm(cols.reshape(B * Ho * Wo, K), w_p, b_p,
                    relu=True, n_valid=cout, out_dtype=jnp.bfloat16)
    return y.reshape(B, Ho, Wo, cout)            # stays NHWC — no transpose


# ----------------------------------------------------------------------------
# DQN parameters (deterministic, PyTorch-style uniform init) + one-time packing.
# ----------------------------------------------------------------------------
def init_dqn_params(num_actions, key):
    ks = jax.random.split(key, 10)

    def u(k, shape, fan_in):
        bound = 1.0 / jnp.sqrt(jnp.float32(fan_in))
        return jax.random.uniform(k, shape, jnp.float32, -bound, bound)

    return {
        "conv1_w": u(ks[0], (32, 4, 8, 8), 4 * 8 * 8),
        "conv1_b": u(ks[1], (32,), 4 * 8 * 8),
        "conv2_w": u(ks[2], (64, 32, 4, 4), 32 * 4 * 4),
        "conv2_b": u(ks[3], (64,), 32 * 4 * 4),
        "conv3_w": u(ks[4], (64, 64, 3, 3), 64 * 3 * 3),
        "conv3_b": u(ks[5], (64,), 64 * 3 * 3),
        "fc1_w": u(ks[6], (512, 3136), 3136),    # PyTorch Linear: [out, in]
        "fc1_b": u(ks[7], (512,), 3136),
        "fc2_w": u(ks[8], (num_actions, 512), 512),
        "fc2_b": u(ks[9], (num_actions,), 512),
    }


def prepare_params(params):
    """One-time packing: reshape / permute / pad / bf16-cast every weight so the
    per-step forward does zero weight-layout work."""

    def pad2(a, rp, cp):
        r, c = a.shape
        return jnp.pad(a, ((0, rp - r), (0, cp - c)))

    def pack_conv(w, b):
        cout, cin, kh, kw = w.shape
        k = cin * kh * kw
        kp, np_ = _round_up(k, 128), _round_up(cout, 128)
        wm = w.reshape(cout, k).T                 # K order = (Cin, kh, kw)
        wp = pad2(wm, kp, np_).astype(jnp.bfloat16)
        bp = jnp.pad(b.astype(jnp.float32), (0, np_ - cout)).reshape(1, np_)
        return wp, bp

    c1w, c1b = pack_conv(params["conv1_w"], params["conv1_b"])
    c2w, c2b = pack_conv(params["conv2_w"], params["conv2_b"])
    c3w, c3b = pack_conv(params["conv3_w"], params["conv3_b"])

    # fc1: torch flattens NCHW as (C=64, H=7, W=7); our activations are NHWC and
    # flatten as (H, W, C), so permute the weight's K axis once here.
    w1 = params["fc1_w"].reshape(512, 64, 7, 7).transpose(0, 2, 3, 1)
    w1 = w1.reshape(512, 3136).T                             # [3136, 512]
    k1p = _round_up(3136, 128)                               # 3200
    fc1w = pad2(w1, k1p, 512).astype(jnp.bfloat16)
    fc1b = params["fc1_b"].astype(jnp.float32).reshape(1, 512)

    na = params["fc2_w"].shape[0]
    n2p = _round_up(na, 128)
    fc2w = pad2(params["fc2_w"].T, 512, n2p).astype(jnp.bfloat16)
    fc2b = jnp.pad(params["fc2_b"].astype(jnp.float32),
                   (0, n2p - na)).reshape(1, n2p)

    return {"c1w": c1w, "c1b": c1b, "c2w": c2w, "c2b": c2b,
            "c3w": c3w, "c3b": c3b, "fc1w": fc1w, "fc1b": fc1b,
            "fc2w": fc2w, "fc2b": fc2b}


def dqn_forward(packed, state, *, num_actions):
    """state: [B, 4, 84, 84] float32 (NCHW, like torch) -> Q-values [B, A] f32."""
    x = state.astype(jnp.bfloat16)
    # conv1 folds the NCHW->NHWC layout change into the patch extraction.
    x = conv2d_relu(x, packed["c1w"], packed["c1b"], kh=8, kw=8, cout=32,
                    stride=4, dn=("NCHW", "OIHW", "NHWC"))   # [B,20,20,32]
    x = conv2d_relu(x, packed["c2w"], packed["c2b"], kh=4, kw=4, cout=64,
                    stride=2, dn=("NHWC", "HWIO", "NHWC"))   # [B, 9, 9,64]
    x = conv2d_relu(x, packed["c3w"], packed["c3b"], kh=3, kw=3, cout=64,
                    stride=1, dn=("NHWC", "HWIO", "NHWC"))   # [B, 7, 7,64]
    x = x.reshape(x.shape[0], -1)                            # [B, 3136] (H,W,C)
    # TODO(synk): at inference batch sizes conv2+conv3+fc could be fused into a
    # single Pallas call with in-kernel im2col to cut two HBM round-trips.
    return pallas_fused_fc(x, packed["fc1w"], packed["fc1b"],
                           packed["fc2w"], packed["fc2b"], n_valid=num_actions)


# ----------------------------------------------------------------------------
# Plain-JAX f32 reference (matches the PyTorch module exactly).
# ----------------------------------------------------------------------------
def dqn_reference(params, state):
    dn = ("NCHW", "OIHW", "NCHW")
    x = jax.lax.conv_general_dilated(state, params["conv1_w"], (4, 4), "VALID",
                                     dimension_numbers=dn)
    x = jnp.maximum(x + params["conv1_b"][None, :, None, None], 0.0)
    x = jax.lax.conv_general_dilated(x, params["conv2_w"], (2, 2), "VALID",
                                     dimension_numbers=dn)
    x = jnp.maximum(x + params["conv2_b"][None, :, None, None], 0.0)
    x = jax.lax.conv_general_dilated(x, params["conv3_w"], (1, 1), "VALID",
                                     dimension_numbers=dn)
    x = jnp.maximum(x + params["conv3_b"][None, :, None, None], 0.0)
    x = x.reshape(x.shape[0], -1)                 # torch .view(-1, 3136)
    h = jnp.maximum(x @ params["fc1_w"].T + params["fc1_b"], 0.0)
    return h @ params["fc2_w"].T + params["fc2_b"]


if __name__ == "__main__":
    key = jax.random.PRNGKey(0)
    pkey, xkey = jax.random.split(key)

    num_actions = 6
    batch = 2
    # 84x84 spatial is forced by the module's hardcoded fc1 input (3136 = 64*7*7).
    params = init_dqn_params(num_actions, pkey)
    packed = prepare_params(params)               # one-time weight packing
    state = jax.random.normal(xkey, (batch, 4, 84, 84), jnp.float32)

    fwd = jax.jit(functools.partial(dqn_forward, num_actions=num_actions))
    q = jax.block_until_ready(fwd(packed, state))

    assert q.shape == (batch, num_actions)
    assert bool(jnp.all(jnp.isfinite(q)))

    # bf16 matmul operands => loose-tolerance check against the f32 reference.
    q_ref = dqn_reference(params, state)
    err = float(jnp.max(jnp.abs(q - q_ref)))
    scale = float(jnp.max(jnp.abs(q_ref))) + 1.0
    assert err <= 0.05 * scale, f"mismatch vs reference: {err} (scale {scale})"

    print("KERNEL_OK")
</pallas_src>

<mosaic_0001>
module attributes {stable_mosaic.version = 11 : i64} {
  func.func @_gemm_bias_act_kernel(%arg0: i32, %arg1: i32, %arg2: memref<208x256xbf16, #tpu.memory_space<vmem>>, %arg3: memref<256x128xbf16, #tpu.memory_space<vmem>>, %arg4: memref<1x128xf32, #tpu.memory_space<vmem>>, %arg5: memref<208x128xbf16, #tpu.memory_space<vmem>>) attributes {dimension_semantics = [#tpu.dimension_semantics<parallel>, #tpu.dimension_semantics<parallel>], iteration_bounds = array<i64: 4, 1>, scalar_prefetch = 0 : i64, scratch_operands = 0 : i64, tpu.core_type = #tpu.core_type<tc>, window_params = [{transform_indices = @transform_0, window_bounds = array<i64: 208, 256>}, {transform_indices = @transform_1, window_bounds = array<i64: 256, 128>}, {transform_indices = @transform_2, window_bounds = array<i64: 1, 128>}, {transform_indices = @transform_3, window_bounds = array<i64: 208, 128>}]} {
    %c0 = arith.constant 0 : index
    %c0_0 = arith.constant 0 : index
    %0 = vector.load %arg2[%c0, %c0_0] : memref<208x256xbf16, #tpu.memory_space<vmem>>, vector<208x256xbf16>
    %c0_1 = arith.constant 0 : index
    %c0_2 = arith.constant 0 : index
    %1 = vector.load %arg3[%c0_1, %c0_2] : memref<256x128xbf16, #tpu.memory_space<vmem>>, vector<256x128xbf16>
    %cst = arith.constant dense<0.000000e+00> : vector<208x128xf32>
    %2 = tpu.matmul %0, %1, %cst {dimension_numbers = #tpu.dot_dimension_numbers<[1], [0], [0], [1], [0, 0, 1, 1], [], []>} : vector<208x256xbf16>, vector<256x128xbf16>, vector<208x128xf32> -> vector<208x128xf32>
    %c0_3 = arith.constant 0 : index
    %c0_4 = arith.constant 0 : index
    %3 = vector.load %arg4[%c0_3, %c0_4] : memref<1x128xf32, #tpu.memory_space<vmem>>, vector<1x128xf32>
    %4 = vector.broadcast %3 : vector<1x128xf32> to vector<208x128xf32>
    %5 = arith.addf %2, %4 : vector<208x128xf32>
    %cst_5 = arith.constant 0.000000e+00 : f32
    %6 = vector.broadcast %cst_5 : f32 to vector<208x128xf32>
    %7 = arith.maximumf %5, %6 : vector<208x128xf32>
    %8 = arith.truncf %7 : vector<208x128xf32> to vector<208x128xbf16>
    %c0_6 = arith.constant 0 : index
    %c0_7 = arith.constant 0 : index
    %9 = vector.load %arg5[%c0_6, %c0_7] : memref<208x128xbf16, #tpu.memory_space<vmem>>, vector<208x128xbf16>
    tpu.vector_store %arg5[%c0_6, %c0_7], %8 {strides = array<i32>} : memref<208x128xbf16, #tpu.memory_space<vmem>>, vector<208x128xbf16>,
    return
  }
  func.func @transform_0(%arg0: i32, %arg1: i32) -> (i32, i32) {
    %c0_i32 = arith.constant 0 : i32
    %c0_i32_0 = arith.constant 0 : i32
    return %arg0, %c0_i32 : i32, i32
  }
  func.func @transform_1(%arg0: i32, %arg1: i32) -> (i32, i32) {
    %c0_i32 = arith.constant 0 : i32
    %c0_i32_0 = arith.constant 0 : i32
    return %c0_i32, %arg1 : i32, i32
  }
  func.func @transform_2(%arg0: i32, %arg1: i32) -> (i32, i32) {
    %c0_i32 = arith.constant 0 : i32
    %c0_i32_0 = arith.constant 0 : i32
    return %c0_i32, %arg1 : i32, i32
  }
  func.func @transform_3(%arg0: i32, %arg1: i32) -> (i32, i32) {
    %c0_i32 = arith.constant 0 : i32
    return %arg0, %arg1 : i32, i32
  }
}

module attributes {stable_mosaic.version = 11 : i64} {
  func.func @_gemm_bias_act_kernel(%arg0: i32, %arg1: i32, %arg2: memref<176x512xbf16, #tpu.memory_space<vmem>>, %arg3: memref<512x128xbf16, #tpu.memory_space<vmem>>, %arg4: memref<1x128xf32, #tpu.memory_space<vmem>>, %arg5: memref<176x128xbf16, #tpu.memory_space<vmem>>) attributes {dimension_semantics = [#tpu.dimension_semantics<parallel>, #tpu.dimension_semantics<parallel>], iteration_bounds = array<i64: 1, 1>, scalar_prefetch = 0 : i64, scratch_operands = 0 : i64, tpu.core_type = #tpu.core_type<tc>, window_params = [{transform_indices = @transform_0, window_bounds = array<i64: 176, 512>}, {transform_indices = @transform_1, window_bounds = array<i64: 512, 128>}, {transform_indices = @transform_2, window_bounds = array<i64: 1, 128>}, {transform_indices = @transform_3, window_bounds = array<i64: 176, 128>}]} {
    %c0 = arith.constant 0 : index
    %c0_0 = arith.constant 0 : index
    %0 = vector.load %arg2[%c0, %c0_0] : memref<176x512xbf16, #tpu.memory_space<vmem>>, vector<176x512xbf16>
    %c0_1 = arith.constant 0 : index
    %c0_2 = arith.constant 0 : index
    %1 = vector.load %arg3[%c0_1, %c0_2] : memref<512x128xbf16, #tpu.memory_space<vmem>>, vector<512x128xbf16>
    %cst = arith.constant dense<0.000000e+00> : vector<176x128xf32>
    %2 = tpu.matmul %0, %1, %cst {dimension_numbers = #tpu.dot_dimension_numbers<[1], [0], [0], [1], [0, 0, 1, 1], [], []>} : vector<176x512xbf16>, vector<512x128xbf16>, vector<176x128xf32> -> vector<176x128xf32>
    %c0_3 = arith.constant 0 : index
    %c0_4 = arith.constant 0 : index
    %3 = vector.load %arg4[%c0_3, %c0_4] : memref<1x128xf32, #tpu.memory_space<vmem>>, vector<1x128xf32>
    %4 = vector.broadcast %3 : vector<1x128xf32> to vector<176x128xf32>
    %5 = arith.addf %2, %4 : vector<176x128xf32>
    %cst_5 = arith.constant 0.000000e+00 : f32
    %6 = vector.broadcast %cst_5 : f32 to vector<176x128xf32>
    %7 = arith.maximumf %5, %6 : vector<176x128xf32>
    %8 = arith.truncf %7 : vector<176x128xf32> to vector<176x128xbf16>
    %c0_6 = arith.constant 0 : index
    %c0_7 = arith.constant 0 : index
    %9 = vector.load %arg5[%c0_6, %c0_7] : memref<176x128xbf16, #tpu.memory_space<vmem>>, vector<176x128xbf16>
    tpu.vector_store %arg5[%c0_6, %c0_7], %8 {strides = array<i32>} : memref<176x128xbf16, #tpu.memory_space<vmem>>, vector<176x128xbf16>,
    return
  }
  func.func @transform_0(%arg0: i32, %arg1: i32) -> (i32, i32) {
    %c0_i32 = arith.constant 0 : i32
    %c0_i32_0 = arith.constant 0 : i32
    return %arg0, %c0_i32 : i32, i32
  }
  func.func @transform_1(%arg0: i32, %arg1: i32) -> (i32, i32) {
    %c0_i32 = arith.constant 0 : i32
    %c0_i32_0 = arith.constant 0 : i32
    return %c0_i32, %arg1 : i32, i32
  }
  func.func @transform_2(%arg0: i32, %arg1: i32) -> (i32, i32) {
    %c0_i32 = arith.constant 0 : i32
    %c0_i32_0 = arith.constant 0 : i32
    return %c0_i32, %arg1 : i32, i32
  }
  func.func @transform_3(%arg0: i32, %arg1: i32) -> (i32, i32) {
    %c0_i32 = arith.constant 0 : i32
    return %arg0, %arg1 : i32, i32
  }
}

module attributes {stable_mosaic.version = 11 : i64} {
  func.func @_gemm_bias_act_kernel(%arg0: i32, %arg1: i32, %arg2: memref<112x640xbf16, #tpu.memory_space<vmem>>, %arg3: memref<640x128xbf16, #tpu.memory_space<vmem>>, %arg4: memref<1x128xf32, #tpu.memory_space<vmem>>, %arg5: memref<112x128xbf16, #tpu.memory_space<vmem>>) attributes {dimension_semantics = [#tpu.dimension_semantics<parallel>, #tpu.dimension_semantics<parallel>], iteration_bounds = array<i64: 1, 1>, scalar_prefetch = 0 : i64, scratch_operands = 0 : i64, tpu.core_type = #tpu.core_type<tc>, window_params = [{transform_indices = @transform_0, window_bounds = array<i64: 112, 640>}, {transform_indices = @transform_1, window_bounds = array<i64: 640, 128>}, {transform_indices = @transform_2, window_bounds = array<i64: 1, 128>}, {transform_indices = @transform_3, window_bounds = array<i64: 112, 128>}]} {
    %c0 = arith.constant 0 : index
    %c0_0 = arith.constant 0 : index
    %0 = vector.load %arg2[%c0, %c0_0] : memref<112x640xbf16, #tpu.memory_space<vmem>>, vector<112x640xbf16>
    %c0_1 = arith.constant 0 : index
    %c0_2 = arith.constant 0 : index
    %1 = vector.load %arg3[%c0_1, %c0_2] : memref<640x128xbf16, #tpu.memory_space<vmem>>, vector<640x128xbf16>
    %cst = arith.constant dense<0.000000e+00> : vector<112x128xf32>
    %2 = tpu.matmul %0, %1, %cst {dimension_numbers = #tpu.dot_dimension_numbers<[1], [0], [0], [1], [0, 0, 1, 1], [], []>} : vector<112x640xbf16>, vector<640x128xbf16>, vector<112x128xf32> -> vector<112x128xf32>
    %c0_3 = arith.constant 0 : index
    %c0_4 = arith.constant 0 : index
    %3 = vector.load %arg4[%c0_3, %c0_4] : memref<1x128xf32, #tpu.memory_space<vmem>>, vector<1x128xf32>
    %4 = vector.broadcast %3 : vector<1x128xf32> to vector<112x128xf32>
    %5 = arith.addf %2, %4 : vector<112x128xf32>
    %cst_5 = arith.constant 0.000000e+00 : f32
    %6 = vector.broadcast %cst_5 : f32 to vector<112x128xf32>
    %7 = arith.maximumf %5, %6 : vector<112x128xf32>
    %8 = arith.truncf %7 : vector<112x128xf32> to vector<112x128xbf16>
    %c0_6 = arith.constant 0 : index
    %c0_7 = arith.constant 0 : index
    %9 = vector.load %arg5[%c0_6, %c0_7] : memref<112x128xbf16, #tpu.memory_space<vmem>>, vector<112x128xbf16>
    tpu.vector_store %arg5[%c0_6, %c0_7], %8 {strides = array<i32>} : memref<112x128xbf16, #tpu.memory_space<vmem>>, vector<112x128xbf16>,
    return
  }
  func.func @transform_0(%arg0: i32, %arg1: i32) -> (i32, i32) {
    %c0_i32 = arith.constant 0 : i32
    %c0_i32_0 = arith.constant 0 : i32
    return %arg0, %c0_i32 : i32, i32
  }
  func.func @transform_1(%arg0: i32, %arg1: i32) -> (i32, i32) {
    %c0_i32 = arith.constant 0 : i32
    %c0_i32_0 = arith.constant 0 : i32
    return %c0_i32, %arg1 : i32, i32
  }
  func.func @transform_2(%arg0: i32, %arg1: i32) -> (i32, i32) {
    %c0_i32 = arith.constant 0 : i32
    %c0_i32_0 = arith.constant 0 : i32
    return %c0_i32, %arg1 : i32, i32
  }
  func.func @transform_3(%arg0: i32, %arg1: i32) -> (i32, i32) {
    %c0_i32 = arith.constant 0 : i32
    return %arg0, %arg1 : i32, i32
  }
}

module attributes {stable_mosaic.version = 11 : i64} {
  func.func @_fused_fc_kernel(%arg0: i32, %arg1: memref<16x3200xbf16, #tpu.memory_space<vmem>>, %arg2: memref<3200x512xbf16, #tpu.memory_space<vmem>>, %arg3: memref<1x512xf32, #tpu.memory_space<vmem>>, %arg4: memref<512x128xbf16, #tpu.memory_space<vmem>>, %arg5: memref<1x128xf32, #tpu.memory_space<vmem>>, %arg6: memref<16x128xf32, #tpu.memory_space<vmem>>) attributes {dimension_semantics = [#tpu.dimension_semantics<parallel>], iteration_bounds = array<i64: 1>, scalar_prefetch = 0 : i64, scratch_operands = 0 : i64, tpu.core_type = #tpu.core_type<tc>, window_params = [{transform_indices = @transform_0, window_bounds = array<i64: 16, 3200>}, {pipeline_mode = #tpu.pipeline_mode<synchronous>, transform_indices = @transform_1, window_bounds = array<i64: 3200, 512>}, {pipeline_mode = #tpu.pipeline_mode<synchronous>, transform_indices = @transform_2, window_bounds = array<i64: 1, 512>}, {pipeline_mode = #tpu.pipeline_mode<synchronous>, transform_indices = @transform_3, window_bounds = array<i64: 512, 128>}, {pipeline_mode = #tpu.pipeline_mode<synchronous>, transform_indices = @transform_4, window_bounds = array<i64: 1, 128>}, {transform_indices = @transform_5, window_bounds = array<i64: 16, 128>}]} {
    %c0 = arith.constant 0 : index
    %c0_0 = arith.constant 0 : index
    %0 = vector.load %arg1[%c0, %c0_0] : memref<16x3200xbf16, #tpu.memory_space<vmem>>, vector<16x3200xbf16>
    %c0_1 = arith.constant 0 : index
    %c0_2 = arith.constant 0 : index
    %1 = vector.load %arg2[%c0_1, %c0_2] : memref<3200x512xbf16, #tpu.memory_space<vmem>>, vector<3200x512xbf16>
    %cst = arith.constant dense<0.000000e+00> : vector<16x512xf32>
    %2 = tpu.matmul %0, %1, %cst {dimension_numbers = #tpu.dot_dimension_numbers<[1], [0], [0], [1], [0, 0, 1, 1], [], []>} : vector<16x3200xbf16>, vector<3200x512xbf16>, vector<16x512xf32> -> vector<16x512xf32>
    %c0_3 = arith.constant 0 : index
    %c0_4 = arith.constant 0 : index
    %3 = vector.load %arg3[%c0_3, %c0_4] : memref<1x512xf32, #tpu.memory_space<vmem>>, vector<1x512xf32>
    %4 = vector.broadcast %3 : vector<1x512xf32> to vector<16x512xf32>
    %5 = arith.addf %2, %4 : vector<16x512xf32>
    %cst_5 = arith.constant 0.000000e+00 : f32
    %6 = vector.broadcast %cst_5 : f32 to vector<16x512xf32>
    %7 = arith.maximumf %5, %6 : vector<16x512xf32>
    %8 = arith.truncf %7 : vector<16x512xf32> to vector<16x512xbf16>
    %c0_6 = arith.constant 0 : index
    %c0_7 = arith.constant 0 : index
    %9 = vector.load %arg4[%c0_6, %c0_7] : memref<512x128xbf16, #tpu.memory_space<vmem>>, vector<512x128xbf16>
    %cst_8 = arith.constant dense<0.000000e+00> : vector<16x128xf32>
    %10 = tpu.matmul %8, %9, %cst_8 {dimension_numbers = #tpu.dot_dimension_numbers<[1], [0], [0], [1], [0, 0, 1, 1], [], []>} : vector<16x512xbf16>, vector<512x128xbf16>, vector<16x128xf32> -> vector<16x128xf32>
    %c0_9 = arith.constant 0 : index
    %c0_10 = arith.constant 0 : index
    %11 = vector.load %arg5[%c0_9, %c0_10] : memref<1x128xf32, #tpu.memory_space<vmem>>, vector<1x128xf32>
    %12 = vector.broadcast %11 : vector<1x128xf32> to vector<16x128xf32>
    %13 = arith.addf %10, %12 : vector<16x128xf32>
    %c0_11 = arith.constant 0 : index
    %c0_12 = arith.constant 0 : index
    %14 = vector.load %arg6[%c0_11, %c0_12] : memref<16x128xf32, #tpu.memory_space<vmem>>, vector<16x128xf32>
    tpu.vector_store %arg6[%c0_11, %c0_12], %13 {strides = array<i32>} : memref<16x128xf32, #tpu.memory_space<vmem>>, vector<16x128xf32>,
    return
  }
  func.func @transform_0(%arg0: i32) -> (i32, i32) {
    %c0_i32 = arith.constant 0 : i32
    %c0_i32_0 = arith.constant 0 : i32
    return %arg0, %c0_i32 : i32, i32
  }
  func.func @transform_1(%arg0: i32) -> (i32, i32) {
    %c0_i32 = arith.constant 0 : i32
    %c0_i32_0 = arith.constant 0 : i32
    %c0_i32_1 = arith.constant 0 : i32
    return %c0_i32, %c0_i32_0 : i32, i32
  }
  func.func @transform_2(%arg0: i32) -> (i32, i32) {
    %c0_i32 = arith.constant 0 : i32
    %c0_i32_0 = arith.constant 0 : i32
    %c0_i32_1 = arith.constant 0 : i32
    return %c0_i32, %c0_i32_0 : i32, i32
  }
  func.func @transform_3(%arg0: i32) -> (i32, i32) {
    %c0_i32 = arith.constant 0 : i32
    %c0_i32_0 = arith.constant 0 : i32
    %c0_i32_1 = arith.constant 0 : i32
    return %c0_i32, %c0_i32_0 : i32, i32
  }
  func.func @transform_4(%arg0: i32) -> (i32, i32) {
    %c0_i32 = arith.constant 0 : i32
    %c0_i32_0 = arith.constant 0 : i32
    %c0_i32_1 = arith.constant 0 : i32
    return %c0_i32, %c0_i32_0 : i32, i32
  }
  func.func @transform_5(%arg0: i32) -> (i32, i32) {
    %c0_i32 = arith.constant 0 : i32
    %c0_i32_0 = arith.constant 0 : i32
    return %arg0, %c0_i32 : i32, i32
  }
}

</mosaic_0001>

<bundles_post_ra>
// kernel: dqn_forward.4
= control target key start
LH: loop header
LB: loop body
LE: loop exit
PB: predicated region body
PF: predicated region fallthrough
CT: control target
= control target key end

     0   :  { %s1333_s12 = smov 0   ;;  %s1335_s13 = smov 0   ;;  %s1492_s0 = inlined_call_operand.vmem [shape: bf16[832,256], index: 0, kind: input, shape index: {}]   ;;  %s1493_s1 = inlined_call_operand.vmem [shape: bf16[256,128], index: 1, kind: input, shape index: {}]   ;;  %s1494_s2 = inlined_call_operand.vmem [shape: f32[1,128], index: 2, kind: input, shape index: {}]   ;;  %s1495_s3 = inlined_call_operand.vmem [shape: bf16[832,128], index: 3, kind: output, shape index: {}]  }
   0x1   :  { %s1337_s14 = smov 0  }
   0x2 LB: > { %s25_s15 = sadd.s32 1, %s1307_s13  ;;  %p921_p0 = scmp.ge.s32.totalorder %s1311_s14, 1  ;;  %s1311_s14 = sphi %s1337_s14, %s13_s14   ;;  %s1307_s13 = sphi %s1335_s13, %s1497_s13   ;;  %s1303_s12 = sphi %s1333_s12, %s1496_s12  }
   0x3   : > { %p27_p1 = scmp.ge.s32.totalorder %s25_s15, 4  ;;  %p170_p2 = scmp.lt.s32.totalorder %s1311_s14, 5 }
   0x5   : > { %s1499_s15 = smov (%p27_p1, %s25_s15), 0  ;;  %p171_p3 = pnand %p921_p0, %p170_p2 }
   0x6   : > { %s205_s18 = smul.u32 (!%p171_p3), 26, %s1303_s12 }
   0x7   : > { %174 = sbr.rel (%p171_p3) target bundleno = 301 (0x12d), region = 32 }
   0x8   : > { %p206_p4 = scmp.lt.s32.totalorder (!%p171_p3), %s205_s18, 103 }
   0xc   : > { %v1234_v0 = vld [vmem:[%s1493_s1 + $0x78] sm:$0xff]   ;;  %v1236_v2 = vld [vmem:[%s1493_s1 + $0x70] sm:$0xff]   ;;  %v1238_v4 = vld [vmem:[%s1493_s1 + $0x68] sm:$0xff]   ;;  %s1501_s18 = smov (!%p206_p4, %s205_s18), 103 }
   0xd   : > { %v1235_v1 = vld [vmem:[%s1493_s1 + $0x38] sm:$0xff]   ;;  %1100 = vmatprep.subr.bf16.mxu0 %v1234_v0  ;;  %1194 = vmatprep.subr.bf16.mxu1 %v1234_v0  ;;  %v1237_v3 = vld [vmem:[%s1493_s1 + $0x30] sm:$0xff]   ;;  %v1239_v5 = vld [vmem:[%s1493_s1 + $0x28] sm:$0xff]   ;;  %s996_s6 = sshll.u32 %s1501_s18, 3  ;;  %s924_s5 = sshll.u32 %s1501_s18, 2 }
   0xe   : > { %1101 = vmatpush3.bf16.msra.mxu0 %v1235_v1  ;;  %1202 = vmatpush3.bf16.msra.mxu1 %v1235_v1  ;;  %v1240_v6 = vld [vmem:[%s1493_s1 + $0x60] sm:$0xff]   ;;  %v1242_v8 = vld [vmem:[%s1493_s1 + $0x58] sm:$0xff]   ;;  %s1384_s11 = scalar_lea.vmem %s1492_s0, %s996_s6  ;;  %v1244_v10 = vld [vmem:[%s1493_s1 + $0x50] sm:$0xff]   ;;  %s1446_s8 = scalar_lea.vmem %s1495_s3, %s924_s5 }
   0xf   : > { %1102 = vmatprep.subr.bf16.mxu0 %v1236_v2  ;;  %1195 = vmatprep.subr.bf16.mxu1 %v1236_v2  ;;  %v1241_v7 = vld [vmem:[%s1493_s1 + $0x20] sm:$0xff]   ;;  %v1243_v9 = vld [vmem:[%s1493_s1 + $0x18] sm:$0xff]   ;;  %v1245_v13 = vld [vmem:[%s1493_s1 + $0x10] sm:$0xff]  }
  0x10   : > { %v1252_v11 = vld [vmem:[%s1384_s11 + $0x4] ss:$8 sps:$4 sm:$0xff]   ;;  %v1255_v12 = vld [vmem:[%s1384_s11 + $0x74] ss:$8 sps:$4 sm:$0xff]   ;;  %v1250_v18 = vld [vmem:[%s1384_s11] ss:$8 sps:$4 sm:$0xff]  }
  0x11   : > { %v1246_v14 = vld [vmem:[%s1493_s1 + $0x48] sm:$0xff]   ;;  %552 = vmatprep.mubr.bf16.mxu0 %v1252_v11  ;;  %608 = vmatprep.mubr.bf16.mxu1 %v1255_v12  ;;  %v1248_v16 = vld [vmem:[%s1493_s1 + $0x40] sm:$0xff]   ;;  %v1253_v19 = vld [vmem:[%s1384_s11 + $0x70] ss:$8 sps:$4 sm:$0xff]  }
  0x12   : > { %1103 = vmatpush3.bf16.msra.mxu0 %v1237_v3  ;;  %1203 = vmatpush3.bf16.msra.mxu1 %v1237_v3  ;;  %v1247_v15 = vld [vmem:[%s1493_s1 + $0x8] sm:$0xff]   ;;  %v1249_v17 = vld [vmem:[%s1493_s1] sm:$0xff]   ;;  %v1256_v20 = vld [vmem:[%s1384_s11 + $0x14] ss:$8 sps:$4 sm:$0xff]  }
  0x13   : > { %1104 = vmatprep.subr.bf16.mxu0 %v1238_v4  ;;  %1196 = vmatprep.subr.bf16.mxu1 %v1238_v4  ;;  %v1259_v21 = vld [vmem:[%s1384_s11 + $0x84] ss:$8 sps:$4 sm:$0xff]   ;;  %v1258_v22 = vld [vmem:[%s1384_s11 + $0x10] ss:$8 sps:$4 sm:$0xff]   ;;  %v1261_v23 = vld [vmem:[%s1384_s11 + $0x80] ss:$8 sps:$4 sm:$0xff]  }
  0x14   : > { %v1262_v24 = vld [vmem:[%s1384_s11 + $0x24] ss:$8 sps:$4 sm:$0xff]   ;;  %v1265_v25 = vld [vmem:[%s1384_s11 + $0x94] ss:$8 sps:$4 sm:$0xff]   ;;  %v1264_v26 = vld [vmem:[%s1384_s11 + $0x20] ss:$8 sps:$4 sm:$0xff]  }
  0x15   : > { %v1267_v27 = vld [vmem:[%s1384_s11 + $0x90] ss:$8 sps:$4 sm:$0xff]   ;;  %v1268_v28 = vld [vmem:[%s1384_s11 + $0x34] ss:$8 sps:$4 sm:$0xff]   ;;  %v1271_v29 = vld [vmem:[%s1384_s11 + $0xa4] ss:$8 sps:$4 sm:$0xff]  }
  0x16   : > { %1105 = vmatpush3.bf16.msra.mxu0 %v1239_v5  ;;  %1204 = vmatpush3.bf16.msra.mxu1 %v1239_v5  ;;  %v1270_v30 = vld [vmem:[%s1384_s11 + $0x30] ss:$8 sps:$4 sm:$0xff]   ;;  %v1273_v31 = vld [vmem:[%s1384_s11 + $0xa0] ss:$8 sps:$4 sm:$0xff]   ;;  %v1274_v32 = vld [vmem:[%s1384_s11 + $0x44] ss:$8 sps:$4 sm:$0xff]  }
  0x17   : > { %1106 = vmatprep.subr.bf16.mxu0 %v1240_v6  ;;  %1197 = vmatprep.subr.bf16.mxu1 %v1240_v6  ;;  %v1277_v33 = vld [vmem:[%s1384_s11 + $0xb4] ss:$8 sps:$4 sm:$0xff]   ;;  %v1276_v34 = vld [vmem:[%s1384_s11 + $0x40] ss:$8 sps:$4 sm:$0xff]   ;;  %v1279_v35 = vld [vmem:[%s1384_s11 + $0xb0] ss:$8 sps:$4 sm:$0xff]  }
  0x18   : > { %v1280_v36 = vld [vmem:[%s1384_s11 + $0x54] ss:$8 sps:$4 sm:$0xff]   ;;  %v1283_v37 = vld [vmem:[%s1384_s11 + $0xc4] ss:$8 sps:$4 sm:$0xff]   ;;  %v1282_v38 = vld [vmem:[%s1384_s11 + $0x50] ss:$8 sps:$4 sm:$0xff]  }
  0x19   : > { %v1285_v39 = vld [vmem:[%s1384_s11 + $0xc0] ss:$8 sps:$4 sm:$0xff]   ;;  %v1286_v40 = vld [vmem:[%s1384_s11 + $0x64] ss:$8 sps:$4 sm:$0xff]  }
  0x1a   : > { %1107 = vmatpush3.bf16.msra.mxu0 %v1241_v7  ;;  %1205 = vmatpush3.bf16.msra.mxu1 %v1241_v7  ;;  %v1288_v41 = vld [vmem:[%s1384_s11 + $0x60] ss:$8 sps:$4 sm:$0xff]  }
  0x1b   : > { %1108 = vmatprep.subr.bf16.mxu0 %v1242_v8  ;;  %1198 = vmatprep.subr.bf16.mxu1 %v1242_v8  ;;  %v1436_v46 = vld [vmem:[%s1494_s2] ss:$0 sm:$0xff] }
  0x1e   : > { %1109 = vmatpush3.bf16.msra.mxu0 %v1243_v9  ;;  %1206 = vmatpush3.bf16.msra.mxu1 %v1243_v9 }
  0x1f   : > { %1110 = vmatprep.subr.bf16.mxu0 %v1244_v10  ;;  %1199 = vmatprep.subr.bf16.mxu1 %v1244_v10 }
  0x22   : > { %1111 = vmatpush3.bf16.msra.mxu0 %v1245_v13  ;;  %1207 = vmatpush3.bf16.msra.mxu1 %v1245_v13 }
  0x23   : > { %1112 = vmatprep.subr.bf16.mxu0 %v1246_v14  ;;  %1200 = vmatprep.subr.bf16.mxu1 %v1246_v14 }
  0x26   : > { %1113 = vmatpush3.bf16.msra.mxu0 %v1247_v15  ;;  %1208 = vmatpush3.bf16.msra.mxu1 %v1247_v15 }
  0x27   : > { %1114 = vmatprep.subr.bf16.mxu0 %v1248_v16  ;;  %1201 = vmatprep.subr.bf16.mxu1 %v1248_v16 }
  0x2a   : > { %1115 = vmatpush3.bf16.msra.mxu0 %v1249_v17  ;;  %1209 = vmatpush3.bf16.msra.mxu1 %v1249_v17 }
  0x2d   : > { %553 = vmatmul.mubr.bf16.vlgmr.msra.gmra.mxu0 %v1250_v18  ;;  %609 = vmatmul.mubr.bf16.vlgmr.msra.gmra.mxu1 %v1253_v19 }
  0x2e   : > { %560 = vmatprep.mubr.bf16.mxu0 %v1256_v20  ;;  %616 = vmatprep.mubr.bf16.mxu1 %v1259_v21 }
  0x35   : > { %561 = vmatmul.mubr.bf16.gmra.mxu0 %v1258_v22  ;;  %617 = vmatmul.mubr.bf16.gmra.mxu1 %v1261_v23 }
  0x36   : > { %568 = vmatprep.mubr.bf16.mxu0 %v1262_v24  ;;  %624 = vmatprep.mubr.bf16.mxu1 %v1265_v25 }
  0x3d   : > { %569 = vmatmul.mubr.bf16.gmra.mxu0 %v1264_v26  ;;  %625 = vmatmul.mubr.bf16.gmra.mxu1 %v1267_v27 }
  0x3e   : > { %576 = vmatprep.mubr.bf16.mxu0 %v1268_v28  ;;  %632 = vmatprep.mubr.bf16.mxu1 %v1271_v29 }
  0x45   : > { %577 = vmatmul.mubr.bf16.gmra.mxu0 %v1270_v30  ;;  %633 = vmatmul.mubr.bf16.gmra.mxu1 %v1273_v31 }
  0x46   : > { %584 = vmatprep.mubr.bf16.mxu0 %v1274_v32  ;;  %640 = vmatprep.mubr.bf16.mxu1 %v1277_v33 }
  0x4d   : > { %585 = vmatmul.mubr.bf16.gmra.mxu0 %v1276_v34  ;;  %641 = vmatmul.mubr.bf16.gmra.mxu1 %v1279_v35 }
  0x4e   : > { %592 = vmatprep.mubr.bf16.mxu0 %v1280_v36  ;;  %648 = vmatprep.mubr.bf16.mxu1 %v1283_v37 }
  0x55   : > { %593 = vmatmul.mubr.bf16.gmra.mxu0 %v1282_v38  ;;  %649 = vmatmul.mubr.bf16.gmra.mxu1 %v1285_v39 }
  0x56   : > { %600 = vmatprep.mubr.bf16.mxu0 %v1286_v40 }
  0x5d   : > { %601 = vmatmul.mubr.bf16.gmra.mxu0 %v1288_v41 }
  0xed   : > { %v1116_v42 = vpop.f32.mrf.mxu0  ;;  %v1158_v43 = vpop.f32.mrf.mxu1 }
  0xef   : > { %v1117_v44 = vpop.f32.mrf.mxu0  ;;  %v1159_v45 = vpop.f32.mrf.mxu1 }
  0xf0   : > { %v1118_v47 = vadd.f32 %v1117_v44, %v1116_v42  ;;  %v1160_v48 = vadd.f32 %v1159_v45, %v1158_v43 }
  0xf1   : > { %v1119_v49 = vpop.f32.mrf.mxu0  ;;  %v1161_v50 = vpop.f32.mrf.mxu1 }
  0xf2   : > { %v611_v51 = vadd.f32 %v1160_v48, %v1436_v46  ;;  %v555_v52 = vadd.f32 %v1118_v47, %v1436_v46 }
  0xf3   : > { %v1120_v53 = vpop.f32.mrf.mxu0  ;;  %v1162_v54 = vpop.f32.mrf.mxu1 }
  0xf4   : > { %v1121_v55 = vadd.f32 %v1120_v53, %v1119_v49  ;;  %v1163_v56 = vadd.f32 %v1162_v54, %v1161_v50  ;;  %v671_v59 = vmax.f32 %v611_v51, 0.0  ;;  %v657_v62 = vmax.f32 %v555_v52, 0.0 }
  0xf5   : > { %v1122_v57 = vpop.f32.mrf.mxu0  ;;  %v1164_v58 = vpop.f32.mrf.mxu1 }
  0xf6   : > { %v558_v60 = vadd.f32 %v1121_v55, %v1436_v46  ;;  %v614_v61 = vadd.f32 %v1163_v56, %v1436_v46 }
  0xf7   : > { %v1123_v63 = vpop.f32.mrf.mxu0  ;;  %v1165_v0 = vpop.f32.mrf.mxu1 }
  0xf8   : > { %v658_v1 = vmax.f32 %v558_v60, 0.0  ;;  %v672_v2 = vmax.f32 %v614_v61, 0.0  ;;  %v1124_v3 = vadd.f32 %v1123_v63, %v1122_v57  ;;  %v1166_v4 = vadd.f32 %v1165_v0, %v1164_v58 }
  0xf9   : > { %v1125_v5 = vpop.f32.mrf.mxu0  ;;  %v1167_v6 = vpop.f32.mrf.mxu1 }
  0xfa   : > { %v1026_v7 = vpack.c.bf16 %v658_v1, %v657_v62  ;;  %v1061_v8 = vpack.c.bf16 %v672_v2, %v671_v59  ;;  %v619_v9 = vadd.f32 %v1166_v4, %v1436_v46  ;;  %v563_v10 = vadd.f32 %v1124_v3, %v1436_v46 }
  0xfb   : > { %v1126_v11 = vpop.f32.mrf.mxu0  ;;  %v1168_v12 = vpop.f32.mrf.mxu1 }
  0xfc   : > { %1027 = vst [vmem:[%s1446_s8] sm:$0xff] %v1026_v7   ;;  %1094 = vst [vmem:[%s1446_s8 + $0x38] sm:$0xff] %v1061_v8   ;;  %v1127_v13 = vadd.f32 %v1126_v11, %v1125_v5  ;;  %v1169_v14 = vadd.f32 %v1168_v12, %v1167_v6  ;;  %v673_v17 = vmax.f32 %v619_v9, 0.0  ;;  %v659_v20 = vmax.f32 %v563_v10, 0.0 }
  0xfd   : > { %v1128_v15 = vpop.f32.mrf.mxu0  ;;  %v1170_v16 = vpop.f32.mrf.mxu1 }
  0xfe   : > { %v566_v18 = vadd.f32 %v1127_v13, %v1436_v46  ;;  %v622_v19 = vadd.f32 %v1169_v14, %v1436_v46 }
  0xff   : > { %v1129_v21 = vpop.f32.mrf.mxu0  ;;  %v1171_v22 = vpop.f32.mrf.mxu1 }
 0x100   : > { %v660_v23 = vmax.f32 %v566_v18, 0.0  ;;  %v674_v24 = vmax.f32 %v622_v19, 0.0  ;;  %v1130_v25 = vadd.f32 %v1129_v21, %v1128_v15  ;;  %v1172_v26 = vadd.f32 %v1171_v22, %v1170_v16 }
 0x101   : > { %v1131_v27 = vpop.f32.mrf.mxu0  ;;  %v1173_v28 = vpop.f32.mrf.mxu1 }
 0x102   : > { %v1031_v29 = vpack.c.bf16 %v660_v23, %v659_v20  ;;  %v1066_v30 = vpack.c.bf16 %v674_v24, %v673_v17  ;;  %v627_v31 = vadd.f32 %v1172_v26, %v1436_v46  ;;  %v571_v32 = vadd.f32 %v1130_v25, %v1436_v46 }
 0x103   : > { %v1132_v33 = vpop.f32.mrf.mxu0  ;;  %v1174_v34 = vpop.f32.mrf.mxu1 }
 0x104   : > { %1088 = vst [vmem:[%s1446_s8 + $0x8] sm:$0xff] %v1031_v29   ;;  %1095 = vst [vmem:[%s1446_s8 + $0x40] sm:$0xff] %v1066_v30   ;;  %v1133_v35 = vadd.f32 %v1132_v33, %v1131_v27  ;;  %v1175_v36 = vadd.f32 %v1174_v34, %v1173_v28  ;;  %v675_v39 = vmax.f32 %v627_v31, 0.0  ;;  %v661_v42 = vmax.f32 %v571_v32, 0.0 }
 0x105   : > { %v1134_v37 = vpop.f32.mrf.mxu0  ;;  %v1176_v38 = vpop.f32.mrf.mxu1 }
 0x106   : > { %v574_v40 = vadd.f32 %v1133_v35, %v1436_v46  ;;  %v630_v41 = vadd.f32 %v1175_v36, %v1436_v46 }
 0x107   : > { %v1135_v43 = vpop.f32.mrf.mxu0  ;;  %v1177_v44 = vpop.f32.mrf.mxu1 }
 0x108   : > { %v662_v45 = vmax.f32 %v574_v40, 0.0  ;;  %v676_v47 = vmax.f32 %v630_v41, 0.0  ;;  %v1136_v48 = vadd.f32 %v1135_v43, %v1134_v37  ;;  %v1178_v49 = vadd.f32 %v1177_v44, %v1176_v38 }
 0x109   : > { %v1137_v50 = vpop.f32.mrf.mxu0  ;;  %v1179_v51 = vpop.f32.mrf.mxu1 }
 0x10a   : > { %v1036_v52 = vpack.c.bf16 %v662_v45, %v661_v42  ;;  %v1071_v53 = vpack.c.bf16 %v676_v47, %v675_v39  ;;  %v635_v54 = vadd.f32 %v1178_v49, %v1436_v46  ;;  %v579_v55 = vadd.f32 %v1136_v48, %v1436_v46 }
 0x10b   : > { %v1138_v56 = vpop.f32.mrf.mxu0  ;;  %v1180_v57 = vpop.f32.mrf.mxu1 }
 0x10c   : > { %1089 = vst [vmem:[%s1446_s8 + $0x10] sm:$0xff] %v1036_v52   ;;  %1096 = vst [vmem:[%s1446_s8 + $0x48] sm:$0xff] %v1071_v53   ;;  %v1139_v58 = vadd.f32 %v1138_v56, %v1137_v50  ;;  %v1181_v59 = vadd.f32 %v1180_v57, %v1179_v51  ;;  %v677_v62 = vmax.f32 %v635_v54, 0.0  ;;  %v663_v1 = vmax.f32 %v579_v55, 0.0 }
 0x10d   : > { %v1140_v60 = vpop.f32.mrf.mxu0  ;;  %v1182_v61 = vpop.f32.mrf.mxu1 }
 0x10e   : > { %v582_v63 = vadd.f32 %v1139_v58, %v1436_v46  ;;  %v638_v0 = vadd.f32 %v1181_v59, %v1436_v46 }
 0x10f   : > { %v1141_v2 = vpop.f32.mrf.mxu0  ;;  %v1183_v3 = vpop.f32.mrf.mxu1 }
 0x110   : > { %v664_v4 = vmax.f32 %v582_v63, 0.0  ;;  %v678_v5 = vmax.f32 %v638_v0, 0.0  ;;  %v1142_v6 = vadd.f32 %v1141_v2, %v1140_v60  ;;  %v1184_v7 = vadd.f32 %v1183_v3, %v1182_v61 }
 0x111   : > { %v1143_v8 = vpop.f32.mrf.mxu0  ;;  %v1185_v9 = vpop.f32.mrf.mxu1 }
 0x112   : > { %v1041_v10 = vpack.c.bf16 %v664_v4, %v663_v1  ;;  %v1076_v11 = vpack.c.bf16 %v678_v5, %v677_v62  ;;  %v643_v12 = vadd.f32 %v1184_v7, %v1436_v46  ;;  %v587_v13 = vadd.f32 %v1142_v6, %v1436_v46 }
 0x113   : > { %v1144_v14 = vpop.f32.mrf.mxu0  ;;  %v1186_v15 = vpop.f32.mrf.mxu1 }
 0x114   : > { %1090 = vst [vmem:[%s1446_s8 + $0x18] sm:$0xff] %v1041_v10   ;;  %1097 = vst [vmem:[%s1446_s8 + $0x50] sm:$0xff] %v1076_v11   ;;  %v1145_v16 = vadd.f32 %v1144_v14, %v1143_v8  ;;  %v1187_v17 = vadd.f32 %v1186_v15, %v1185_v9  ;;  %v679_v20 = vmax.f32 %v643_v12, 0.0  ;;  %v665_v23 = vmax.f32 %v587_v13, 0.0 }
 0x115   : > { %v1146_v18 = vpop.f32.mrf.mxu0  ;;  %v1188_v19 = vpop.f32.mrf.mxu1 }
 0x116   : > { %v590_v21 = vadd.f32 %v1145_v16, %v1436_v46  ;;  %v646_v22 = vadd.f32 %v1187_v17, %v1436_v46 }
 0x117   : > { %v1147_v24 = vpop.f32.mrf.mxu0  ;;  %v1189_v25 = vpop.f32.mrf.mxu1 }
 0x118   : > { %v666_v26 = vmax.f32 %v590_v21, 0.0  ;;  %v680_v27 = vmax.f32 %v646_v22, 0.0  ;;  %v1148_v28 = vadd.f32 %v1147_v24, %v1146_v18  ;;  %v1190_v29 = vadd.f32 %v1189_v25, %v1188_v19 }
 0x119   : > { %v1149_v30 = vpop.f32.mrf.mxu0  ;;  %v1191_v31 = vpop.f32.mrf.mxu1 }
 0x11a   : > { %v1046_v32 = vpack.c.bf16 %v666_v26, %v665_v23  ;;  %v1081_v33 = vpack.c.bf16 %v680_v27, %v679_v20  ;;  %v651_v34 = vadd.f32 %v1190_v29, %v1436_v46  ;;  %v595_v37 = vadd.f32 %v1148_v28, %v1436_v46 }
 0x11b   : > { %v1150_v35 = vpop.f32.mrf.mxu0  ;;  %v1192_v36 = vpop.f32.mrf.mxu1 }
 0x11c   : > { %1091 = vst [vmem:[%s1446_s8 + $0x20] sm:$0xff] %v1046_v32   ;;  %1098 = vst [vmem:[%s1446_s8 + $0x58] sm:$0xff] %v1081_v33   ;;  %v1151_v38 = vadd.f32 %v1150_v35, %v1149_v30  ;;  %v1193_v39 = vadd.f32 %v1192_v36, %v1191_v31  ;;  %v681_v41 = vmax.f32 %v651_v34, 0.0  ;;  %v667_v45 = vmax.f32 %v595_v37, 0.0 }
 0x11d   : > { %v1152_v40 = vpop.f32.mrf.mxu0 }
 0x11e   : > { %v598_v42 = vadd.f32 %v1151_v38, %v1436_v46  ;;  %v654_v43 = vadd.f32 %v1193_v39, %v1436_v46 }
 0x11f   : > { %v1153_v44 = vpop.f32.mrf.mxu0 }
 0x120   : > { %v668_v47 = vmax.f32 %v598_v42, 0.0  ;;  %v682_v48 = vmax.f32 %v654_v43, 0.0  ;;  %v1154_v49 = vadd.f32 %v1153_v44, %v1152_v40 }
 0x121   : > { %v1155_v50 = vpop.f32.mrf.mxu0 }
 0x122   : > { %v1051_v51 = vpack.c.bf16 %v668_v47, %v667_v45  ;;  %v1086_v52 = vpack.c.bf16 %v682_v48, %v681_v41  ;;  %v603_v54 = vadd.f32 %v1154_v49, %v1436_v46 }
 0x123   : > { %v1156_v53 = vpop.f32.mrf.mxu0 }
 0x124   : > { %1092 = vst [vmem:[%s1446_s8 + $0x28] sm:$0xff] %v1051_v51   ;;  %1099 = vst [vmem:[%s1446_s8 + $0x60] sm:$0xff] %v1086_v52   ;;  %v1157_v55 = vadd.f32 %v1156_v53, %v1155_v50  ;;  %v669_v57 = vmax.f32 %v603_v54, 0.0 }
 0x126   : > { %v606_v56 = vadd.f32 %v1157_v55, %v1436_v46 }
 0x128   : > { %v670_v58 = vmax.f32 %v606_v56, 0.0 }
 0x12a   : > { %v1056_v59 = vpack.c.bf16 %v670_v58, %v669_v57 }
 0x12c   : > { %1093 = vst [vmem:[%s1446_s8 + $0x30] sm:$0xff] %v1056_v59  }
 0x12d PF: > { %s13_s14 = sadd.s32 1, %s1311_s14   ;;  %s1496_s12 = smov %s1307_s13 }
 0x12e   : > { %p10_p5 = scmp.ge.s32.totalorder %s13_s14, 6   ;;  %s1497_s13 = smov %s1499_s15 }
 0x130   :  { %12 = sbr.rel (!%p10_p5) target bundleno = 2 (0x2), region = 68 }

// kernel: dqn_forward.5
= control target key start
LH: loop header
LB: loop body
LE: loop exit
PB: predicated region body
PF: predicated region fallthrough
CT: control target
= control target key end

     0   :  { %s1676_s1 = inlined_call_operand.vmem [shape: bf16[512,128], index: 1, kind: input, shape index: {}]   ;;  %s1677_s0 = inlined_call_operand.vmem [shape: bf16[176,512], index: 0, kind: input, shape index: {}]   ;;  %s1678_s2 = inlined_call_operand.vmem [shape: f32[1,128], index: 2, kind: input, shape index: {}]   ;;  %s1679_s3 = inlined_call_operand.vmem [shape: bf16[176,128], index: 3, kind: output, shape index: {}]  }
   0x1   :  { %v1270_v0 = vld [vmem:[%s1676_s1 + $0x78] sm:$0xff]   ;;  %v1274_v4 = vld [vmem:[%s1676_s1 + $0x70] sm:$0xff]   ;;  %v1278_v8 = vld [vmem:[%s1676_s1 + $0x68] sm:$0xff]  }
   0x2   :  { %v1271_v1 = vld [vmem:[%s1676_s1 + $0xf8] sm:$0xff]   ;;  %1106 = vmatprep.subr.bf16.mxu0 %v1270_v0  ;;  %v1275_v5 = vld [vmem:[%s1676_s1 + $0xf0] sm:$0xff]   ;;  %v1279_v9 = vld [vmem:[%s1676_s1 + $0xe8] sm:$0xff]  }
   0x3   :  { %v1272_v2 = vld [vmem:[%s1676_s1 + $0x38] sm:$0xff]   ;;  %1188 = vmatprep.subr.bf16.mxu1 %v1271_v1  ;;  %v1276_v6 = vld [vmem:[%s1676_s1 + $0x30] sm:$0xff]   ;;  %v1280_v10 = vld [vmem:[%s1676_s1 + $0x28] sm:$0xff]  }
   0x4   :  { %v1273_v3 = vld [vmem:[%s1676_s1 + $0xb8] sm:$0xff]   ;;  %1107 = vmatpush3.bf16.msra.mxu0 %v1272_v2  ;;  %v1277_v7 = vld [vmem:[%s1676_s1 + $0xb0] sm:$0xff]   ;;  %v1281_v11 = vld [vmem:[%s1676_s1 + $0xa8] sm:$0xff]  }
   0x5   :  { %1189 = vmatpush3.bf16.msra.mxu1 %v1273_v3  ;;  %1108 = vmatprep.subr.bf16.mxu0 %v1274_v4  ;;  %v1282_v12 = vld [vmem:[%s1676_s1 + $0x60] sm:$0xff]   ;;  %v1286_v16 = vld [vmem:[%s1676_s1 + $0x58] sm:$0xff]   ;;  %v1290_v20 = vld [vmem:[%s1676_s1 + $0x50] sm:$0xff]  }
   0x6   :  { %1190 = vmatprep.subr.bf16.mxu1 %v1275_v5  ;;  %v1283_v13 = vld [vmem:[%s1676_s1 + $0xe0] sm:$0xff]   ;;  %v1287_v17 = vld [vmem:[%s1676_s1 + $0xd8] sm:$0xff]   ;;  %v1291_v21 = vld [vmem:[%s1676_s1 + $0xd0] sm:$0xff]  }
   0x7   :  { %v1284_v14 = vld [vmem:[%s1676_s1 + $0x20] sm:$0xff]   ;;  %v1288_v18 = vld [vmem:[%s1676_s1 + $0x18] sm:$0xff]   ;;  %v1292_v22 = vld [vmem:[%s1676_s1 + $0x10] sm:$0xff]  }
   0x8   :  { %1109 = vmatpush3.bf16.msra.mxu0 %v1276_v6  ;;  %v1285_v15 = vld [vmem:[%s1676_s1 + $0xa0] sm:$0xff]   ;;  %v1289_v19 = vld [vmem:[%s1676_s1 + $0x98] sm:$0xff]   ;;  %v1293_v23 = vld [vmem:[%s1676_s1 + $0x90] sm:$0xff]  }
   0x9   :  { %1191 = vmatpush3.bf16.msra.mxu1 %v1277_v7  ;;  %1110 = vmatprep.subr.bf16.mxu0 %v1278_v8  ;;  %v1294_v24 = vld [vmem:[%s1676_s1 + $0x48] sm:$0xff]   ;;  %v1298_v28 = vld [vmem:[%s1676_s1 + $0x40] sm:$0xff]  }
   0xa   :  { %1192 = vmatprep.subr.bf16.mxu1 %v1279_v9  ;;  %v1295_v25 = vld [vmem:[%s1676_s1 + $0xc8] sm:$0xff]   ;;  %v1299_v29 = vld [vmem:[%s1676_s1 + $0xc0] sm:$0xff]  }
   0xb   :  { %v1296_v26 = vld [vmem:[%s1676_s1 + $0x8] sm:$0xff]   ;;  %v1300_v30 = vld [vmem:[%s1676_s1] sm:$0xff]  }
   0xc   :  { %1111 = vmatpush3.bf16.msra.mxu0 %v1280_v10  ;;  %v1297_v27 = vld [vmem:[%s1676_s1 + $0x88] sm:$0xff]   ;;  %v1301_v31 = vld [vmem:[%s1676_s1 + $0x80] sm:$0xff]  }
   0xd   :  { %1193 = vmatpush3.bf16.msra.mxu1 %v1281_v11  ;;  %1112 = vmatprep.subr.bf16.mxu0 %v1282_v12  ;;  %v1302_v32 = vld [vmem:[%s1677_s0] ss:$16 sps:$4 sm:$0xff]   ;;  %v1304_v33 = vld [vmem:[%s1677_s0 + $0x4] ss:$16 sps:$4 sm:$0xff]   ;;  %v1305_v34 = vld [vmem:[%s1677_s0 + $0x8] ss:$16 sps:$4 sm:$0xff]  }
   0xe   :  { %1194 = vmatprep.subr.bf16.mxu1 %v1283_v13  ;;  %v1307_v35 = vld [vmem:[%s1677_s0 + $0xc] ss:$16 sps:$4 sm:$0xff]   ;;  %574 = vmatprep.mubr.bf16.mxu0 %v1304_v33  ;;  %v1308_v36 = vld [vmem:[%s1677_s0 + $0x24] ss:$16 sps:$4 sm:$0xff]   ;;  %v1312_v38 = vld [vmem:[%s1677_s0 + $0x20] ss:$16 sps:$4 sm:$0xff]  }
   0xf   :  { %695 = vmatprep.mubr.bf16.mxu1 %v1307_v35  ;;  %v1310_v37 = vld [vmem:[%s1677_s0 + $0x2c] ss:$16 sps:$4 sm:$0xff]   ;;  %v1313_v39 = vld [vmem:[%s1677_s0 + $0x28] ss:$16 sps:$4 sm:$0xff]   ;;  %v1314_v40 = vld [vmem:[%s1677_s0 + $0x44] ss:$16 sps:$4 sm:$0xff]  }
  0x10   :  { %1113 = vmatpush3.bf16.msra.mxu0 %v1284_v14  ;;  %v1316_v41 = vld [vmem:[%s1677_s0 + $0x4c] ss:$16 sps:$4 sm:$0xff]   ;;  %v1318_v42 = vld [vmem:[%s1677_s0 + $0x40] ss:$16 sps:$4 sm:$0xff]   ;;  %v1319_v43 = vld [vmem:[%s1677_s0 + $0x48] ss:$16 sps:$4 sm:$0xff]  }
  0x11   :  { %1195 = vmatpush3.bf16.msra.mxu1 %v1285_v15  ;;  %1114 = vmatprep.subr.bf16.mxu0 %v1286_v16  ;;  %v1320_v44 = vld [vmem:[%s1677_s0 + $0x64] ss:$16 sps:$4 sm:$0xff]   ;;  %v1322_v45 = vld [vmem:[%s1677_s0 + $0x6c] ss:$16 sps:$4 sm:$0xff]   ;;  %v1324_v46 = vld [vmem:[%s1677_s0 + $0x60] ss:$16 sps:$4 sm:$0xff]  }
  0x12   :  { %1196 = vmatprep.subr.bf16.mxu1 %v1287_v17  ;;  %v1325_v47 = vld [vmem:[%s1677_s0 + $0x68] ss:$16 sps:$4 sm:$0xff]   ;;  %v1326_v48 = vld [vmem:[%s1677_s0 + $0x84] ss:$16 sps:$4 sm:$0xff]   ;;  %v1328_v49 = vld [vmem:[%s1677_s0 + $0x8c] ss:$16 sps:$4 sm:$0xff]  }
  0x13   :  { %v1330_v50 = vld [vmem:[%s1677_s0 + $0x80] ss:$16 sps:$4 sm:$0xff]   ;;  %v1331_v51 = vld [vmem:[%s1677_s0 + $0x88] ss:$16 sps:$4 sm:$0xff]   ;;  %v1332_v52 = vld [vmem:[%s1677_s0 + $0xa4] ss:$16 sps:$4 sm:$0xff]  }
  0x14   :  { %1115 = vmatpush3.bf16.msra.mxu0 %v1288_v18  ;;  %v1334_v53 = vld [vmem:[%s1677_s0 + $0xac] ss:$16 sps:$4 sm:$0xff]   ;;  %v1336_v54 = vld [vmem:[%s1677_s0 + $0xa0] ss:$16 sps:$4 sm:$0xff]   ;;  %v1337_v55 = vld [vmem:[%s1677_s0 + $0xa8] ss:$16 sps:$4 sm:$0xff]  }
  0x15   :  { %1197 = vmatpush3.bf16.msra.mxu1 %v1289_v19  ;;  %1116 = vmatprep.subr.bf16.mxu0 %v1290_v20  ;;  %v1338_v56 = vld [vmem:[%s1677_s0 + $0xc4] ss:$16 sps:$4 sm:$0xff]   ;;  %v1340_v57 = vld [vmem:[%s1677_s0 + $0xcc] ss:$16 sps:$4 sm:$0xff]   ;;  %v1342_v58 = vld [vmem:[%s1677_s0 + $0xc0] ss:$16 sps:$4 sm:$0xff]  }
  0x16   :  { %1198 = vmatprep.subr.bf16.mxu1 %v1291_v21  ;;  %v1343_v59 = vld [vmem:[%s1677_s0 + $0xc8] ss:$16 sps:$4 sm:$0xff]   ;;  %v1344_v60 = vld [vmem:[%s1677_s0 + $0xe4] ss:$16 sps:$4 sm:$0xff]   ;;  %v1346_v61 = vld [vmem:[%s1677_s0 + $0xec] ss:$16 sps:$4 sm:$0xff]  }
  0x17   :  { %v1348_v62 = vld [vmem:[%s1677_s0 + $0xe0] ss:$16 sps:$4 sm:$0xff]   ;;  %v1349_v63 = vld [vmem:[%s1677_s0 + $0xe8] ss:$16 sps:$4 sm:$0xff]   ;;  %v1350_v0 = vld [vmem:[%s1677_s0 + $0x104] ss:$16 sps:$4 sm:$0xff]  }
  0x18   :  { %1117 = vmatpush3.bf16.msra.mxu0 %v1292_v22  ;;  %v1352_v1 = vld [vmem:[%s1677_s0 + $0x10c] ss:$16 sps:$4 sm:$0xff]   ;;  %v1354_v2 = vld [vmem:[%s1677_s0 + $0x100] ss:$16 sps:$4 sm:$0xff]   ;;  %v1355_v3 = vld [vmem:[%s1677_s0 + $0x108] ss:$16 sps:$4 sm:$0xff]  }
  0x19   :  { %1199 = vmatpush3.bf16.msra.mxu1 %v1293_v23  ;;  %1118 = vmatprep.subr.bf16.mxu0 %v1294_v24  ;;  %v1356_v4 = vld [vmem:[%s1677_s0 + $0x124] ss:$16 sps:$4 sm:$0xff]   ;;  %v1358_v5 = vld [vmem:[%s1677_s0 + $0x12c] ss:$16 sps:$4 sm:$0xff]   ;;  %v1360_v6 = vld [vmem:[%s1677_s0 + $0x120] ss:$16 sps:$4 sm:$0xff]  }
  0x1a   :  { %1200 = vmatprep.subr.bf16.mxu1 %v1295_v25  ;;  %v1361_v7 = vld [vmem:[%s1677_s0 + $0x128] ss:$16 sps:$4 sm:$0xff]   ;;  %v1362_v8 = vld [vmem:[%s1677_s0 + $0x144] ss:$16 sps:$4 sm:$0xff]   ;;  %v1364_v9 = vld [vmem:[%s1677_s0 + $0x14c] ss:$16 sps:$4 sm:$0xff]  }
  0x1b   :  { %v1366_v10 = vld [vmem:[%s1677_s0 + $0x140] ss:$16 sps:$4 sm:$0xff]   ;;  %v1367_v11 = vld [vmem:[%s1677_s0 + $0x148] ss:$16 sps:$4 sm:$0xff]  }
  0x1c   :  { %1119 = vmatpush3.bf16.msra.mxu0 %v1296_v26  ;;  %v1619_v14 = vld [vmem:[%s1678_s2] ss:$0 sm:$0xff] }
  0x1d   :  { %1201 = vmatpush3.bf16.msra.mxu1 %v1297_v27  ;;  %1120 = vmatprep.subr.bf16.mxu0 %v1298_v28 }
  0x1e   :  { %1202 = vmatprep.subr.bf16.mxu1 %v1299_v29 }
  0x20   :  { %1121 = vmatpush3.bf16.msra.mxu0 %v1300_v30 }
  0x21   :  { %1203 = vmatpush3.bf16.msra.mxu1 %v1301_v31 }
  0x23   :  { %575 = vmatmul.mubr.bf16.vlgmr.msra.gmra.mxu0 %v1302_v32 }
  0x24   :  { %696 = vmatmul.mubr.bf16.vlgmr.msra.gmra.mxu1 %v1305_v34  ;;  %582 = vmatprep.mubr.bf16.mxu0 %v1308_v36 }
  0x25   :  { %703 = vmatprep.mubr.bf16.mxu1 %v1310_v37 }
  0x2b   :  { %583 = vmatmul.mubr.bf16.gmra.mxu0 %v1312_v38 }
  0x2c   :  { %704 = vmatmul.mubr.bf16.gmra.mxu1 %v1313_v39  ;;  %590 = vmatprep.mubr.bf16.mxu0 %v1314_v40 }
  0x2d   :  { %711 = vmatprep.mubr.bf16.mxu1 %v1316_v41 }
  0x33   :  { %591 = vmatmul.mubr.bf16.gmra.mxu0 %v1318_v42 }
  0x34   :  { %712 = vmatmul.mubr.bf16.gmra.mxu1 %v1319_v43  ;;  %598 = vmatprep.mubr.bf16.mxu0 %v1320_v44 }
  0x35   :  { %719 = vmatprep.mubr.bf16.mxu1 %v1322_v45 }
  0x3b   :  { %599 = vmatmul.mubr.bf16.gmra.mxu0 %v1324_v46 }
  0x3c   :  { %720 = vmatmul.mubr.bf16.gmra.mxu1 %v1325_v47  ;;  %606 = vmatprep.mubr.bf16.mxu0 %v1326_v48 }
  0x3d   :  { %727 = vmatprep.mubr.bf16.mxu1 %v1328_v49 }
  0x43   :  { %607 = vmatmul.mubr.bf16.gmra.mxu0 %v1330_v50 }
  0x44   :  { %728 = vmatmul.mubr.bf16.gmra.mxu1 %v1331_v51  ;;  %614 = vmatprep.mubr.bf16.mxu0 %v1332_v52 }
  0x45   :  { %735 = vmatprep.mubr.bf16.mxu1 %v1334_v53 }
  0x4b   :  { %615 = vmatmul.mubr.bf16.gmra.mxu0 %v1336_v54 }
  0x4c   :  { %736 = vmatmul.mubr.bf16.gmra.mxu1 %v1337_v55  ;;  %622 = vmatprep.mubr.bf16.mxu0 %v1338_v56 }
  0x4d   :  { %743 = vmatprep.mubr.bf16.mxu1 %v1340_v57 }
  0x53   :  { %623 = vmatmul.mubr.bf16.gmra.mxu0 %v1342_v58 }
  0x54   :  { %744 = vmatmul.mubr.bf16.gmra.mxu1 %v1343_v59  ;;  %630 = vmatprep.mubr.bf16.mxu0 %v1344_v60 }
  0x55   :  { %751 = vmatprep.mubr.bf16.mxu1 %v1346_v61 }
  0x5b   :  { %631 = vmatmul.mubr.bf16.gmra.mxu0 %v1348_v62 }
  0x5c   :  { %752 = vmatmul.mubr.bf16.gmra.mxu1 %v1349_v63  ;;  %638 = vmatprep.mubr.bf16.mxu0 %v1350_v0 }
  0x5d   :  { %759 = vmatprep.mubr.bf16.mxu1 %v1352_v1 }
  0x63   :  { %639 = vmatmul.mubr.bf16.gmra.mxu0 %v1354_v2 }
  0x64   :  { %760 = vmatmul.mubr.bf16.gmra.mxu1 %v1355_v3  ;;  %646 = vmatprep.mubr.bf16.mxu0 %v1356_v4 }
  0x65   :  { %767 = vmatprep.mubr.bf16.mxu1 %v1358_v5 }
  0x6b   :  { %647 = vmatmul.mubr.bf16.gmra.mxu0 %v1360_v6 }
  0x6c   :  { %768 = vmatmul.mubr.bf16.gmra.mxu1 %v1361_v7  ;;  %654 = vmatprep.mubr.bf16.mxu0 %v1362_v8 }
  0x6d   :  { %775 = vmatprep.mubr.bf16.mxu1 %v1364_v9 }
  0x73   :  { %655 = vmatmul.mubr.bf16.gmra.mxu0 %v1366_v10 }
  0x74   :  { %776 = vmatmul.mubr.bf16.gmra.mxu1 %v1367_v11 }
  0xe3   :  { %v1122_v12 = vpop.f32.mrf.mxu0 }
  0xe4   :  { %v1204_v13 = vpop.f32.mrf.mxu1 }
  0xe5   :  { %v1123_v15 = vpop.f32.mrf.mxu0 }
  0xe6   :  { %v1124_v16 = vadd.f32 %v1123_v15, %v1122_v12  ;;  %v1205_v17 = vpop.f32.mrf.mxu1 }
  0xe7   :  { %v1125_v18 = vpop.f32.mrf.mxu0  ;;  %v1206_v22 = vadd.f32 %v1205_v17, %v1204_v13 }
  0xe8   :  { %v577_v19 = vadd.f32 %v1124_v16, %v1619_v14  ;;  %v1207_v20 = vpop.f32.mrf.mxu1 }
  0xe9   :  { %v1126_v21 = vpop.f32.mrf.mxu0 }
  0xea   :  { %v1127_v23 = vadd.f32 %v1126_v21, %v1125_v18  ;;  %v1208_v24 = vpop.f32.mrf.mxu1  ;;  %v698_v26 = vadd.f32 %v1206_v22, %v577_v19 }
  0xeb   :  { %v1128_v25 = vpop.f32.mrf.mxu0  ;;  %v1209_v28 = vadd.f32 %v1208_v24, %v1207_v20 }
  0xec   :  { %v580_v27 = vadd.f32 %v1127_v23, %v1619_v14  ;;  %v1210_v29 = vpop.f32.mrf.mxu1  ;;  %v784_v35 = vmax.f32 %v698_v26, 0.0 }
  0xed   :  { %v1129_v30 = vpop.f32.mrf.mxu0 }
  0xee   :  { %v701_v31 = vadd.f32 %v1209_v28, %v580_v27  ;;  %v1130_v32 = vadd.f32 %v1129_v30, %v1128_v25  ;;  %v1211_v33 = vpop.f32.mrf.mxu1 }
  0xef   :  { %v1131_v34 = vpop.f32.mrf.mxu0  ;;  %v1212_v41 = vadd.f32 %v1211_v33, %v1210_v29 }
  0xf0   :  { %v785_v36 = vmax.f32 %v701_v31, 0.0  ;;  %v585_v37 = vadd.f32 %v1130_v32, %v1619_v14  ;;  %v1213_v38 = vpop.f32.mrf.mxu1 }
  0xf1   :  { %v1132_v39 = vpop.f32.mrf.mxu0 }
  0xf2   :  { %v1044_v40 = vpack.c.bf16 %v785_v36, %v784_v35  ;;  %v1133_v42 = vadd.f32 %v1132_v39, %v1131_v34  ;;  %v1214_v43 = vpop.f32.mrf.mxu1  ;;  %v706_v45 = vadd.f32 %v1212_v41, %v585_v37 }
  0xf3   :  { %v1134_v44 = vpop.f32.mrf.mxu0  ;;  %v1215_v47 = vadd.f32 %v1214_v43, %v1213_v38 }
  0xf4   :  { %1045 = vst [vmem:[%s1679_s3] sm:$0xff] %v1044_v40   ;;  %v588_v46 = vadd.f32 %v1133_v42, %v1619_v14  ;;  %v1216_v48 = vpop.f32.mrf.mxu1  ;;  %v786_v54 = vmax.f32 %v706_v45, 0.0 }
  0xf5   :  { %v1135_v49 = vpop.f32.mrf.mxu0 }
  0xf6   :  { %v709_v50 = vadd.f32 %v1215_v47, %v588_v46  ;;  %v1136_v51 = vadd.f32 %v1135_v49, %v1134_v44  ;;  %v1217_v52 = vpop.f32.mrf.mxu1 }
  0xf7   :  { %v1137_v53 = vpop.f32.mrf.mxu0  ;;  %v1218_v60 = vadd.f32 %v1217_v52, %v1216_v48 }
  0xf8   :  { %v787_v55 = vmax.f32 %v709_v50, 0.0  ;;  %v593_v56 = vadd.f32 %v1136_v51, %v1619_v14  ;;  %v1219_v57 = vpop.f32.mrf.mxu1 }
  0xf9   :  { %v1138_v58 = vpop.f32.mrf.mxu0 }
  0xfa   :  { %v1049_v59 = vpack.c.bf16 %v787_v55, %v786_v54  ;;  %v1139_v61 = vadd.f32 %v1138_v58, %v1137_v53  ;;  %v1220_v62 = vpop.f32.mrf.mxu1  ;;  %v714_v0 = vadd.f32 %v1218_v60, %v593_v56 }
  0xfb   :  { %v1140_v63 = vpop.f32.mrf.mxu0  ;;  %v1221_v2 = vadd.f32 %v1220_v62, %v1219_v57 }
  0xfc   :  { %1096 = vst [vmem:[%s1679_s3 + $0x8] sm:$0xff] %v1049_v59   ;;  %v596_v1 = vadd.f32 %v1139_v61, %v1619_v14  ;;  %v1222_v3 = vpop.f32.mrf.mxu1  ;;  %v788_v9 = vmax.f32 %v714_v0, 0.0 }
  0xfd   :  { %v1141_v4 = vpop.f32.mrf.mxu0 }
  0xfe   :  { %v717_v5 = vadd.f32 %v1221_v2, %v596_v1  ;;  %v1142_v6 = vadd.f32 %v1141_v4, %v1140_v63  ;;  %v1223_v7 = vpop.f32.mrf.mxu1 }
  0xff   :  { %v1143_v8 = vpop.f32.mrf.mxu0  ;;  %v1224_v16 = vadd.f32 %v1223_v7, %v1222_v3 }
 0x100   :  { %v789_v10 = vmax.f32 %v717_v5, 0.0  ;;  %v601_v11 = vadd.f32 %v1142_v6, %v1619_v14  ;;  %v1225_v12 = vpop.f32.mrf.mxu1 }
 0x101   :  { %v1144_v13 = vpop.f32.mrf.mxu0 }
 0x102   :  { %v1054_v15 = vpack.c.bf16 %v789_v10, %v788_v9  ;;  %v1145_v17 = vadd.f32 %v1144_v13, %v1143_v8  ;;  %v1226_v18 = vpop.f32.mrf.mxu1  ;;  %v722_v20 = vadd.f32 %v1224_v16, %v601_v11 }
 0x103   :  { %v1146_v19 = vpop.f32.mrf.mxu0  ;;  %v1227_v22 = vadd.f32 %v1226_v18, %v1225_v12 }
 0x104   :  { %1097 = vst [vmem:[%s1679_s3 + $0x10] sm:$0xff] %v1054_v15   ;;  %v604_v21 = vadd.f32 %v1145_v17, %v1619_v14  ;;  %v1228_v23 = vpop.f32.mrf.mxu1  ;;  %v790_v29 = vmax.f32 %v722_v20, 0.0 }
 0x105   :  { %v1147_v24 = vpop.f32.mrf.mxu0 }
 0x106   :  { %v725_v25 = vadd.f32 %v1227_v22, %v604_v21  ;;  %v1148_v26 = vadd.f32 %v1147_v24, %v1146_v19  ;;  %v1229_v27 = vpop.f32.mrf.mxu1 }
 0x107   :  { %v1149_v28 = vpop.f32.mrf.mxu0  ;;  %v1230_v35 = vadd.f32 %v1229_v27, %v1228_v23 }
 0x108   :  { %v791_v30 = vmax.f32 %v725_v25, 0.0  ;;  %v609_v31 = vadd.f32 %v1148_v26, %v1619_v14  ;;  %v1231_v32 = vpop.f32.mrf.mxu1 }
 0x109   :  { %v1150_v33 = vpop.f32.mrf.mxu0 }
 0x10a   :  { %v1059_v34 = vpack.c.bf16 %v791_v30, %v790_v29  ;;  %v1151_v36 = vadd.f32 %v1150_v33, %v1149_v28  ;;  %v1232_v37 = vpop.f32.mrf.mxu1  ;;  %v730_v39 = vadd.f32 %v1230_v35, %v609_v31 }
 0x10b   :  { %v1152_v38 = vpop.f32.mrf.mxu0  ;;  %v1233_v41 = vadd.f32 %v1232_v37, %v1231_v32 }
 0x10c   :  { %1098 = vst [vmem:[%s1679_s3 + $0x18] sm:$0xff] %v1059_v34   ;;  %v612_v40 = vadd.f32 %v1151_v36, %v1619_v14  ;;  %v1234_v42 = vpop.f32.mrf.mxu1  ;;  %v792_v48 = vmax.f32 %v730_v39, 0.0 }
 0x10d   :  { %v1153_v43 = vpop.f32.mrf.mxu0 }
 0x10e   :  { %v733_v44 = vadd.f32 %v1233_v41, %v612_v40  ;;  %v1154_v45 = vadd.f32 %v1153_v43, %v1152_v38  ;;  %v1235_v46 = vpop.f32.mrf.mxu1 }
 0x10f   :  { %v1155_v47 = vpop.f32.mrf.mxu0  ;;  %v1236_v54 = vadd.f32 %v1235_v46, %v1234_v42 }
 0x110   :  { %v793_v49 = vmax.f32 %v733_v44, 0.0  ;;  %v617_v50 = vadd.f32 %v1154_v45, %v1619_v14  ;;  %v1237_v51 = vpop.f32.mrf.mxu1 }
 0x111   :  { %v1156_v52 = vpop.f32.mrf.mxu0 }
 0x112   :  { %v1064_v53 = vpack.c.bf16 %v793_v49, %v792_v48  ;;  %v1157_v55 = vadd.f32 %v1156_v52, %v1155_v47  ;;  %v1238_v56 = vpop.f32.mrf.mxu1  ;;  %v738_v58 = vadd.f32 %v1236_v54, %v617_v50 }
 0x113   :  { %v1158_v57 = vpop.f32.mrf.mxu0  ;;  %v1239_v60 = vadd.f32 %v1238_v56, %v1237_v51 }
 0x114   :  { %1099 = vst [vmem:[%s1679_s3 + $0x20] sm:$0xff] %v1064_v53   ;;  %v620_v59 = vadd.f32 %v1157_v55, %v1619_v14  ;;  %v1240_v61 = vpop.f32.mrf.mxu1  ;;  %v794_v3 = vmax.f32 %v738_v58, 0.0 }
 0x115   :  { %v1159_v62 = vpop.f32.mrf.mxu0 }
 0x116   :  { %v741_v63 = vadd.f32 %v1239_v60, %v620_v59  ;;  %v1160_v0 = vadd.f32 %v1159_v62, %v1158_v57  ;;  %v1241_v1 = vpop.f32.mrf.mxu1 }
 0x117   :  { %v1161_v2 = vpop.f32.mrf.mxu0  ;;  %v1242_v9 = vadd.f32 %v1241_v1, %v1240_v61 }
 0x118   :  { %v795_v4 = vmax.f32 %v741_v63, 0.0  ;;  %v625_v5 = vadd.f32 %v1160_v0, %v1619_v14  ;;  %v1243_v6 = vpop.f32.mrf.mxu1 }
 0x119   :  { %v1162_v7 = vpop.f32.mrf.mxu0 }
 0x11a   :  { %v1069_v8 = vpack.c.bf16 %v795_v4, %v794_v3  ;;  %v1163_v10 = vadd.f32 %v1162_v7, %v1161_v2  ;;  %v1244_v11 = vpop.f32.mrf.mxu1  ;;  %v746_v13 = vadd.f32 %v1242_v9, %v625_v5 }
 0x11b   :  { %v1164_v12 = vpop.f32.mrf.mxu0  ;;  %v1245_v16 = vadd.f32 %v1244_v11, %v1243_v6 }
 0x11c   :  { %1100 = vst [vmem:[%s1679_s3 + $0x28] sm:$0xff] %v1069_v8   ;;  %v628_v15 = vadd.f32 %v1163_v10, %v1619_v14  ;;  %v1246_v17 = vpop.f32.mrf.mxu1  ;;  %v796_v23 = vmax.f32 %v746_v13, 0.0 }
 0x11d   :  { %v1165_v18 = vpop.f32.mrf.mxu0 }
 0x11e   :  { %v749_v19 = vadd.f32 %v1245_v16, %v628_v15  ;;  %v1166_v20 = vadd.f32 %v1165_v18, %v1164_v12  ;;  %v1247_v21 = vpop.f32.mrf.mxu1 }
 0x11f   :  { %v1167_v22 = vpop.f32.mrf.mxu0  ;;  %v1248_v29 = vadd.f32 %v1247_v21, %v1246_v17 }
 0x120   :  { %v797_v24 = vmax.f32 %v749_v19, 0.0  ;;  %v633_v25 = vadd.f32 %v1166_v20, %v1619_v14  ;;  %v1249_v26 = vpop.f32.mrf.mxu1 }
 0x121   :  { %v1168_v27 = vpop.f32.mrf.mxu0 }
 0x122   :  { %v1074_v28 = vpack.c.bf16 %v797_v24, %v796_v23  ;;  %v1169_v30 = vadd.f32 %v1168_v27, %v1167_v22  ;;  %v1250_v31 = vpop.f32.mrf.mxu1  ;;  %v754_v33 = vadd.f32 %v1248_v29, %v633_v25 }
 0x123   :  { %v1170_v32 = vpop.f32.mrf.mxu0  ;;  %v1251_v35 = vadd.f32 %v1250_v31, %v1249_v26 }
 0x124   :  { %1101 = vst [vmem:[%s1679_s3 + $0x30] sm:$0xff] %v1074_v28   ;;  %v636_v34 = vadd.f32 %v1169_v30, %v1619_v14  ;;  %v1252_v36 = vpop.f32.mrf.mxu1  ;;  %v798_v42 = vmax.f32 %v754_v33, 0.0 }
 0x125   :  { %v1171_v37 = vpop.f32.mrf.mxu0 }
 0x126   :  { %v757_v38 = vadd.f32 %v1251_v35, %v636_v34  ;;  %v1172_v39 = vadd.f32 %v1171_v37, %v1170_v32  ;;  %v1253_v40 = vpop.f32.mrf.mxu1 }
 0x127   :  { %v1173_v41 = vpop.f32.mrf.mxu0  ;;  %v1254_v48 = vadd.f32 %v1253_v40, %v1252_v36 }
 0x128   :  { %v799_v43 = vmax.f32 %v757_v38, 0.0  ;;  %v641_v44 = vadd.f32 %v1172_v39, %v1619_v14  ;;  %v1255_v45 = vpop.f32.mrf.mxu1 }
 0x129   :  { %v1174_v46 = vpop.f32.mrf.mxu0 }
 0x12a   :  { %v1079_v47 = vpack.c.bf16 %v799_v43, %v798_v42  ;;  %v1175_v49 = vadd.f32 %v1174_v46, %v1173_v41  ;;  %v1256_v50 = vpop.f32.mrf.mxu1  ;;  %v762_v52 = vadd.f32 %v1254_v48, %v641_v44 }
 0x12b   :  { %v1176_v51 = vpop.f32.mrf.mxu0  ;;  %v1257_v54 = vadd.f32 %v1256_v50, %v1255_v45 }
 0x12c   :  { %1102 = vst [vmem:[%s1679_s3 + $0x38] sm:$0xff] %v1079_v47   ;;  %v644_v53 = vadd.f32 %v1175_v49, %v1619_v14  ;;  %v1258_v55 = vpop.f32.mrf.mxu1  ;;  %v800_v61 = vmax.f32 %v762_v52, 0.0 }
 0x12d   :  { %v1177_v56 = vpop.f32.mrf.mxu0 }
 0x12e   :  { %v765_v57 = vadd.f32 %v1257_v54, %v644_v53  ;;  %v1178_v58 = vadd.f32 %v1177_v56, %v1176_v51  ;;  %v1259_v59 = vpop.f32.mrf.mxu1 }
 0x12f   :  { %v1179_v60 = vpop.f32.mrf.mxu0  ;;  %v1260_v3 = vadd.f32 %v1259_v59, %v1258_v55 }
 0x130   :  { %v801_v62 = vmax.f32 %v765_v57, 0.0  ;;  %v649_v63 = vadd.f32 %v1178_v58, %v1619_v14  ;;  %v1261_v0 = vpop.f32.mrf.mxu1 }
 0x131   :  { %v1180_v1 = vpop.f32.mrf.mxu0 }
 0x132   :  { %v1084_v2 = vpack.c.bf16 %v801_v62, %v800_v61  ;;  %v1181_v4 = vadd.f32 %v1180_v1, %v1179_v60  ;;  %v1262_v5 = vpop.f32.mrf.mxu1  ;;  %v770_v7 = vadd.f32 %v1260_v3, %v649_v63 }
 0x133   :  { %v1182_v6 = vpop.f32.mrf.mxu0  ;;  %v1263_v9 = vadd.f32 %v1262_v5, %v1261_v0 }
 0x134   :  { %1103 = vst [vmem:[%s1679_s3 + $0x40] sm:$0xff] %v1084_v2   ;;  %v652_v8 = vadd.f32 %v1181_v4, %v1619_v14  ;;  %v1264_v10 = vpop.f32.mrf.mxu1  ;;  %v802_v17 = vmax.f32 %v770_v7, 0.0 }
 0x135   :  { %v1183_v11 = vpop.f32.mrf.mxu0 }
 0x136   :  { %v773_v12 = vadd.f32 %v1263_v9, %v652_v8  ;;  %v1184_v13 = vadd.f32 %v1183_v11, %v1182_v6  ;;  %v1265_v15 = vpop.f32.mrf.mxu1 }
 0x137   :  { %v1185_v16 = vpop.f32.mrf.mxu0  ;;  %v1266_v23 = vadd.f32 %v1265_v15, %v1264_v10 }
 0x138   :  { %v803_v18 = vmax.f32 %v773_v12, 0.0  ;;  %v657_v19 = vadd.f32 %v1184_v13, %v1619_v14  ;;  %v1267_v20 = vpop.f32.mrf.mxu1 }
 0x139   :  { %v1186_v21 = vpop.f32.mrf.mxu0 }
 0x13a   :  { %v1089_v22 = vpack.c.bf16 %v803_v18, %v802_v17  ;;  %v1187_v24 = vadd.f32 %v1186_v21, %v1185_v16  ;;  %v1268_v25 = vpop.f32.mrf.mxu1  ;;  %v778_v26 = vadd.f32 %v1266_v23, %v657_v19 }
 0x13b   :  { %v1269_v28 = vadd.f32 %v1268_v25, %v1267_v20 }
 0x13c   :  { %1104 = vst [vmem:[%s1679_s3 + $0x48] sm:$0xff] %v1089_v22   ;;  %v660_v27 = vadd.f32 %v1187_v24, %v1619_v14  ;;  %v804_v30 = vmax.f32 %v778_v26, 0.0 }
 0x13e   :  { %v781_v29 = vadd.f32 %v1269_v28, %v660_v27 }
 0x140   :  { %v805_v31 = vmax.f32 %v781_v29, 0.0 }
 0x142   :  { %v1094_v32 = vpack.c.bf16 %v805_v31, %v804_v30 }
 0x144   :  { %1105 = vst [vmem:[%s1679_s3 + $0x50] sm:$0xff] %v1094_v32  }

// kernel: dqn_forward.6
= control target key start
LH: loop header
LB: loop body
LE: loop exit
PB: predicated region body
PF: predicated region fallthrough
CT: control target
= control target key end

     0   :  { %v1348_v24 = vmov 0.0   ;;  %vm1349_vm0 = vmmov 0   ;;  %s1705_s1 = inlined_call_operand.vmem [shape: bf16[640,128], index: 1, kind: input, shape index: {}]   ;;  %s1706_s0 = inlined_call_operand.vmem [shape: bf16[112,640], index: 0, kind: input, shape index: {}]   ;;  %s1707_s2 = inlined_call_operand.vmem [shape: f32[1,128], index: 2, kind: input, shape index: {}]   ;;  %s1708_s3 = inlined_call_operand.vmem [shape: bf16[112,128], index: 3, kind: output, shape index: {}]  }
   0x1   :  { %v1259_v0 = vld [vmem:[%s1705_s1 + $0x78] sm:$0xff]   ;;  %v1261_v2 = vld [vmem:[%s1705_s1 + $0x70] sm:$0xff]   ;;  %v1263_v4 = vld [vmem:[%s1705_s1 + $0x68] sm:$0xff]  }
   0x2   :  { %v1260_v1 = vld [vmem:[%s1705_s1 + $0x38] sm:$0xff]   ;;  %1066 = vmatprep.subr.bf16.mxu0 %v1259_v0  ;;  %1241 = vmatprep.subr.bf16.mxu1 %v1259_v0  ;;  %v1262_v3 = vld [vmem:[%s1705_s1 + $0x30] sm:$0xff]   ;;  %v1264_v5 = vld [vmem:[%s1705_s1 + $0x28] sm:$0xff]  }
   0x3   :  { %1067 = vmatpush3.bf16.msra.mxu0 %v1260_v1  ;;  %1249 = vmatpush3.bf16.msra.mxu1 %v1260_v1  ;;  %v1265_v6 = vld [vmem:[%s1705_s1 + $0x60] sm:$0xff]   ;;  %v1267_v8 = vld [vmem:[%s1705_s1 + $0x58] sm:$0xff]   ;;  %v1269_v10 = vld [vmem:[%s1705_s1 + $0x50] sm:$0xff]  }
   0x4   :  { %1068 = vmatprep.subr.bf16.mxu0 %v1261_v2  ;;  %1242 = vmatprep.subr.bf16.mxu1 %v1261_v2  ;;  %v1266_v7 = vld [vmem:[%s1705_s1 + $0x20] sm:$0xff]   ;;  %v1268_v9 = vld [vmem:[%s1705_s1 + $0x18] sm:$0xff]   ;;  %v1270_v13 = vld [vmem:[%s1705_s1 + $0x10] sm:$0xff]  }
   0x5   :  { %v1277_v11 = vld [vmem:[%s1706_s0 + $0x4] ss:$20 sps:$4 sm:$0xff]   ;;  %v1271_v14 = vld [vmem:[%s1705_s1 + $0x48] sm:$0xff]   ;;  %v1275_v18 = vld [vmem:[%s1706_s0] ss:$20 sps:$4 sm:$0xff]  }
   0x6   :  { %v1280_v12 = vld [vmem:[%s1706_s0 + $0xa4] ss:$20 sps:$4 sm:$0xff]   ;;  %598 = vmatprep.mubr.bf16.mxu0 %v1277_v11  ;;  %v1272_v15 = vld [vmem:[%s1705_s1 + $0x8] sm:$0xff]   ;;  %v1278_v19 = vld [vmem:[%s1706_s0 + $0xa0] ss:$20 sps:$4 sm:$0xff]  }
   0x7   :  { %1069 = vmatpush3.bf16.msra.mxu0 %v1262_v3  ;;  %1250 = vmatpush3.bf16.msra.mxu1 %v1262_v3  ;;  %v1273_v16 = vld [vmem:[%s1705_s1 + $0x40] sm:$0xff]   ;;  %v1281_v20 = vld [vmem:[%s1705_s1 + $0xf8] sm:$0xff]   ;;  %v1284_v23 = vld [vmem:[%s1705_s1 + $0xf0] sm:$0xff]  }
   0x8   :  { %1070 = vmatprep.subr.bf16.mxu0 %v1263_v4  ;;  %1243 = vmatprep.subr.bf16.mxu1 %v1263_v4  ;;  %v1274_v17 = vld [vmem:[%s1705_s1] sm:$0xff]   ;;  %v1282_v21 = vld [vmem:[%s1705_s1 + $0xb8] sm:$0xff]   ;;  %v1285_v27 = vld [vmem:[%s1705_s1 + $0xb0] sm:$0xff]  }
   0x9   :  { %630 = vmatprep.mubr.bf16.mxu1 %v1280_v12  ;;  %v1283_v22 = vld [vmem:[%s1705_s1 + $0x138] sm:$0xff]   ;;  %v1287_v25 = vld [vmem:[%s1706_s0 + $0x2c] ss:$20 sps:$4 sm:$0xff]   ;;  %v1286_v28 = vld [vmem:[%s1705_s1 + $0x130] sm:$0xff]  }
   0xa   :  { %v1291_v26 = vld [vmem:[%s1706_s0 + $0xcc] ss:$20 sps:$4 sm:$0xff]   ;;  %v1289_v29 = vld [vmem:[%s1706_s0 + $0x28] ss:$20 sps:$4 sm:$0xff]   ;;  %v1301_v39 = vld [vmem:[%s1706_s0 + $0x50] ss:$20 sps:$4 sm:$0xff]  }
   0xb   :  { %1071 = vmatpush3.bf16.msra.mxu0 %v1264_v5  ;;  %1251 = vmatpush3.bf16.msra.mxu1 %v1264_v5  ;;  %v1290_v30 = vld [vmem:[%s1705_s1 + $0xe8] sm:$0xff]   ;;  %v1296_v34 = vld [vmem:[%s1705_s1 + $0xe0] sm:$0xff]   ;;  %v1302_v40 = vld [vmem:[%s1705_s1 + $0xd8] sm:$0xff]  }
   0xc   :  { %1072 = vmatprep.subr.bf16.mxu0 %v1265_v6  ;;  %1244 = vmatprep.subr.bf16.mxu1 %v1265_v6  ;;  %v1293_v31 = vld [vmem:[%s1705_s1 + $0xa8] sm:$0xff]   ;;  %v1297_v37 = vld [vmem:[%s1705_s1 + $0xa0] sm:$0xff]   ;;  %v1305_v41 = vld [vmem:[%s1705_s1 + $0x98] sm:$0xff]  }
   0xd   :  { %v1294_v32 = vld [vmem:[%s1705_s1 + $0x128] sm:$0xff]   ;;  %v1298_v38 = vld [vmem:[%s1705_s1 + $0x120] sm:$0xff]   ;;  %v1306_v43 = vld [vmem:[%s1705_s1 + $0x118] sm:$0xff]  }
   0xe   :  { %v1295_v33 = vld [vmem:[%s1706_s0 + $0xc8] ss:$20 sps:$4 sm:$0xff]   ;;  %v1307_v42 = vld [vmem:[%s1706_s0 + $0xf0] ss:$20 sps:$4 sm:$0xff]   ;;  %v1322_v47 = vld [vmem:[%s1706_s0 + $0xc] ss:$20 sps:$4 sm:$0xff]  }
   0xf   :  { %1073 = vmatpush3.bf16.msra.mxu0 %v1266_v7  ;;  %1252 = vmatpush3.bf16.msra.mxu1 %v1266_v7  ;;  %v1299_v35 = vld [vmem:[%s1706_s0 + $0x54] ss:$20 sps:$4 sm:$0xff]   ;;  %v1311_v45 = vld [vmem:[%s1706_s0 + $0x7c] ss:$20 sps:$4 sm:$0xff]   ;;  %v1313_v50 = vld [vmem:[%s1706_s0 + $0x78] ss:$20 sps:$4 sm:$0xff]  }
  0x10   :  { %1074 = vmatprep.subr.bf16.mxu0 %v1267_v8  ;;  %1245 = vmatprep.subr.bf16.mxu1 %v1267_v8  ;;  %v1303_v36 = vld [vmem:[%s1706_s0 + $0xf4] ss:$20 sps:$4 sm:$0xff]   ;;  %v1317_v53 = vld [vmem:[%s1705_s1 + $0xc0] sm:$0xff]   ;;  %v1327_v60 = vld [vmem:[%s1706_s0 + $0x38] ss:$20 sps:$4 sm:$0xff]  }
  0x11   :  { %v1308_v44 = vld [vmem:[%s1705_s1 + $0xd0] sm:$0xff]   ;;  %v1314_v49 = vld [vmem:[%s1705_s1 + $0xc8] sm:$0xff]   ;;  %v1318_v54 = vld [vmem:[%s1705_s1 + $0x80] sm:$0xff]  }
  0x12   :  { %v1309_v46 = vld [vmem:[%s1705_s1 + $0x90] sm:$0xff]   ;;  %v1315_v51 = vld [vmem:[%s1705_s1 + $0x88] sm:$0xff]   ;;  %v1319_v55 = vld [vmem:[%s1705_s1 + $0x100] sm:$0xff]  }
  0x13   :  { %1075 = vmatpush3.bf16.msra.mxu0 %v1268_v9  ;;  %1253 = vmatpush3.bf16.msra.mxu1 %v1268_v9  ;;  %v1310_v48 = vld [vmem:[%s1705_s1 + $0x110] sm:$0xff]   ;;  %v1316_v52 = vld [vmem:[%s1705_s1 + $0x108] sm:$0xff]   ;;  %v1332_v0 = vld [vmem:[%s1706_s0 + $0x84] ss:$20 sps:$4 sm:$0xff]  }
  0x14   :  { %1076 = vmatprep.subr.bf16.mxu0 %v1269_v10  ;;  %1246 = vmatprep.subr.bf16.mxu1 %v1269_v10  ;;  %v1320_v56 = vld [vmem:[%s1706_s0 + $0x8] ss:$20 sps:$4 sm:$0xff]   ;;  %v1323_v57 = vld [vmem:[%s1706_s0 + $0x10] ss:$20 sps:$4 sm:$0xff]   ;;  %v1330_v62 = vld [vmem:[%s1706_s0 + $0x58] ss:$20 sps:$4 sm:$0xff]  }
  0x15   :  { %v1324_v58 = vld [vmem:[%s1706_s0 + $0x34] ss:$20 sps:$4 sm:$0xff]   ;;  %v1326_v59 = vld [vmem:[%s1706_s0 + $0x30] ss:$20 sps:$4 sm:$0xff]   ;;  %v1336_v3 = vld [vmem:[%s1706_s0 + $0xac] ss:$20 sps:$4 sm:$0xff]  }
  0x16   :  { %v1328_v61 = vld [vmem:[%s1706_s0 + $0x5c] ss:$20 sps:$4 sm:$0xff]   ;;  %v1331_v63 = vld [vmem:[%s1706_s0 + $0x60] ss:$20 sps:$4 sm:$0xff]   ;;  %v1343_v8 = vld [vmem:[%s1706_s0 + $0xd8] ss:$20 sps:$4 sm:$0xff]  }
  0x17   :  { %1077 = vmatpush3.bf16.msra.mxu0 %v1270_v13  ;;  %1254 = vmatpush3.bf16.msra.mxu1 %v1270_v13  ;;  %v1334_v1 = vld [vmem:[%s1706_s0 + $0x80] ss:$20 sps:$4 sm:$0xff]   ;;  %v1335_v2 = vld [vmem:[%s1706_s0 + $0x88] ss:$20 sps:$4 sm:$0xff]   ;;  %v1339_v5 = vld [vmem:[%s1706_s0 + $0xb0] ss:$20 sps:$4 sm:$0xff]  }
  0x18   :  { %1078 = vmatprep.subr.bf16.mxu0 %v1271_v14  ;;  %1247 = vmatprep.subr.bf16.mxu1 %v1271_v14  ;;  %v1338_v4 = vld [vmem:[%s1706_s0 + $0xa8] ss:$20 sps:$4 sm:$0xff]   ;;  %v1342_v7 = vld [vmem:[%s1706_s0 + $0xd0] ss:$20 sps:$4 sm:$0xff]   ;;  %v1346_v10 = vld [vmem:[%s1706_s0 + $0xf8] ss:$20 sps:$4 sm:$0xff]  }
  0x19   :  { %v1340_v6 = vld [vmem:[%s1706_s0 + $0xd4] ss:$20 sps:$4 sm:$0xff]   ;;  %v1344_v9 = vld [vmem:[%s1706_s0 + $0xfc] ss:$20 sps:$4 sm:$0xff]  }
  0x1a   :  { %v1347_v11 = vld [vmem:[%s1706_s0 + $0x100] ss:$20 sps:$4 sm:$0xff]  }
  0x1b   :  { %1079 = vmatpush3.bf16.msra.mxu0 %v1272_v15  ;;  %1255 = vmatpush3.bf16.msra.mxu1 %v1272_v15 }
  0x1c   :  { %1080 = vmatprep.subr.bf16.mxu0 %v1273_v16  ;;  %1248 = vmatprep.subr.bf16.mxu1 %v1273_v16 }
  0x1f   :  { %1081 = vmatpush3.bf16.msra.mxu0 %v1274_v17  ;;  %1256 = vmatpush3.bf16.msra.mxu1 %v1274_v17 }
  0x20   :  { %1124 = vmatprep.subr.bf16.mxu1 %v1281_v20  ;;  %1197 = vmatprep.subr.bf16.mxu0 %v1348_v24 }
  0x22   :  { %599 = vmatmul.mubr.bf16.vlgmr.msra.gmra.mxu0 %v1275_v18  ;;  %631 = vmatmul.mubr.bf16.vlgmr.msra.gmra.mxu1 %v1278_v19 }
  0x23   :  { %1125 = vmatpush3.bf16.msra.mxu1 %v1282_v21  ;;  %1198 = vmatpush3.bf16.msra.mxu0 %v1283_v22 }
  0x24   :  { %1126 = vmatprep.subr.bf16.mxu1 %v1284_v23  ;;  %1199 = vmatprep.subr.bf16.mxu0 %v1348_v24 }
  0x25   :  { %606 = vmatprep.mubr.bf16.mxu0 %v1287_v25  ;;  %638 = vmatprep.mubr.bf16.mxu1 %v1291_v26 }
  0x27   :  { %1127 = vmatpush3.bf16.msra.mxu1 %v1285_v27  ;;  %1200 = vmatpush3.bf16.msra.mxu0 %v1286_v28 }
  0x28   :  { %1128 = vmatprep.subr.bf16.mxu1 %v1290_v30  ;;  %1201 = vmatprep.subr.bf16.mxu0 %v1348_v24 }
  0x2a   :  { %607 = vmatmul.mubr.bf16.gmra.mxu0 %v1289_v29  ;;  %639 = vmatmul.mubr.bf16.gmra.mxu1 %v1295_v33 }
  0x2b   :  { %1129 = vmatpush3.bf16.msra.mxu1 %v1293_v31  ;;  %1202 = vmatpush3.bf16.msra.mxu0 %v1294_v32 }
  0x2c   :  { %1130 = vmatprep.subr.bf16.mxu1 %v1296_v34  ;;  %1203 = vmatprep.subr.bf16.mxu0 %v1348_v24 }
  0x2d   :  { %614 = vmatprep.mubr.bf16.mxu0 %v1299_v35  ;;  %646 = vmatprep.mubr.bf16.mxu1 %v1303_v36 }
  0x2f   :  { %1131 = vmatpush3.bf16.msra.mxu1 %v1297_v37  ;;  %1204 = vmatpush3.bf16.msra.mxu0 %v1298_v38 }
  0x30   :  { %1132 = vmatprep.subr.bf16.mxu1 %v1302_v40  ;;  %1205 = vmatprep.subr.bf16.mxu0 %v1348_v24 }
  0x32   :  { %615 = vmatmul.mubr.bf16.gmra.mxu0 %v1301_v39  ;;  %647 = vmatmul.mubr.bf16.gmra.mxu1 %v1307_v42 }
  0x33   :  { %1133 = vmatpush3.bf16.msra.mxu1 %v1305_v41  ;;  %1206 = vmatpush3.bf16.msra.mxu0 %v1306_v43  ;;  %v1652_v43 = vld [vmem:[%s1707_s2] ss:$0 sm:$0xff] }
  0x34   :  { %1134 = vmatprep.subr.bf16.mxu1 %v1308_v44  ;;  %1207 = vmatprep.subr.bf16.mxu0 %v1348_v24 }
  0x35   :  { %622 = vmatprep.mubr.bf16.mxu0 %v1311_v45  ;;  %687 = vmatprep.mubr.bf16.mxu1 %v1322_v47 }
  0x37   :  { %1135 = vmatpush3.bf16.msra.mxu1 %v1309_v46  ;;  %1208 = vmatpush3.bf16.msra.mxu0 %v1310_v48 }
  0x38   :  { %1136 = vmatprep.subr.bf16.mxu1 %v1314_v49  ;;  %1209 = vmatprep.subr.bf16.mxu0 %v1348_v24 }
  0x3a   :  { %623 = vmatmul.mubr.bf16.gmra.mxu0 %v1313_v50 }
  0x3b   :  { %1137 = vmatpush3.bf16.msra.mxu1 %v1315_v51  ;;  %1210 = vmatpush3.bf16.msra.mxu0 %v1316_v52 }
  0x3c   :  { %1138 = vmatprep.subr.bf16.mxu1 %v1317_v53  ;;  %1211 = vmatprep.subr.bf16.mxu0 %v1348_v24 }
  0x3d   :  { %1213 = vmatprep.mubr.msk.bf16.mxu0 %vm1349_vm0, %v1348_v24 }
  0x3f   :  { %1139 = vmatpush3.bf16.msra.mxu1 %v1318_v54  ;;  %1212 = vmatpush3.bf16.msra.mxu0 %v1319_v55 }
  0x42   :  { %688 = vmatmul.mubr.bf16.vlgmr.msra.gmra.mxu1 %v1320_v56  ;;  %1214 = vmatmul.mubr.bf16.vlgmr.msra.gmra.mxu0 %v1323_v57 }
  0x43   :  { %695 = vmatprep.mubr.bf16.mxu1 %v1324_v58  ;;  %1217 = vmatprep.mubr.msk.bf16.mxu0 %vm1349_vm0, %v1348_v24 }
  0x4a   :  { %696 = vmatmul.mubr.bf16.gmra.mxu1 %v1326_v59  ;;  %1218 = vmatmul.mubr.bf16.gmra.mxu0 %v1327_v60 }
  0x4b   :  { %703 = vmatprep.mubr.bf16.mxu1 %v1328_v61  ;;  %1221 = vmatprep.mubr.msk.bf16.mxu0 %vm1349_vm0, %v1348_v24 }
  0x52   :  { %704 = vmatmul.mubr.bf16.gmra.mxu1 %v1330_v62  ;;  %1222 = vmatmul.mubr.bf16.gmra.mxu0 %v1331_v63 }
  0x53   :  { %711 = vmatprep.mubr.bf16.mxu1 %v1332_v0  ;;  %1225 = vmatprep.mubr.msk.bf16.mxu0 %vm1349_vm0, %v1348_v24 }
  0x5a   :  { %712 = vmatmul.mubr.bf16.gmra.mxu1 %v1334_v1  ;;  %1226 = vmatmul.mubr.bf16.gmra.mxu0 %v1335_v2 }
  0x5b   :  { %719 = vmatprep.mubr.bf16.mxu1 %v1336_v3  ;;  %1229 = vmatprep.mubr.msk.bf16.mxu0 %vm1349_vm0, %v1348_v24 }
  0x62   :  { %720 = vmatmul.mubr.bf16.gmra.mxu1 %v1338_v4  ;;  %1230 = vmatmul.mubr.bf16.gmra.mxu0 %v1339_v5 }
  0x63   :  { %727 = vmatprep.mubr.bf16.mxu1 %v1340_v6  ;;  %1233 = vmatprep.mubr.msk.bf16.mxu0 %vm1349_vm0, %v1348_v24 }
  0x6a   :  { %728 = vmatmul.mubr.bf16.gmra.mxu1 %v1342_v7  ;;  %1234 = vmatmul.mubr.bf16.gmra.mxu0 %v1343_v8 }
  0x6b   :  { %735 = vmatprep.mubr.bf16.mxu1 %v1344_v9  ;;  %1237 = vmatprep.mubr.msk.bf16.mxu0 %vm1349_vm0, %v1348_v24 }
  0x72   :  { %736 = vmatmul.mubr.bf16.gmra.mxu1 %v1346_v10  ;;  %1238 = vmatmul.mubr.bf16.gmra.mxu0 %v1347_v11 }
  0xe2   :  { %v1082_v12 = vpop.f32.mrf.mxu0  ;;  %v1617_v13 = vpop.f32.mrf.mxu1 }
  0xe4   :  { %v1083_v14 = vpop.f32.mrf.mxu0  ;;  %v1619_v15 = vpop.f32.mrf.mxu1 }
  0xe5   :  { %v1084_v40 = vadd.f32 %v1083_v14, %v1082_v12 }
  0xe6   :  { %v1085_v16 = vpop.f32.mrf.mxu0  ;;  %v1621_v17 = vpop.f32.mrf.mxu1 }
  0xe7   :  { %v601_v46 = vadd.f32 %v1084_v40, %v1652_v43 }
  0xe8   :  { %v1086_v18 = vpop.f32.mrf.mxu0  ;;  %v1623_v19 = vpop.f32.mrf.mxu1 }
  0xe9   :  { %v1087_v47 = vadd.f32 %v1086_v18, %v1085_v16 }
  0xea   :  { %v1088_v20 = vpop.f32.mrf.mxu0  ;;  %v1625_v21 = vpop.f32.mrf.mxu1 }
  0xeb   :  { %v604_v54 = vadd.f32 %v1087_v47, %v1652_v43 }
  0xec   :  { %v1089_v22 = vpop.f32.mrf.mxu0  ;;  %v1627_v23 = vpop.f32.mrf.mxu1 }
  0xed   :  { %v1090_v55 = vadd.f32 %v1089_v22, %v1088_v20 }
  0xee   :  { %v1091_v24 = vpop.f32.mrf.mxu0  ;;  %v1629_v25 = vpop.f32.mrf.mxu1 }
  0xef   :  { %v609_v63 = vadd.f32 %v1090_v55, %v1652_v43 }
  0xf0   :  { %v1092_v26 = vpop.f32.mrf.mxu0  ;;  %v1631_v27 = vpop.f32.mrf.mxu1 }
  0xf1   :  { %v1093_v0 = vadd.f32 %v1092_v26, %v1091_v24 }
  0xf2   :  { %v1094_v28 = vpop.f32.mrf.mxu0  ;;  %v1633_v30 = vpop.f32.mrf.mxu1 }
  0xf3   :  { %v612_v10 = vadd.f32 %v1093_v0, %v1652_v43 }
  0xf4   :  { %v1095_v29 = vpop.f32.mrf.mxu0  ;;  %v1635_v32 = vpop.f32.mrf.mxu1 }
  0xf5   :  { %v1096_v11 = vadd.f32 %v1095_v29, %v1094_v28 }
  0xf6   :  { %v1097_v31 = vpop.f32.mrf.mxu0  ;;  %v1639_v35 = vpop.f32.mrf.mxu1 }
  0xf7   :  { %v617_v40 = vadd.f32 %v1096_v11, %v1652_v43 }
  0xf8   :  { %v1098_v33 = vpop.f32.mrf.mxu0  ;;  %v1645_v38 = vpop.f32.mrf.mxu1 }
  0xfa   :  { %v1637_v34 = vpop.f32.mrf.mxu0 }
  0xfc   :  { %v1641_v36 = vpop.f32.mrf.mxu0 }
  0xfe   :  { %v1643_v37 = vpop.f32.mrf.mxu0 }
 0x100   :  { %v1647_v39 = vpop.f32.mrf.mxu0 }
 0x102   :  { %v1140_v41 = vpop.f32.mrf.mxu1  ;;  %v778_v42 = vpop.f32.mrf.mxu0 }
 0x104   :  { %v1141_v44 = vpop.f32.mrf.mxu1  ;;  %v1215_v45 = vpop.f32.mrf.mxu0 }
 0x105   :  { %v1142_v48 = vadd.f32 %v1141_v44, %v1140_v41  ;;  %v1099_v41 = vadd.f32 %v1098_v33, %v1097_v31 }
 0x106   :  { %v1143_v49 = vpop.f32.mrf.mxu1  ;;  %v781_v50 = vpop.f32.mrf.mxu0 }
 0x107   :  { %v690_v51 = vadd.f32 %v1142_v48, %v601_v46 }
 0x108   :  { %v1144_v52 = vpop.f32.mrf.mxu1  ;;  %v1216_v53 = vpop.f32.mrf.mxu0 }
 0x109   :  { %v1145_v56 = vadd.f32 %v1144_v52, %v1143_v49  ;;  %v779_v59 = vadd.f32 %v778_v42, %v690_v51  ;;  %v1102_v51 = vadd.f32 %v1641_v36, %v1637_v34 }
 0x10a   :  { %v1146_v57 = vpop.f32.mrf.mxu1  ;;  %v786_v58 = vpop.f32.mrf.mxu0 }
 0x10b   :  { %v693_v60 = vadd.f32 %v1145_v56, %v604_v54  ;;  %v833_v5 = vmax.f32 %v779_v59, 0.0  ;;  %v1105_v59 = vadd.f32 %v1647_v39, %v1643_v37 }
 0x10c   :  { %v1147_v61 = vpop.f32.mrf.mxu1  ;;  %v1219_v62 = vpop.f32.mrf.mxu0 }
 0x10d   :  { %v782_v1 = vadd.f32 %v781_v50, %v693_v60  ;;  %v1148_v2 = vadd.f32 %v1147_v61, %v1146_v57  ;;  %v620_v50 = vadd.f32 %v1099_v41, %v1652_v43  ;;  %v1114_v41 = vadd.f32 %v1627_v23, %v1625_v21 }
 0x10e   :  { %v1149_v3 = vpop.f32.mrf.mxu1  ;;  %v789_v4 = vpop.f32.mrf.mxu0 }
 0x10f   :  { %v834_v6 = vmax.f32 %v782_v1, 0.0  ;;  %v698_v7 = vadd.f32 %v1148_v2, %v609_v63 }
 0x110   :  { %v1150_v8 = vpop.f32.mrf.mxu1  ;;  %v1220_v9 = vpop.f32.mrf.mxu0 }
 0x111   :  { %v1028_v12 = vpack.c.bf16 %v834_v6, %v833_v5  ;;  %v1151_v14 = vadd.f32 %v1150_v8, %v1149_v3  ;;  %v787_v20 = vadd.f32 %v786_v58, %v698_v7  ;;  %v625_v58 = vadd.f32 %v1102_v51, %v1652_v43 }
 0x112   :  { %v1152_v16 = vpop.f32.mrf.mxu1  ;;  %v794_v18 = vpop.f32.mrf.mxu0  ;;  %v1108_v3 = vadd.f32 %v1619_v15, %v1617_v13 }
 0x113   :  { %1029 = vst [vmem:[%s1708_s3] sm:$0xff] %v1028_v12   ;;  %v701_v22 = vadd.f32 %v1151_v14, %v612_v10  ;;  %v835_v28 = vmax.f32 %v787_v20, 0.0  ;;  %v1111_v12 = vadd.f32 %v1623_v19, %v1621_v17 }
 0x114   :  { %v1153_v24 = vpop.f32.mrf.mxu1  ;;  %v1223_v26 = vpop.f32.mrf.mxu0  ;;  %v633_v11 = vadd.f32 %v1108_v3, %v1652_v43 }
 0x115   :  { %v790_v42 = vadd.f32 %v789_v4, %v701_v22  ;;  %v1154_v44 = vadd.f32 %v1153_v24, %v1152_v16  ;;  %v628_v4 = vadd.f32 %v1105_v59, %v1652_v43 }
 0x116   :  { %v1155_v45 = vpop.f32.mrf.mxu1  ;;  %v797_v46 = vpop.f32.mrf.mxu0 }
 0x117   :  { %v836_v29 = vmax.f32 %v790_v42, 0.0  ;;  %v706_v47 = vadd.f32 %v1154_v44, %v617_v40  ;;  %v636_v40 = vadd.f32 %v1111_v12, %v1652_v43 }
 0x118   :  { %v1156_v48 = vpop.f32.mrf.mxu1  ;;  %v1224_v49 = vpop.f32.mrf.mxu0 }
 0x119   :  { %v1033_v52 = vpack.c.bf16 %v836_v29, %v835_v28  ;;  %v1157_v53 = vadd.f32 %v1156_v48, %v1155_v45  ;;  %v795_v31 = vadd.f32 %v794_v18, %v706_v47  ;;  %v641_v47 = vadd.f32 %v1114_v41, %v1652_v43 }
 0x11a   :  { %v1158_v54 = vpop.f32.mrf.mxu1  ;;  %v802_v55 = vpop.f32.mrf.mxu0  ;;  %v1117_v48 = vadd.f32 %v1631_v27, %v1629_v25 }
 0x11b   :  { %1060 = vst [vmem:[%s1708_s3 + $0x8] sm:$0xff] %v1033_v52   ;;  %v709_v33 = vadd.f32 %v1157_v53, %v620_v50  ;;  %v837_v62 = vmax.f32 %v795_v31, 0.0 }
 0x11c   :  { %v1159_v56 = vpop.f32.mrf.mxu1  ;;  %v1227_v57 = vpop.f32.mrf.mxu0  ;;  %v644_v31 = vadd.f32 %v1117_v48, %v1652_v43 }
 0x11d   :  { %v798_v60 = vadd.f32 %v797_v46, %v709_v33  ;;  %v1160_v61 = vadd.f32 %v1159_v56, %v1158_v54  ;;  %v1120_v33 = vadd.f32 %v1635_v32, %v1633_v30 }
 0x11e   :  { %v1161_v34 = vpop.f32.mrf.mxu1  ;;  %v805_v36 = vpop.f32.mrf.mxu0 }
 0x11f   :  { %v838_v63 = vmax.f32 %v798_v60, 0.0  ;;  %v714_v0 = vadd.f32 %v1160_v61, %v625_v58 }
 0x120   :  { %v1162_v1 = vpop.f32.mrf.mxu1  ;;  %v1228_v2 = vpop.f32.mrf.mxu0 }
 0x121   :  { %v1038_v5 = vpack.c.bf16 %v838_v63, %v837_v62  ;;  %v1163_v6 = vadd.f32 %v1162_v1, %v1161_v34  ;;  %v803_v37 = vadd.f32 %v802_v55, %v714_v0  ;;  %v649_v34 = vadd.f32 %v1120_v33, %v1652_v43 }
 0x122   :  { %v1164_v7 = vpop.f32.mrf.mxu1  ;;  %v810_v8 = vpop.f32.mrf.mxu0 }
 0x123   :  { %1061 = vst [vmem:[%s1708_s3 + $0x10] sm:$0xff] %v1038_v5   ;;  %v717_v39 = vadd.f32 %v1163_v6, %v628_v4  ;;  %v839_v18 = vmax.f32 %v803_v37, 0.0 }
 0x124   :  { %v1165_v9 = vpop.f32.mrf.mxu1  ;;  %v1231_v10 = vpop.f32.mrf.mxu0 }
 0x125   :  { %v806_v13 = vadd.f32 %v805_v36, %v717_v39  ;;  %v1166_v15 = vadd.f32 %v1165_v9, %v1164_v7  ;;  %v1123_v36 = vadd.f32 %v1645_v38, %v1639_v35 }
 0x126   :  { %v1167_v14 = vpop.f32.mrf.mxu1  ;;  %v813_v16 = vpop.f32.mrf.mxu0 }
 0x127   :  { %v840_v20 = vmax.f32 %v806_v13, 0.0  ;;  %v722_v22 = vadd.f32 %v1166_v15, %v633_v11  ;;  %v652_v5 = vadd.f32 %v1123_v36, %v1652_v43 }
 0x128   :  { %v1168_v24 = vpop.f32.mrf.mxu1  ;;  %v1232_v26 = vpop.f32.mrf.mxu0 }
 0x129   :  { %v1043_v42 = vpack.c.bf16 %v840_v20, %v839_v18  ;;  %v1169_v44 = vadd.f32 %v1168_v24, %v1167_v14  ;;  %v811_v17 = vadd.f32 %v810_v8, %v722_v22 }
 0x12a   :  { %v1170_v45 = vpop.f32.mrf.mxu1  ;;  %v818_v46 = vpop.f32.mrf.mxu0 }
 0x12b   :  { %1062 = vst [vmem:[%s1708_s3 + $0x18] sm:$0xff] %v1043_v42   ;;  %v725_v19 = vadd.f32 %v1169_v44, %v636_v40  ;;  %v841_v51 = vmax.f32 %v811_v17, 0.0 }
 0x12c   :  { %v1171_v28 = vpop.f32.mrf.mxu1  ;;  %v1235_v29 = vpop.f32.mrf.mxu0 }
 0x12d   :  { %v814_v49 = vadd.f32 %v813_v16, %v725_v19  ;;  %v1172_v50 = vadd.f32 %v1171_v28, %v1170_v45 }
 0x12e   :  { %v1173_v21 = vpop.f32.mrf.mxu1  ;;  %v821_v23 = vpop.f32.mrf.mxu0 }
 0x12f   :  { %v842_v52 = vmax.f32 %v814_v49, 0.0  ;;  %v730_v53 = vadd.f32 %v1172_v50, %v641_v47 }
 0x130   :  { %v1174_v54 = vpop.f32.mrf.mxu1  ;;  %v1236_v55 = vpop.f32.mrf.mxu0 }
 0x131   :  { %v1048_v56 = vpack.c.bf16 %v842_v52, %v841_v51  ;;  %v1175_v57 = vadd.f32 %v1174_v54, %v1173_v21  ;;  %v819_v25 = vadd.f32 %v818_v46, %v730_v53 }
 0x132   :  { %v1176_v58 = vpop.f32.mrf.mxu1  ;;  %v826_v59 = vpop.f32.mrf.mxu0 }
 0x133   :  { %1063 = vst [vmem:[%s1708_s3 + $0x20] sm:$0xff] %v1048_v56   ;;  %v733_v27 = vadd.f32 %v1175_v57, %v644_v31  ;;  %v843_v0 = vmax.f32 %v819_v25, 0.0 }
 0x134   :  { %v1177_v60 = vpop.f32.mrf.mxu1  ;;  %v1239_v61 = vpop.f32.mrf.mxu0 }
 0x135   :  { %v822_v62 = vadd.f32 %v821_v23, %v733_v27  ;;  %v1178_v63 = vadd.f32 %v1177_v60, %v1176_v58 }
 0x136   :  { %v1179_v30 = vpop.f32.mrf.mxu1  ;;  %v829_v32 = vpop.f32.mrf.mxu0 }
 0x137   :  { %v844_v1 = vmax.f32 %v822_v62, 0.0  ;;  %v738_v2 = vadd.f32 %v1178_v63, %v649_v34 }
 0x138   :  { %v1180_v3 = vpop.f32.mrf.mxu1  ;;  %v1240_v4 = vpop.f32.mrf.mxu0 }
 0x139   :  { %v1053_v6 = vpack.c.bf16 %v844_v1, %v843_v0  ;;  %v1181_v7 = vadd.f32 %v1180_v3, %v1179_v30  ;;  %v827_v8 = vadd.f32 %v826_v59, %v738_v2 }
 0x13b   :  { %1064 = vst [vmem:[%s1708_s3 + $0x28] sm:$0xff] %v1053_v6   ;;  %v741_v37 = vadd.f32 %v1181_v7, %v652_v5  ;;  %v845_v38 = vmax.f32 %v827_v8, 0.0 }
 0x13d   :  { %v830_v35 = vadd.f32 %v829_v32, %v741_v37 }
 0x13f   :  { %v846_v39 = vmax.f32 %v830_v35, 0.0 }
 0x141   :  { %v1058_v9 = vpack.c.bf16 %v846_v39, %v845_v38 }
 0x143   :  { %1065 = vst [vmem:[%s1708_s3 + $0x30] sm:$0xff] %v1058_v9  }

// kernel: dqn_forward.7
= control target key start
LH: loop header
LB: loop body
LE: loop exit
PB: predicated region body
PF: predicated region fallthrough
CT: control target
= control target key end

     0   :  { %s11511_s1 = inlined_call_operand.vmem [shape: bf16[3200,512], index: 1, kind: input, shape index: {}]   ;;  %s11512_s0 = inlined_call_operand.vmem [shape: bf16[16,3200], index: 0, kind: input, shape index: {}]   ;;  %s11513_s3 = inlined_call_operand.vmem [shape: bf16[512,128], index: 3, kind: input, shape index: {}]   ;;  %s11514_s2 = inlined_call_operand.vmem [shape: f32[1,512], index: 2, kind: input, shape index: {}]   ;;  %s11515_s4 = inlined_call_operand.vmem [shape: f32[1,128], index: 4, kind: input, shape index: {}]   ;;  %s11516_s5 = inlined_call_operand.vmem [shape: f32[16,128], index: 5, kind: output, shape index: {}]  }
   0x1   :  { %v7379_v0 = vld [vmem:[%s11511_s1 + $0xe4] ss:$16 sps:$4 sm:$0xff]   ;;  %v7383_v2 = vld [vmem:[%s11511_s1 + $0xe0] ss:$16 sps:$4 sm:$0xff]  }
   0x2   :  { %v7381_v1 = vld [vmem:[%s11511_s1 + $0x2e4] ss:$16 sps:$4 sm:$0xff]   ;;  %4995 = vmatprep.subr.bf16.mxu0 %v7379_v0  ;;  %v7384_v3 = vld [vmem:[%s11511_s1 + $0x2e0] ss:$16 sps:$4 sm:$0xff]  }
   0x3   :  { %5038 = vmatprep.subr.bf16.mxu1 %v7381_v1  ;;  %v7385_v4 = vld [vmem:[%s11511_s1 + $0xc4] ss:$16 sps:$4 sm:$0xff]   ;;  %4996 = vmatpush1.bf16.msra.mxu0 %v7383_v2  ;;  %v7389_v6 = vld [vmem:[%s11511_s1 + $0xc0] ss:$16 sps:$4 sm:$0xff]  }
   0x4   :  { %5039 = vmatpush1.bf16.msra.mxu1 %v7384_v3  ;;  %v7387_v5 = vld [vmem:[%s11511_s1 + $0x2c4] ss:$16 sps:$4 sm:$0xff]   ;;  %4997 = vmatprep.subr.bf16.mxu0 %v7385_v4  ;;  %v7390_v7 = vld [vmem:[%s11511_s1 + $0x2c0] ss:$16 sps:$4 sm:$0xff]  }
   0x5   :  { %5040 = vmatprep.subr.bf16.mxu1 %v7387_v5  ;;  %v7391_v8 = vld [vmem:[%s11511_s1 + $0xa4] ss:$16 sps:$4 sm:$0xff]   ;;  %v7395_v10 = vld [vmem:[%s11511_s1 + $0xa0] ss:$16 sps:$4 sm:$0xff]   ;;  %v7478_v5 = vld [vmem:[%s11512_s0 + $0x8] ss:$100 sps:$4 sm:$0xff]  }
   0x6   :  { %v7393_v9 = vld [vmem:[%s11511_s1 + $0x2a4] ss:$16 sps:$4 sm:$0xff]   ;;  %v7396_v11 = vld [vmem:[%s11511_s1 + $0x2a0] ss:$16 sps:$4 sm:$0xff]  }
   0x7   :  { %4998 = vmatpush1.bf16.msra.mxu0 %v7389_v6  ;;  %v7397_v12 = vld [vmem:[%s11511_s1 + $0x84] ss:$16 sps:$4 sm:$0xff]   ;;  %v7401_v14 = vld [vmem:[%s11511_s1 + $0x80] ss:$16 sps:$4 sm:$0xff]  }
   0x8   :  { %5041 = vmatpush1.bf16.msra.mxu1 %v7390_v7  ;;  %4999 = vmatprep.subr.bf16.mxu0 %v7391_v8  ;;  %v7399_v13 = vld [vmem:[%s11511_s1 + $0x284] ss:$16 sps:$4 sm:$0xff]   ;;  %v7402_v15 = vld [vmem:[%s11511_s1 + $0x280] ss:$16 sps:$4 sm:$0xff]  }
   0x9   :  { %5042 = vmatprep.subr.bf16.mxu1 %v7393_v9  ;;  %v7403_v16 = vld [vmem:[%s11511_s1 + $0x64] ss:$16 sps:$4 sm:$0xff]   ;;  %v7407_v18 = vld [vmem:[%s11511_s1 + $0x60] ss:$16 sps:$4 sm:$0xff]  }
   0xa   :  { %v7405_v17 = vld [vmem:[%s11511_s1 + $0x264] ss:$16 sps:$4 sm:$0xff]   ;;  %v7408_v19 = vld [vmem:[%s11511_s1 + $0x260] ss:$16 sps:$4 sm:$0xff]  }
   0xb   :  { %5000 = vmatpush1.bf16.msra.mxu0 %v7395_v10  ;;  %v7409_v20 = vld [vmem:[%s11511_s1 + $0x44] ss:$16 sps:$4 sm:$0xff]   ;;  %v7413_v22 = vld [vmem:[%s11511_s1 + $0x40] ss:$16 sps:$4 sm:$0xff]  }
   0xc   :  { %5043 = vmatpush1.bf16.msra.mxu1 %v7396_v11  ;;  %5001 = vmatprep.subr.bf16.mxu0 %v7397_v12  ;;  %v7411_v21 = vld [vmem:[%s11511_s1 + $0x244] ss:$16 sps:$4 sm:$0xff]   ;;  %v7414_v23 = vld [vmem:[%s11511_s1 + $0x240] ss:$16 sps:$4 sm:$0xff]  }
   0xd   :  { %5044 = vmatprep.subr.bf16.mxu1 %v7399_v13  ;;  %v7415_v24 = vld [vmem:[%s11511_s1 + $0x24] ss:$16 sps:$4 sm:$0xff]   ;;  %v7419_v26 = vld [vmem:[%s11511_s1 + $0x20] ss:$16 sps:$4 sm:$0xff]  }
   0xe   :  { %v7417_v25 = vld [vmem:[%s11511_s1 + $0x224] ss:$16 sps:$4 sm:$0xff]   ;;  %v7420_v27 = vld [vmem:[%s11511_s1 + $0x220] ss:$16 sps:$4 sm:$0xff]  }
   0xf   :  { %5002 = vmatpush1.bf16.msra.mxu0 %v7401_v14  ;;  %v7421_v28 = vld [vmem:[%s11511_s1 + $0x4] ss:$16 sps:$4 sm:$0xff]   ;;  %v7425_v30 = vld [vmem:[%s11511_s1] ss:$16 sps:$4 sm:$0xff]  }
  0x10   :  { %5045 = vmatpush1.bf16.msra.mxu1 %v7402_v15  ;;  %5003 = vmatprep.subr.bf16.mxu0 %v7403_v16  ;;  %v7423_v29 = vld [vmem:[%s11511_s1 + $0x204] ss:$16 sps:$4 sm:$0xff]   ;;  %v7426_v31 = vld [vmem:[%s11511_s1 + $0x200] ss:$16 sps:$4 sm:$0xff]  }
  0x11   :  { %5046 = vmatprep.subr.bf16.mxu1 %v7405_v17  ;;  %v7427_v32 = vld [vmem:[%s11511_s1 + $0x1e4] ss:$16 sps:$4 sm:$0xff]   ;;  %v7431_v34 = vld [vmem:[%s11511_s1 + $0x1e0] ss:$16 sps:$4 sm:$0xff]  }
  0x12   :  { %v7429_v33 = vld [vmem:[%s11511_s1 + $0x3e4] ss:$16 sps:$4 sm:$0xff]   ;;  %v7432_v35 = vld [vmem:[%s11511_s1 + $0x3e0] ss:$16 sps:$4 sm:$0xff]  }
  0x13   :  { %5004 = vmatpush1.bf16.msra.mxu0 %v7407_v18  ;;  %v7433_v36 = vld [vmem:[%s11511_s1 + $0x1c4] ss:$16 sps:$4 sm:$0xff]   ;;  %v7437_v38 = vld [vmem:[%s11511_s1 + $0x1c0] ss:$16 sps:$4 sm:$0xff]  }
  0x14   :  { %5047 = vmatpush1.bf16.msra.mxu1 %v7408_v19  ;;  %5005 = vmatprep.subr.bf16.mxu0 %v7409_v20  ;;  %v7435_v37 = vld [vmem:[%s11511_s1 + $0x3c4] ss:$16 sps:$4 sm:$0xff]   ;;  %v7438_v39 = vld [vmem:[%s11511_s1 + $0x3c0] ss:$16 sps:$4 sm:$0xff]  }
  0x15   :  { %5048 = vmatprep.subr.bf16.mxu1 %v7411_v21  ;;  %v7439_v40 = vld [vmem:[%s11511_s1 + $0x1a4] ss:$16 sps:$4 sm:$0xff]   ;;  %v7443_v42 = vld [vmem:[%s11511_s1 + $0x1a0] ss:$16 sps:$4 sm:$0xff]  }
  0x16   :  { %v7441_v41 = vld [vmem:[%s11511_s1 + $0x3a4] ss:$16 sps:$4 sm:$0xff]   ;;  %v7444_v43 = vld [vmem:[%s11511_s1 + $0x3a0] ss:$16 sps:$4 sm:$0xff]  }
  0x17   :  { %5006 = vmatpush1.bf16.msra.mxu0 %v7413_v22  ;;  %v7445_v44 = vld [vmem:[%s11511_s1 + $0x184] ss:$16 sps:$4 sm:$0xff]   ;;  %v7449_v46 = vld [vmem:[%s11511_s1 + $0x180] ss:$16 sps:$4 sm:$0xff]  }
  0x18   :  { %5049 = vmatpush1.bf16.msra.mxu1 %v7414_v23  ;;  %5007 = vmatprep.subr.bf16.mxu0 %v7415_v24  ;;  %v7447_v45 = vld [vmem:[%s11511_s1 + $0x384] ss:$16 sps:$4 sm:$0xff]   ;;  %v7450_v47 = vld [vmem:[%s11511_s1 + $0x380] ss:$16 sps:$4 sm:$0xff]  }
  0x19   :  { %5050 = vmatprep.subr.bf16.mxu1 %v7417_v25  ;;  %v7451_v48 = vld [vmem:[%s11511_s1 + $0x164] ss:$16 sps:$4 sm:$0xff]   ;;  %v7480_v51 = vld [vmem:[%s11512_s0 + $0xc] ss:$100 sps:$4 sm:$0xff]  }
  0x1a   :  { %v7477_v49 = vld [vmem:[%s11512_s0 + $0x4] ss:$100 sps:$4 sm:$0xff]   ;;  %v7455_v52 = vld [vmem:[%s11511_s1 + $0x160] ss:$16 sps:$4 sm:$0xff]   ;;  %5070 = vmatprep.mubr.bf16.mxu1 %v7480_v51 }
  0x1b   :  { %5008 = vmatpush1.bf16.msra.mxu0 %v7419_v26  ;;  %v7453_v50 = vld [vmem:[%s11511_s1 + $0x364] ss:$16 sps:$4 sm:$0xff]   ;;  %5027 = vmatprep.mubr.bf16.mxu0 %v7477_v49  ;;  %v7456_v53 = vld [vmem:[%s11511_s1 + $0x360] ss:$16 sps:$4 sm:$0xff]  }
  0x1c   :  { %5051 = vmatpush1.bf16.msra.mxu1 %v7420_v27  ;;  %5009 = vmatprep.subr.bf16.mxu0 %v7421_v28  ;;  %v7457_v54 = vld [vmem:[%s11511_s1 + $0x144] ss:$16 sps:$4 sm:$0xff]   ;;  %v7461_v56 = vld [vmem:[%s11511_s1 + $0x140] ss:$16 sps:$4 sm:$0xff]  }
  0x1d   :  { %5052 = vmatprep.subr.bf16.mxu1 %v7423_v29  ;;  %v7459_v55 = vld [vmem:[%s11511_s1 + $0x344] ss:$16 sps:$4 sm:$0xff]   ;;  %v7462_v57 = vld [vmem:[%s11511_s1 + $0x340] ss:$16 sps:$4 sm:$0xff]  }
  0x1e   :  { %v7463_v58 = vld [vmem:[%s11511_s1 + $0x124] ss:$16 sps:$4 sm:$0xff]   ;;  %v7467_v60 = vld [vmem:[%s11511_s1 + $0x120] ss:$16 sps:$4 sm:$0xff]  }
  0x1f   :  { %5010 = vmatpush1.bf16.msra.mxu0 %v7425_v30  ;;  %v7465_v59 = vld [vmem:[%s11511_s1 + $0x324] ss:$16 sps:$4 sm:$0xff]   ;;  %v7468_v61 = vld [vmem:[%s11511_s1 + $0x320] ss:$16 sps:$4 sm:$0xff]  }
  0x20   :  { %5053 = vmatpush1.bf16.msra.mxu1 %v7426_v31  ;;  %5011 = vmatprep.subr.bf16.mxu0 %v7427_v32  ;;  %v7469_v62 = vld [vmem:[%s11511_s1 + $0x104] ss:$16 sps:$4 sm:$0xff]   ;;  %v7473_v0 = vld [vmem:[%s11511_s1 + $0x100] ss:$16 sps:$4 sm:$0xff]  }
  0x21   :  { %5054 = vmatprep.subr.bf16.mxu1 %v7429_v33  ;;  %v7471_v63 = vld [vmem:[%s11511_s1 + $0x304] ss:$16 sps:$4 sm:$0xff]   ;;  %v7474_v1 = vld [vmem:[%s11511_s1 + $0x300] ss:$16 sps:$4 sm:$0xff]  }
  0x22   :  { %v7483_v2 = vld [vmem:[%s11511_s1 + $0x4e4] ss:$16 sps:$4 sm:$0xff]   ;;  %v7481_v6 = vld [vmem:[%s11511_s1 + $0x4e0] ss:$16 sps:$4 sm:$0xff]  }
  0x23   :  { %5012 = vmatpush2.bf16.msra.mxu0 %v7431_v34  ;;  %v7486_v3 = vld [vmem:[%s11511_s1 + $0x6e4] ss:$16 sps:$4 sm:$0xff]   ;;  %v7484_v7 = vld [vmem:[%s11511_s1 + $0x6e0] ss:$16 sps:$4 sm:$0xff]  }
  0x24   :  { %5055 = vmatpush2.bf16.msra.mxu1 %v7432_v35  ;;  %5013 = vmatprep.subr.bf16.mxu0 %v7433_v36  ;;  %v7475_v4 = vld [vmem:[%s11512_s0] ss:$100 sps:$4 sm:$0xff]   ;;  %v7579_v34 = vld [vmem:[%s11512_s0 + $0x14] ss:$100 sps:$4 sm:$0xff]  }
  0x25   :  { %5056 = vmatprep.subr.bf16.mxu1 %v7435_v37  ;;  %v7489_v8 = vld [vmem:[%s11511_s1 + $0x4c4] ss:$16 sps:$4 sm:$0xff]   ;;  %v7487_v10 = vld [vmem:[%s11511_s1 + $0x4c0] ss:$16 sps:$4 sm:$0xff]  }
  0x26   :  { %v7492_v9 = vld [vmem:[%s11511_s1 + $0x6c4] ss:$16 sps:$4 sm:$0xff]   ;;  %v7490_v11 = vld [vmem:[%s11511_s1 + $0x6c0] ss:$16 sps:$4 sm:$0xff]  }
  0x27   :  { %5014 = vmatpush2.bf16.msra.mxu0 %v7437_v38  ;;  %v7495_v12 = vld [vmem:[%s11511_s1 + $0x4a4] ss:$16 sps:$4 sm:$0xff]   ;;  %v7493_v14 = vld [vmem:[%s11511_s1 + $0x4a0] ss:$16 sps:$4 sm:$0xff]  }
  0x28   :  { %5057 = vmatpush2.bf16.msra.mxu1 %v7438_v39  ;;  %5015 = vmatprep.subr.bf16.mxu0 %v7439_v40  ;;  %v7498_v13 = vld [vmem:[%s11511_s1 + $0x6a4] ss:$16 sps:$4 sm:$0xff]   ;;  %v7496_v15 = vld [vmem:[%s11511_s1 + $0x6a0] ss:$16 sps:$4 sm:$0xff]  }
  0x29   :  { %5058 = vmatprep.subr.bf16.mxu1 %v7441_v41  ;;  %v7501_v16 = vld [vmem:[%s11511_s1 + $0x484] ss:$16 sps:$4 sm:$0xff]   ;;  %v7499_v18 = vld [vmem:[%s11511_s1 + $0x480] ss:$16 sps:$4 sm:$0xff]  }
  0x2a   :  { %v7504_v17 = vld [vmem:[%s11511_s1 + $0x684] ss:$16 sps:$4 sm:$0xff]   ;;  %v7502_v19 = vld [vmem:[%s11511_s1 + $0x680] ss:$16 sps:$4 sm:$0xff]  }
  0x2b   :  { %5016 = vmatpush2.bf16.msra.mxu0 %v7443_v42  ;;  %v7507_v20 = vld [vmem:[%s11511_s1 + $0x464] ss:$16 sps:$4 sm:$0xff]   ;;  %v7505_v22 = vld [vmem:[%s11511_s1 + $0x460] ss:$16 sps:$4 sm:$0xff]  }
  0x2c   :  { %5059 = vmatpush2.bf16.msra.mxu1 %v7444_v43  ;;  %5017 = vmatprep.subr.bf16.mxu0 %v7445_v44  ;;  %v7510_v21 = vld [vmem:[%s11511_s1 + $0x664] ss:$16 sps:$4 sm:$0xff]   ;;  %v7508_v23 = vld [vmem:[%s11511_s1 + $0x660] ss:$16 sps:$4 sm:$0xff]  }
  0x2d   :  { %5060 = vmatprep.subr.bf16.mxu1 %v7447_v45  ;;  %v7513_v24 = vld [vmem:[%s11511_s1 + $0x444] ss:$16 sps:$4 sm:$0xff]   ;;  %v7511_v26 = vld [vmem:[%s11511_s1 + $0x440] ss:$16 sps:$4 sm:$0xff]  }
  0x2e   :  { %v7516_v25 = vld [vmem:[%s11511_s1 + $0x644] ss:$16 sps:$4 sm:$0xff]   ;;  %v7514_v27 = vld [vmem:[%s11511_s1 + $0x640] ss:$16 sps:$4 sm:$0xff]  }
  0x2f   :  { %5018 = vmatpush2.bf16.msra.mxu0 %v7449_v46  ;;  %v7519_v28 = vld [vmem:[%s11511_s1 + $0x424] ss:$16 sps:$4 sm:$0xff]   ;;  %v7517_v30 = vld [vmem:[%s11511_s1 + $0x420] ss:$16 sps:$4 sm:$0xff]  }
  0x30   :  { %5061 = vmatpush2.bf16.msra.mxu1 %v7450_v47  ;;  %5019 = vmatprep.subr.bf16.mxu0 %v7451_v48  ;;  %v7522_v29 = vld [vmem:[%s11511_s1 + $0x624] ss:$16 sps:$4 sm:$0xff]   ;;  %v7520_v31 = vld [vmem:[%s11511_s1 + $0x620] ss:$16 sps:$4 sm:$0xff]  }
  0x31   :  { %5062 = vmatprep.subr.bf16.mxu1 %v7453_v50  ;;  %v7525_v32 = vld [vmem:[%s11511_s1 + $0x404] ss:$16 sps:$4 sm:$0xff]   ;;  %v7582_v35 = vld [vmem:[%s11512_s0 + $0x1c] ss:$100 sps:$4 sm:$0xff]  }
  0x32   :  { %v7528_v33 = vld [vmem:[%s11511_s1 + $0x604] ss:$16 sps:$4 sm:$0xff]   ;;  %v7523_v36 = vld [vmem:[%s11511_s1 + $0x400] ss:$16 sps:$4 sm:$0xff]  }
  0x33   :  { %5020 = vmatpush2.bf16.msra.mxu0 %v7455_v52  ;;  %v7526_v37 = vld [vmem:[%s11511_s1 + $0x600] ss:$16 sps:$4 sm:$0xff]   ;;  %v7531_v38 = vld [vmem:[%s11511_s1 + $0x5e4] ss:$16 sps:$4 sm:$0xff]  }
  0x34   :  { %5063 = vmatpush2.bf16.msra.mxu1 %v7456_v53  ;;  %5021 = vmatprep.subr.bf16.mxu0 %v7457_v54  ;;  %v7534_v39 = vld [vmem:[%s11511_s1 + $0x7e4] ss:$16 sps:$4 sm:$0xff]   ;;  %v7529_v40 = vld [vmem:[%s11511_s1 + $0x5e0] ss:$16 sps:$4 sm:$0xff]  }
  0x35   :  { %5064 = vmatprep.subr.bf16.mxu1 %v7459_v55  ;;  %v7532_v41 = vld [vmem:[%s11511_s1 + $0x7e0] ss:$16 sps:$4 sm:$0xff]   ;;  %v7537_v42 = vld [vmem:[%s11511_s1 + $0x5c4] ss:$16 sps:$4 sm:$0xff]  }
  0x36   :  { %v7540_v43 = vld [vmem:[%s11511_s1 + $0x7c4] ss:$16 sps:$4 sm:$0xff]   ;;  %v7535_v44 = vld [vmem:[%s11511_s1 + $0x5c0] ss:$16 sps:$4 sm:$0xff]  }
  0x37   :  { %5022 = vmatpush2.bf16.msra.mxu0 %v7461_v56  ;;  %v7538_v45 = vld [vmem:[%s11511_s1 + $0x7c0] ss:$16 sps:$4 sm:$0xff]   ;;  %v7543_v46 = vld [vmem:[%s11511_s1 + $0x5a4] ss:$16 sps:$4 sm:$0xff]  }
  0x38   :  { %5065 = vmatpush2.bf16.msra.mxu1 %v7462_v57  ;;  %5023 = vmatprep.subr.bf16.mxu0 %v7463_v58  ;;  %v7546_v47 = vld [vmem:[%s11511_s1 + $0x7a4] ss:$16 sps:$4 sm:$0xff]   ;;  %v7541_v48 = vld [vmem:[%s11511_s1 + $0x5a0] ss:$16 sps:$4 sm:$0xff]  }
  0x39   :  { %5066 = vmatprep.subr.bf16.mxu1 %v7465_v59  ;;  %v7544_v49 = vld [vmem:[%s11511_s1 + $0x7a0] ss:$16 sps:$4 sm:$0xff]   ;;  %v7549_v50 = vld [vmem:[%s11511_s1 + $0x584] ss:$16 sps:$4 sm:$0xff]  }
  0x3a   :  { %v7552_v51 = vld [vmem:[%s11511_s1 + $0x784] ss:$16 sps:$4 sm:$0xff]   ;;  %v7547_v52 = vld [vmem:[%s11511_s1 + $0x580] ss:$16 sps:$4 sm:$0xff]  }
  0x3b   :  { %5024 = vmatpush2.bf16.msra.mxu0 %v7467_v60  ;;  %v7550_v53 = vld [vmem:[%s11511_s1 + $0x780] ss:$16 sps:$4 sm:$0xff]   ;;  %v7555_v54 = vld [vmem:[%s11511_s1 + $0x564] ss:$16 sps:$4 sm:$0xff]  }
  0x3c   :  { %5067 = vmatpush2.bf16.msra.mxu1 %v7468_v61  ;;  %5025 = vmatprep.subr.bf16.mxu0 %v7469_v62  ;;  %v7558_v55 = vld [vmem:[%s11511_s1 + $0x764] ss:$16 sps:$4 sm:$0xff]   ;;  %v7553_v56 = vld [vmem:[%s11511_s1 + $0x560] ss:$16 sps:$4 sm:$0xff]  }
  0x3d   :  { %5068 = vmatprep.subr.bf16.mxu1 %v7471_v63  ;;  %v7556_v57 = vld [vmem:[%s11511_s1 + $0x760] ss:$16 sps:$4 sm:$0xff]   ;;  %v7561_v58 = vld [vmem:[%s11511_s1 + $0x544] ss:$16 sps:$4 sm:$0xff]  }
  0x3e   :  { %v7564_v59 = vld [vmem:[%s11511_s1 + $0x744] ss:$16 sps:$4 sm:$0xff]   ;;  %v7559_v60 = vld [vmem:[%s11511_s1 + $0x540] ss:$16 sps:$4 sm:$0xff]  }
  0x3f   :  { %5026 = vmatpush2.bf16.msra.mxu0 %v7473_v0  ;;  %v7562_v61 = vld [vmem:[%s11511_s1 + $0x740] ss:$16 sps:$4 sm:$0xff]   ;;  %v7567_v62 = vld [vmem:[%s11511_s1 + $0x524] ss:$16 sps:$4 sm:$0xff]  }
  0x40   :  { %5069 = vmatpush2.bf16.msra.mxu1 %v7474_v1  ;;  %5081 = vmatprep.subr.bf16.mxu0 %v7483_v2  ;;  %v7570_v63 = vld [vmem:[%s11511_s1 + $0x724] ss:$16 sps:$4 sm:$0xff]   ;;  %v7565_v0 = vld [vmem:[%s11511_s1 + $0x520] ss:$16 sps:$4 sm:$0xff]  }
  0x41   :  { %5124 = vmatprep.subr.bf16.mxu1 %v7486_v3  ;;  %v7568_v1 = vld [vmem:[%s11511_s1 + $0x720] ss:$16 sps:$4 sm:$0xff]   ;;  %v7573_v2 = vld [vmem:[%s11511_s1 + $0x504] ss:$16 sps:$4 sm:$0xff]  }
  0x42   :  { %5028 = vmatmul.mubr.bf16.vlgmr.msra.gmra.mxu0 %v7475_v4  ;;  %v7576_v3 = vld [vmem:[%s11511_s1 + $0x704] ss:$16 sps:$4 sm:$0xff]   ;;  %v7571_v4 = vld [vmem:[%s11511_s1 + $0x500] ss:$16 sps:$4 sm:$0xff]  }
  0x43   :  { %5071 = vmatmul.mubr.bf16.vlgmr.msra.gmra.mxu1 %v7478_v5  ;;  %5082 = vmatpush1.bf16.msra.mxu0 %v7481_v6  ;;  %v7574_v5 = vld [vmem:[%s11511_s1 + $0x700] ss:$16 sps:$4 sm:$0xff]   ;;  %v7585_v6 = vld [vmem:[%s11511_s1 + $0x8e4] ss:$16 sps:$4 sm:$0xff]  }
  0x44   :  { %5125 = vmatpush1.bf16.msra.mxu1 %v7484_v7  ;;  %5083 = vmatprep.subr.bf16.mxu0 %v7489_v8  ;;  %v7588_v7 = vld [vmem:[%s11511_s1 + $0xae4] ss:$16 sps:$4 sm:$0xff]  }
  0x45   :  { %5126 = vmatprep.subr.bf16.mxu1 %v7492_v9  ;;  %5113 = vmatprep.mubr.bf16.mxu0 %v7579_v34  ;;  %v7577_v8 = vld [vmem:[%s11512_s0 + $0x10] ss:$100 sps:$4 sm:$0xff]   ;;  %v7580_v9 = vld [vmem:[%s11512_s0 + $0x18] ss:$100 sps:$4 sm:$0xff]  }
  0x46   :  { %5156 = vmatprep.mubr.bf16.mxu1 %v7582_v35  ;;  %v7621_v34 = vld [vmem:[%s11511_s1 + $0x824] ss:$16 sps:$4 sm:$0xff]  }
  0x47   :  { %5084 = vmatpush1.bf16.msra.mxu0 %v7487_v10  ;;  %v7583_v10 = vld [vmem:[%s11511_s1 + $0x8e0] ss:$16 sps:$4 sm:$0xff]   ;;  %v7624_v35 = vld [vmem:[%s11511_s1 + $0xa24] ss:$16 sps:$4 sm:$0xff]  }
  0x48   :  { %5127 = vmatpush1.bf16.msra.mxu1 %v7490_v11  ;;  %5085 = vmatprep.subr.bf16.mxu0 %v7495_v12  ;;  %v7586_v11 = vld [vmem:[%s11511_s1 + $0xae0] ss:$16 sps:$4 sm:$0xff]   ;;  %v7591_v12 = vld [vmem:[%s11511_s1 + $0x8c4] ss:$16 sps:$4 sm:$0xff]  }
  0x49   :  { %5128 = vmatprep.subr.bf16.mxu1 %v7498_v13  ;;  %v7594_v13 = vld [vmem:[%s11511_s1 + $0xac4] ss:$16 sps:$4 sm:$0xff]  }
  0x4b   :  { %5086 = vmatpush1.bf16.msra.mxu0 %v7493_v14  ;;  %v7589_v14 = vld [vmem:[%s11511_s1 + $0x8c0] ss:$16 sps:$4 sm:$0xff]  }
  0x4c   :  { %5129 = vmatpush1.bf16.msra.mxu1 %v7496_v15  ;;  %5087 = vmatprep.subr.bf16.mxu0 %v7501_v16  ;;  %v7592_v15 = vld [vmem:[%s11511_s1 + $0xac0] ss:$16 sps:$4 sm:$0xff]   ;;  %v7597_v16 = vld [vmem:[%s11511_s1 + $0x8a4] ss:$16 sps:$4 sm:$0xff]  }
  0x4d   :  { %5130 = vmatprep.subr.bf16.mxu1 %v7504_v17  ;;  %v7600_v17 = vld [vmem:[%s11511_s1 + $0xaa4] ss:$16 sps:$4 sm:$0xff]  }
  0x4f   :  { %5088 = vmatpush1.bf16.msra.mxu0 %v7499_v18  ;;  %v7595_v18 = vld [vmem:[%s11511_s1 + $0x8a0] ss:$16 sps:$4 sm:$0xff]  }
  0x50   :  { %5131 = vmatpush1.bf16.msra.mxu1 %v7502_v19  ;;  %5089 = vmatprep.subr.bf16.mxu0 %v7507_v20  ;;  %v7681_v19 = vld [vmem:[%s11512_s0 + $0x24] ss:$100 sps:$4 sm:$0xff]   ;;  %v7598_v20 = vld [vmem:[%s11511_s1 + $0xaa0] ss:$16 sps:$4 sm:$0xff]  }
  0x51   :  { %5132 = vmatprep.subr.bf16.mxu1 %v7510_v21  ;;  %v7684_v21 = vld [vmem:[%s11512_s0 + $0x2c] ss:$100 sps:$4 sm:$0xff]  }
  0x53   :  { %5090 = vmatpush1.bf16.msra.mxu0 %v7505_v22  ;;  %v7603_v22 = vld [vmem:[%s11511_s1 + $0x884] ss:$16 sps:$4 sm:$0xff]  }
  0x54   :  { %5133 = vmatpush1.bf16.msra.mxu1 %v7508_v23  ;;  %5091 = vmatprep.subr.bf16.mxu0 %v7513_v24  ;;  %v7606_v23 = vld [vmem:[%s11511_s1 + $0xa84] ss:$16 sps:$4 sm:$0xff]   ;;  %v7601_v24 = vld [vmem:[%s11511_s1 + $0x880] ss:$16 sps:$4 sm:$0xff]  }
  0x55   :  { %5134 = vmatprep.subr.bf16.mxu1 %v7516_v25  ;;  %v7604_v25 = vld [vmem:[%s11511_s1 + $0xa80] ss:$16 sps:$4 sm:$0xff]  }
  0x57   :  { %5092 = vmatpush1.bf16.msra.mxu0 %v7511_v26  ;;  %v7609_v26 = vld [vmem:[%s11511_s1 + $0x864] ss:$16 sps:$4 sm:$0xff]  }
  0x58   :  { %5135 = vmatpush1.bf16.msra.mxu1 %v7514_v27  ;;  %5093 = vmatprep.subr.bf16.mxu0 %v7519_v28  ;;  %v7612_v27 = vld [vmem:[%s11511_s1 + $0xa64] ss:$16 sps:$4 sm:$0xff]   ;;  %v7607_v28 = vld [vmem:[%s11511_s1 + $0x860] ss:$16 sps:$4 sm:$0xff]  }
  0x59   :  { %5136 = vmatprep.subr.bf16.mxu1 %v7522_v29  ;;  %v7610_v29 = vld [vmem:[%s11511_s1 + $0xa60] ss:$16 sps:$4 sm:$0xff]  }
  0x5b   :  { %5094 = vmatpush1.bf16.msra.mxu0 %v7517_v30  ;;  %v7615_v30 = vld [vmem:[%s11511_s1 + $0x844] ss:$16 sps:$4 sm:$0xff]  }
  0x5c   :  { %5137 = vmatpush1.bf16.msra.mxu1 %v7520_v31  ;;  %5095 = vmatprep.subr.bf16.mxu0 %v7525_v32  ;;  %v7618_v31 = vld [vmem:[%s11511_s1 + $0xa44] ss:$16 sps:$4 sm:$0xff]   ;;  %v7613_v32 = vld [vmem:[%s11511_s1 + $0x840] ss:$16 sps:$4 sm:$0xff]  }
  0x5d   :  { %5138 = vmatprep.subr.bf16.mxu1 %v7528_v33  ;;  %v7616_v33 = vld [vmem:[%s11511_s1 + $0xa40] ss:$16 sps:$4 sm:$0xff]  }
  0x5f   :  { %5096 = vmatpush1.bf16.msra.mxu0 %v7523_v36  ;;  %v7619_v36 = vld [vmem:[%s11511_s1 + $0x820] ss:$16 sps:$4 sm:$0xff]  }
  0x60   :  { %5139 = vmatpush1.bf16.msra.mxu1 %v7526_v37  ;;  %5097 = vmatprep.subr.bf16.mxu0 %v7531_v38  ;;  %v7622_v37 = vld [vmem:[%s11511_s1 + $0xa20] ss:$16 sps:$4 sm:$0xff]   ;;  %v7627_v38 = vld [vmem:[%s11511_s1 + $0x804] ss:$16 sps:$4 sm:$0xff]  }
  0x61   :  { %5140 = vmatprep.subr.bf16.mxu1 %v7534_v39  ;;  %v7630_v39 = vld [vmem:[%s11511_s1 + $0xa04] ss:$16 sps:$4 sm:$0xff]  }
  0x63   :  { %5098 = vmatpush2.bf16.msra.mxu0 %v7529_v40  ;;  %v7625_v40 = vld [vmem:[%s11511_s1 + $0x800] ss:$16 sps:$4 sm:$0xff]  }
  0x64   :  { %5141 = vmatpush2.bf16.msra.mxu1 %v7532_v41  ;;  %5099 = vmatprep.subr.bf16.mxu0 %v7537_v42  ;;  %v7628_v41 = vld [vmem:[%s11511_s1 + $0xa00] ss:$16 sps:$4 sm:$0xff]   ;;  %v7633_v42 = vld [vmem:[%s11511_s1 + $0x9e4] ss:$16 sps:$4 sm:$0xff]  }
  0x65   :  { %5142 = vmatprep.subr.bf16.mxu1 %v7540_v43  ;;  %v7636_v43 = vld [vmem:[%s11511_s1 + $0xbe4] ss:$16 sps:$4 sm:$0xff]  }
  0x67   :  { %5100 = vmatpush2.bf16.msra.mxu0 %v7535_v44  ;;  %v7631_v44 = vld [vmem:[%s11511_s1 + $0x9e0] ss:$16 sps:$4 sm:$0xff]  }
  0x68   :  { %5143 = vmatpush2.bf16.msra.mxu1 %v7538_v45  ;;  %5101 = vmatprep.subr.bf16.mxu0 %v7543_v46  ;;  %v7634_v45 = vld [vmem:[%s11511_s1 + $0xbe0] ss:$16 sps:$4 sm:$0xff]   ;;  %v7639_v46 = vld [vmem:[%s11511_s1 + $0x9c4] ss:$16 sps:$4 sm:$0xff]  }
  0x69   :  { %5144 = vmatprep.subr.bf16.mxu1 %v7546_v47  ;;  %v7642_v47 = vld [vmem:[%s11511_s1 + $0xbc4] ss:$16 sps:$4 sm:$0xff]  }
  0x6b   :  { %5102 = vmatpush2.bf16.msra.mxu0 %v7541_v48  ;;  %v7637_v48 = vld [vmem:[%s11511_s1 + $0x9c0] ss:$16 sps:$4 sm:$0xff]  }
  0x6c   :  { %5145 = vmatpush2.bf16.msra.mxu1 %v7544_v49  ;;  %5103 = vmatprep.subr.bf16.mxu0 %v7549_v50  ;;  %v7640_v49 = vld [vmem:[%s11511_s1 + $0xbc0] ss:$16 sps:$4 sm:$0xff]   ;;  %v7645_v50 = vld [vmem:[%s11511_s1 + $0x9a4] ss:$16 sps:$4 sm:$0xff]  }
  0x6d   :  { %5146 = vmatprep.subr.bf16.mxu1 %v7552_v51  ;;  %v7648_v51 = vld [vmem:[%s11511_s1 + $0xba4] ss:$16 sps:$4 sm:$0xff]  }
  0x6f   :  { %5104 = vmatpush2.bf16.msra.mxu0 %v7547_v52  ;;  %v7643_v52 = vld [vmem:[%s11511_s1 + $0x9a0] ss:$16 sps:$4 sm:$0xff]  }
  0x70   :  { %5147 = vmatpush2.bf16.msra.mxu1 %v7550_v53  ;;  %5105 = vmatprep.subr.bf16.mxu0 %v7555_v54  ;;  %v7646_v53 = vld [vmem:[%s11511_s1 + $0xba0] ss:$16 sps:$4 sm:$0xff]   ;;  %v7651_v54 = vld [vmem:[%s11511_s1 + $0x984] ss:$16 sps:$4 sm:$0xff]  }
  0x71   :  { %5148 = vmatprep.subr.bf16.mxu1 %v7558_v55  ;;  %v7654_v55 = vld [vmem:[%s11511_s1 + $0xb84] ss:$16 sps:$4 sm:$0xff]  }
  0x73   :  { %5106 = vmatpush2.bf16.msra.mxu0 %v7553_v56  ;;  %v7649_v56 = vld [vmem:[%s11511_s1 + $0x980] ss:$16 sps:$4 sm:$0xff]  }
  0x74   :  { %5149 = vmatpush2.bf16.msra.mxu1 %v7556_v57  ;;  %5107 = vmatprep.subr.bf16.mxu0 %v7561_v58  ;;  %v7652_v57 = vld [vmem:[%s11511_s1 + $0xb80] ss:$16 sps:$4 sm:$0xff]   ;;  %v7657_v58 = vld [vmem:[%s11511_s1 + $0x964] ss:$16 sps:$4 sm:$0xff]  }
  0x75   :  { %5150 = vmatprep.subr.bf16.mxu1 %v7564_v59  ;;  %v7660_v59 = vld [vmem:[%s11511_s1 + $0xb64] ss:$16 sps:$4 sm:$0xff]  }
  0x77   :  { %5108 = vmatpush2.bf16.msra.mxu0 %v7559_v60  ;;  %v7655_v60 = vld [vmem:[%s11511_s1 + $0x960] ss:$16 sps:$4 sm:$0xff]  }
  0x78   :  { %5151 = vmatpush2.bf16.msra.mxu1 %v7562_v61  ;;  %5109 = vmatprep.subr.bf16.mxu0 %v7567_v62  ;;  %v7658_v61 = vld [vmem:[%s11511_s1 + $0xb60] ss:$16 sps:$4 sm:$0xff]   ;;  %v7663_v62 = vld [vmem:[%s11511_s1 + $0x944] ss:$16 sps:$4 sm:$0xff]  }
  0x79   :  { %5152 = vmatprep.subr.bf16.mxu1 %v7570_v63  ;;  %v7666_v63 = vld [vmem:[%s11511_s1 + $0xb44] ss:$16 sps:$4 sm:$0xff]  }
  0x7b   :  { %5110 = vmatpush2.bf16.msra.mxu0 %v7565_v0  ;;  %v7661_v0 = vld [vmem:[%s11511_s1 + $0x940] ss:$16 sps:$4 sm:$0xff]  }
  0x7c   :  { %5153 = vmatpush2.bf16.msra.mxu1 %v7568_v1  ;;  %5111 = vmatprep.subr.bf16.mxu0 %v7573_v2  ;;  %v7664_v1 = vld [vmem:[%s11511_s1 + $0xb40] ss:$16 sps:$4 sm:$0xff]   ;;  %v7669_v2 = vld [vmem:[%s11511_s1 + $0x924] ss:$16 sps:$4 sm:$0xff]  }
  0x7d   :  { %5154 = vmatprep.subr.bf16.mxu1 %v7576_v3  ;;  %v7672_v3 = vld [vmem:[%s11511_s1 + $0xb24] ss:$16 sps:$4 sm:$0xff]  }
  0x7f   :  { %5112 = vmatpush2.bf16.msra.mxu0 %v7571_v4  ;;  %v7667_v4 = vld [vmem:[%s11511_s1 + $0x920] ss:$16 sps:$4 sm:$0xff]  }
  0x80   :  { %5155 = vmatpush2.bf16.msra.mxu1 %v7574_v5  ;;  %5167 = vmatprep.subr.bf16.mxu0 %v7585_v6  ;;  %v7670_v5 = vld [vmem:[%s11511_s1 + $0xb20] ss:$16 sps:$4 sm:$0xff]   ;;  %v7675_v6 = vld [vmem:[%s11511_s1 + $0x904] ss:$16 sps:$4 sm:$0xff]  }
  0x81   :  { %5210 = vmatprep.subr.bf16.mxu1 %v7588_v7  ;;  %v7678_v7 = vld [vmem:[%s11511_s1 + $0xb04] ss:$16 sps:$4 sm:$0xff]  }
  0x82   :  { %5114 = vmatmul.mubr.bf16.vlgmr.msra.gmra.mxu0 %v7577_v8  ;;  %v7673_v8 = vld [vmem:[%s11511_s1 + $0x900] ss:$16 sps:$4 sm:$0xff]  }
  0x83   :  { %5157 = vmatmul.mubr.bf16.vlgmr.msra.gmra.mxu1 %v7580_v9  ;;  %5168 = vmatpush1.bf16.msra.mxu0 %v7583_v10  ;;  %v7676_v9 = vld [vmem:[%s11511_s1 + $0xb00] ss:$16 sps:$4 sm:$0xff]   ;;  %v7687_v10 = vld [vmem:[%s11511_s1 + $0xce4] ss:$16 sps:$4 sm:$0xff]  }
  0x84   :  { %5211 = vmatpush1.bf16.msra.mxu1 %v7586_v11  ;;  %5169 = vmatprep.subr.bf16.mxu0 %v7591_v12  ;;  %v7690_v11 = vld [vmem:[%s11511_s1 + $0xee4] ss:$16 sps:$4 sm:$0xff]  }
  0x85   :  { %5212 = vmatprep.subr.bf16.mxu1 %v7594_v13  ;;  %5199 = vmatprep.mubr.bf16.mxu0 %v7681_v19  ;;  %v7679_v12 = vld [vmem:[%s11512_s0 + $0x20] ss:$100 sps:$4 sm:$0xff]   ;;  %v7682_v13 = vld [vmem:[%s11512_s0 + $0x28] ss:$100 sps:$4 sm:$0xff]  }
  0x86   :  { %5242 = vmatprep.mubr.bf16.mxu1 %v7684_v21  ;;  %v7786_v19 = vld [vmem:[%s11512_s0 + $0x3c] ss:$100 sps:$4 sm:$0xff]  }
  0x87   :  { %5170 = vmatpush1.bf16.msra.mxu0 %v7589_v14  ;;  %v7685_v14 = vld [vmem:[%s11511_s1 + $0xce0] ss:$16 sps:$4 sm:$0xff]  }
  0x88   :  { %5213 = vmatpush1.bf16.msra.mxu1 %v7592_v15  ;;  %5171 = vmatprep.subr.bf16.mxu0 %v7597_v16  ;;  %v7688_v15 = vld [vmem:[%s11511_s1 + $0xee0] ss:$16 sps:$4 sm:$0xff]   ;;  %v7693_v16 = vld [vmem:[%s11511_s1 + $0xcc4] ss:$16 sps:$4 sm:$0xff]  }
  0x89   :  { %5214 = vmatprep.subr.bf16.mxu1 %v7600_v17  ;;  %v7696_v17 = vld [vmem:[%s11511_s1 + $0xec4] ss:$16 sps:$4 sm:$0xff]   ;;  %v7694_v21 = vld [vmem:[%s11511_s1 + $0xec0] ss:$16 sps:$4 sm:$0xff]  }
  0x8b   :  { %5172 = vmatpush1.bf16.msra.mxu0 %v7595_v18  ;;  %v7783_v18 = vld [vmem:[%s11512_s0 + $0x34] ss:$100 sps:$4 sm:$0xff]  }
  0x8c   :  { %5215 = vmatpush1.bf16.msra.mxu1 %v7598_v20  ;;  %5173 = vmatprep.subr.bf16.mxu0 %v7603_v22  ;;  %v7691_v20 = vld [vmem:[%s11511_s1 + $0xcc0] ss:$16 sps:$4 sm:$0xff]   ;;  %v7699_v22 = vld [vmem:[%s11511_s1 + $0xca4] ss:$16 sps:$4 sm:$0xff]  }
  0x8d   :  { %5216 = vmatprep.subr.bf16.mxu1 %v7606_v23  ;;  %v7702_v23 = vld [vmem:[%s11511_s1 + $0xea4] ss:$16 sps:$4 sm:$0xff]  }
  0x8f   :  { %5174 = vmatpush1.bf16.msra.mxu0 %v7601_v24  ;;  %v7697_v24 = vld [vmem:[%s11511_s1 + $0xca0] ss:$16 sps:$4 sm:$0xff]  }
  0x90   :  { %5217 = vmatpush1.bf16.msra.mxu1 %v7604_v25  ;;  %5175 = vmatprep.subr.bf16.mxu0 %v7609_v26  ;;  %v7700_v25 = vld [vmem:[%s11511_s1 + $0xea0] ss:$16 sps:$4 sm:$0xff]   ;;  %v7705_v26 = vld [vmem:[%s11511_s1 + $0xc84] ss:$16 sps:$4 sm:$0xff]  }
  0x91   :  { %5218 = vmatprep.subr.bf16.mxu1 %v7612_v27  ;;  %v7708_v27 = vld [vmem:[%s11511_s1 + $0xe84] ss:$16 sps:$4 sm:$0xff]  }
  0x93   :  { %5176 = vmatpush1.bf16.msra.mxu0 %v7607_v28  ;;  %v7703_v28 = vld [vmem:[%s11511_s1 + $0xc80] ss:$16 sps:$4 sm:$0xff]  }
  0x94   :  { %5219 = vmatpush1.bf16.msra.mxu1 %v7610_v29  ;;  %5177 = vmatprep.subr.bf16.mxu0 %v7615_v30  ;;  %v7706_v29 = vld [vmem:[%s11511_s1 + $0xe80] ss:$16 sps:$4 sm:$0xff]   ;;  %v7711_v30 = vld [vmem:[%s11511_s1 + $0xc64] ss:$16 sps:$4 sm:$0xff]  }
  0x95   :  { %5220 = vmatprep.subr.bf16.mxu1 %v7618_v31  ;;  %v7714_v31 = vld [vmem:[%s11511_s1 + $0xe64] ss:$16 sps:$4 sm:$0xff]  }
  0x97   :  { %5178 = vmatpush1.bf16.msra.mxu0 %v7613_v32  ;;  %v7709_v32 = vld [vmem:[%s11511_s1 + $0xc60] ss:$16 sps:$4 sm:$0xff]  }
  0x98   :  { %5221 = vmatpush1.bf16.msra.mxu1 %v7616_v33  ;;  %5179 = vmatprep.subr.bf16.mxu0 %v7621_v34  ;;  %v7712_v33 = vld [vmem:[%s11511_s1 + $0xe60] ss:$16 sps:$4 sm:$0xff]   ;;  %v7717_v34 = vld [vmem:[%s11511_s1 + $0xc44] ss:$16 sps:$4 sm:$0xff]  }
  0x99   :  { %5222 = vmatprep.subr.bf16.mxu1 %v7624_v35  ;;  %v7720_v35 = vld [vmem:[%s11511_s1 + $0xe44] ss:$16 sps:$4 sm:$0xff]  }
  0x9b   :  { %5180 = vmatpush1.bf16.msra.mxu0 %v7619_v36  ;;  %v7715_v36 = vld [vmem:[%s11511_s1 + $0xc40] ss:$16 sps:$4 sm:$0xff]  }
  0x9c   :  { %5223 = vmatpush1.bf16.msra.mxu1 %v7622_v37  ;;  %5181 = vmatprep.subr.bf16.mxu0 %v7627_v38  ;;  %v7718_v37 = vld [vmem:[%s11511_s1 + $0xe40] ss:$16 sps:$4 sm:$0xff]   ;;  %v7723_v38 = vld [vmem:[%s11511_s1 + $0xc24] ss:$16 sps:$4 sm:$0xff]  }
  0x9d   :  { %5224 = vmatprep.subr.bf16.mxu1 %v7630_v39  ;;  %v7726_v39 = vld [vmem:[%s11511_s1 + $0xe24] ss:$16 sps:$4 sm:$0xff]  }
  0x9f   :  { %5182 = vmatpush1.bf16.msra.mxu0 %v7625_v40  ;;  %v7721_v40 = vld [vmem:[%s11511_s1 + $0xc20] ss:$16 sps:$4 sm:$0xff]  }
  0xa0   :  { %5225 = vmatpush1.bf16.msra.mxu1 %v7628_v41  ;;  %5183 = vmatprep.subr.bf16.mxu0 %v7633_v42  ;;  %v7724_v41 = vld [vmem:[%s11511_s1 + $0xe20] ss:$16 sps:$4 sm:$0xff]   ;;  %v7729_v42 = vld [vmem:[%s11511_s1 + $0xc04] ss:$16 sps:$4 sm:$0xff]  }
  0xa1   :  { %5226 = vmatprep.subr.bf16.mxu1 %v7636_v43  ;;  %v7732_v43 = vld [vmem:[%s11511_s1 + $0xe04] ss:$16 sps:$4 sm:$0xff]  }
  0xa3   :  { %5184 = vmatpush2.bf16.msra.mxu0 %v7631_v44  ;;  %v7727_v44 = vld [vmem:[%s11511_s1 + $0xc00] ss:$16 sps:$4 sm:$0xff]  }
  0xa4   :  { %5227 = vmatpush2.bf16.msra.mxu1 %v7634_v45  ;;  %5185 = vmatprep.subr.bf16.mxu0 %v7639_v46  ;;  %v7730_v45 = vld [vmem:[%s11511_s1 + $0xe00] ss:$16 sps:$4 sm:$0xff]   ;;  %v7735_v46 = vld [vmem:[%s11511_s1 + $0xde4] ss:$16 sps:$4 sm:$0xff]  }
  0xa5   :  { %5228 = vmatprep.subr.bf16.mxu1 %v7642_v47  ;;  %v7738_v47 = vld [vmem:[%s11511_s1 + $0xfe4] ss:$16 sps:$4 sm:$0xff]  }
  0xa7   :  { %5186 = vmatpush2.bf16.msra.mxu0 %v7637_v48  ;;  %v7733_v48 = vld [vmem:[%s11511_s1 + $0xde0] ss:$16 sps:$4 sm:$0xff]  }
  0xa8   :  { %5229 = vmatpush2.bf16.msra.mxu1 %v7640_v49  ;;  %5187 = vmatprep.subr.bf16.mxu0 %v7645_v50  ;;  %v7736_v49 = vld [vmem:[%s11511_s1 + $0xfe0] ss:$16 sps:$4 sm:$0xff]   ;;  %v7741_v50 = vld [vmem:[%s11511_s1 + $0xdc4] ss:$16 sps:$4 sm:$0xff]  }
  0xa9   :  { %5230 = vmatprep.subr.bf16.mxu1 %v7648_v51  ;;  %v7744_v51 = vld [vmem:[%s11511_s1 + $0xfc4] ss:$16 sps:$4 sm:$0xff]  }
  0xab   :  { %5188 = vmatpush2.bf16.msra.mxu0 %v7643_v52  ;;  %v7739_v52 = vld [vmem:[%s11511_s1 + $0xdc0] ss:$16 sps:$4 sm:$0xff]  }
  0xac   :  { %5231 = vmatpush2.bf16.msra.mxu1 %v7646_v53  ;;  %5189 = vmatprep.subr.bf16.mxu0 %v7651_v54  ;;  %v7742_v53 = vld [vmem:[%s11511_s1 + $0xfc0] ss:$16 sps:$4 sm:$0xff]   ;;  %v7747_v54 = vld [vmem:[%s11511_s1 + $0xda4] ss:$16 sps:$4 sm:$0xff]  }
  0xad   :  { %5232 = vmatprep.subr.bf16.mxu1 %v7654_v55  ;;  %v7750_v55 = vld [vmem:[%s11511_s1 + $0xfa4] ss:$16 sps:$4 sm:$0xff]  }
  0xaf   :  { %5190 = vmatpush2.bf16.msra.mxu0 %v7649_v56  ;;  %v7745_v56 = vld [vmem:[%s11511_s1 + $0xda0] ss:$16 sps:$4 sm:$0xff]  }
  0xb0   :  { %5233 = vmatpush2.bf16.msra.mxu1 %v7652_v57  ;;  %5191 = vmatprep.subr.bf16.mxu0 %v7657_v58  ;;  %v7748_v57 = vld [vmem:[%s11511_s1 + $0xfa0] ss:$16 sps:$4 sm:$0xff]   ;;  %v7753_v58 = vld [vmem:[%s11511_s1 + $0xd84] ss:$16 sps:$4 sm:$0xff]  }
  0xb1   :  { %5234 = vmatprep.subr.bf16.mxu1 %v7660_v59  ;;  %v7756_v59 = vld [vmem:[%s11511_s1 + $0xf84] ss:$16 sps:$4 sm:$0xff]  }
  0xb3   :  { %5192 = vmatpush2.bf16.msra.mxu0 %v7655_v60  ;;  %v7751_v60 = vld [vmem:[%s11511_s1 + $0xd80] ss:$16 sps:$4 sm:$0xff]  }
  0xb4   :  { %5235 = vmatpush2.bf16.msra.mxu1 %v7658_v61  ;;  %5193 = vmatprep.subr.bf16.mxu0 %v7663_v62  ;;  %v7754_v61 = vld [vmem:[%s11511_s1 + $0xf80] ss:$16 sps:$4 sm:$0xff]   ;;  %v7759_v62 = vld [vmem:[%s11511_s1 + $0xd64] ss:$16 sps:$4 sm:$0xff]  }
  0xb5   :  { %5236 = vmatprep.subr.bf16.mxu1 %v7666_v63  ;;  %v7762_v63 = vld [vmem:[%s11511_s1 + $0xf64] ss:$16 sps:$4 sm:$0xff]  }
  0xb7   :  { %5194 = vmatpush2.bf16.msra.mxu0 %v7661_v0  ;;  %v7757_v0 = vld [vmem:[%s11511_s1 + $0xd60] ss:$16 sps:$4 sm:$0xff]  }
  0xb8   :  { %5237 = vmatpush2.bf16.msra.mxu1 %v7664_v1  ;;  %5195 = vmatprep.subr.bf16.mxu0 %v7669_v2  ;;  %v7760_v1 = vld [vmem:[%s11511_s1 + $0xf60] ss:$16 sps:$4 sm:$0xff]   ;;  %v7765_v2 = vld [vmem:[%s11511_s1 + $0xd44] ss:$16 sps:$4 sm:$0xff]  }
  0xb9   :  { %5238 = vmatprep.subr.bf16.mxu1 %v7672_v3  ;;  %v7768_v3 = vld [vmem:[%s11511_s1 + $0xf44] ss:$16 sps:$4 sm:$0xff]  }
  0xbb   :  { %5196 = vmatpush2.bf16.msra.mxu0 %v7667_v4  ;;  %v7763_v4 = vld [vmem:[%s11511_s1 + $0xd40] ss:$16 sps:$4 sm:$0xff]  }
  0xbc   :  { %5239 = vmatpush2.bf16.msra.mxu1 %v7670_v5  ;;  %5197 = vmatprep.subr.bf16.mxu0 %v7675_v6  ;;  %v7766_v5 = vld [vmem:[%s11511_s1 + $0xf40] ss:$16 sps:$4 sm:$0xff]   ;;  %v7771_v6 = vld [vmem:[%s11511_s1 + $0xd24] ss:$16 sps:$4 sm:$0xff]  }
  0xbd   :  { %5240 = vmatprep.subr.bf16.mxu1 %v7678_v7  ;;  %v7774_v7 = vld [vmem:[%s11511_s1 + $0xf24] ss:$16 sps:$4 sm:$0xff]  }
  0xbf   :  { %5198 = vmatpush2.bf16.msra.mxu0 %v7673_v8  ;;  %v7769_v8 = vld [vmem:[%s11511_s1 + $0xd20] ss:$16 sps:$4 sm:$0xff]  }
  0xc0   :  { %5241 = vmatpush2.bf16.msra.mxu1 %v7676_v9  ;;  %5253 = vmatprep.subr.bf16.mxu0 %v7687_v10  ;;  %v7772_v9 = vld [vmem:[%s11511_s1 + $0xf20] ss:$16 sps:$4 sm:$0xff]   ;;  %v7777_v10 = vld [vmem:[%s11511_s1 + $0xd04] ss:$16 sps:$4 sm:$0xff]  }
  0xc1   :  { %5296 = vmatprep.subr.bf16.mxu1 %v7690_v11  ;;  %v7780_v11 = vld [vmem:[%s11511_s1 + $0xf04] ss:$16 sps:$4 sm:$0xff]  }
  0xc2   :  { %5200 = vmatmul.mubr.bf16.vlgmr.msra.gmra.mxu0 %v7679_v12  ;;  %v7775_v12 = vld [vmem:[%s11511_s1 + $0xd00] ss:$16 sps:$4 sm:$0xff]  }
  0xc3   :  { %5243 = vmatmul.mubr.bf16.vlgmr.msra.gmra.mxu1 %v7682_v13  ;;  %5254 = vmatpush1.bf16.msra.mxu0 %v7685_v14  ;;  %v7778_v13 = vld [vmem:[%s11511_s1 + $0xf00] ss:$16 sps:$4 sm:$0xff]   ;;  %v7789_v14 = vld [vmem:[%s11511_s1 + $0x10e4] ss:$16 sps:$4 sm:$0xff]  }
  0xc4   :  { %5297 = vmatpush1.bf16.msra.mxu1 %v7688_v15  ;;  %5255 = vmatprep.subr.bf16.mxu0 %v7693_v16  ;;  %v7792_v15 = vld [vmem:[%s11511_s1 + $0x12e4] ss:$16 sps:$4 sm:$0xff]  }
  0xc5   :  { %5298 = vmatprep.subr.bf16.mxu1 %v7696_v17  ;;  %5285 = vmatprep.mubr.bf16.mxu0 %v7783_v18  ;;  %v7781_v16 = vld [vmem:[%s11512_s0 + $0x30] ss:$100 sps:$4 sm:$0xff]   ;;  %v7784_v17 = vld [vmem:[%s11512_s0 + $0x38] ss:$100 sps:$4 sm:$0xff]  }
  0xc6   :  { %5328 = vmatprep.mubr.bf16.mxu1 %v7786_v19  ;;  %v7787_v18 = vld [vmem:[%s11511_s1 + $0x10e0] ss:$16 sps:$4 sm:$0xff]  }
  0xc7   :  { %5256 = vmatpush1.bf16.msra.mxu0 %v7691_v20  ;;  %v7790_v19 = vld [vmem:[%s11511_s1 + $0x12e0] ss:$16 sps:$4 sm:$0xff]   ;;  %v7795_v20 = vld [vmem:[%s11511_s1 + $0x10c4] ss:$16 sps:$4 sm:$0xff]  }
  0xc8   :  { %5299 = vmatpush1.bf16.msra.mxu1 %v7694_v21  ;;  %5257 = vmatprep.subr.bf16.mxu0 %v7699_v22  ;;  %v7798_v21 = vld [vmem:[%s11511_s1 + $0x12c4] ss:$16 sps:$4 sm:$0xff]  }
  0xc9   :  { %5300 = vmatprep.subr.bf16.mxu1 %v7702_v23  ;;  %v7885_v22 = vld [vmem:[%s11512_s0 + $0x44] ss:$100 sps:$4 sm:$0xff]   ;;  %v7888_v23 = vld [vmem:[%s11512_s0 + $0x4c] ss:$100 sps:$4 sm:$0xff]  }
  0xcb   :  { %5258 = vmatpush1.bf16.msra.mxu0 %v7697_v24  ;;  %v7793_v24 = vld [vmem:[%s11511_s1 + $0x10c0] ss:$16 sps:$4 sm:$0xff]  }
  0xcc   :  { %5301 = vmatpush1.bf16.msra.mxu1 %v7700_v25  ;;  %5259 = vmatprep.subr.bf16.mxu0 %v7705_v26  ;;  %v7796_v25 = vld [vmem:[%s11511_s1 + $0x12c0] ss:$16 sps:$4 sm:$0xff]   ;;  %v7801_v26 = vld [vmem:[%s11511_s1 + $0x10a4] ss:$16 sps:$4 sm:$0xff]  }
  0xcd   :  { %5302 = vmatprep.subr.bf16.mxu1 %v7708_v27  ;;  %v7804_v27 = vld [vmem:[%s11511_s1 + $0x12a4] ss:$16 sps:$4 sm:$0xff]  }
  0xcf   :  { %5260 = vmatpush1.bf16.msra.mxu0 %v7703_v28  ;;  %v7799_v28 = vld [vmem:[%s11511_s1 + $0x10a0] ss:$16 sps:$4 sm:$0xff]  }
  0xd0   :  { %5303 = vmatpush1.bf16.msra.mxu1 %v7706_v29  ;;  %5261 = vmatprep.subr.bf16.mxu0 %v7711_v30  ;;  %v7802_v29 = vld [vmem:[%s11511_s1 + $0x12a0] ss:$16 sps:$4 sm:$0xff]   ;;  %v7807_v30 = vld [vmem:[%s11511_s1 + $0x1084] ss:$16 sps:$4 sm:$0xff]  }
  0xd1   :  { %5304 = vmatprep.subr.bf16.mxu1 %v7714_v31  ;;  %v7810_v31 = vld [vmem:[%s11511_s1 + $0x1284] ss:$16 sps:$4 sm:$0xff]  }
  0xd3   :  { %5262 = vmatpush1.bf16.msra.mxu0 %v7709_v32  ;;  %v7805_v32 = vld [vmem:[%s11511_s1 + $0x1080] ss:$16 sps:$4 sm:$0xff]  }
  0xd4   :  { %5305 = vmatpush1.bf16.msra.mxu1 %v7712_v33  ;;  %5263 = vmatprep.subr.bf16.mxu0 %v7717_v34  ;;  %v7808_v33 = vld [vmem:[%s11511_s1 + $0x1280] ss:$16 sps:$4 sm:$0xff]   ;;  %v7813_v34 = vld [vmem:[%s11511_s1 + $0x1064] ss:$16 sps:$4 sm:$0xff]  }
  0xd5   :  { %5306 = vmatprep.subr.bf16.mxu1 %v7720_v35  ;;  %v7816_v35 = vld [vmem:[%s11511_s1 + $0x1264] ss:$16 sps:$4 sm:$0xff]  }
  0xd7   :  { %5264 = vmatpush1.bf16.msra.mxu0 %v7715_v36  ;;  %v7811_v36 = vld [vmem:[%s11511_s1 + $0x1060] ss:$16 sps:$4 sm:$0xff]  }
  0xd8   :  { %5307 = vmatpush1.bf16.msra.mxu1 %v7718_v37  ;;  %5265 = vmatprep.subr.bf16.mxu0 %v7723_v38  ;;  %v7814_v37 = vld [vmem:[%s11511_s1 + $0x1260] ss:$16 sps:$4 sm:$0xff]   ;;  %v7819_v38 = vld [vmem:[%s11511_s1 + $0x1044] ss:$16 sps:$4 sm:$0xff]  }
  0xd9   :  { %5308 = vmatprep.subr.bf16.mxu1 %v7726_v39  ;;  %v7822_v39 = vld [vmem:[%s11511_s1 + $0x1244] ss:$16 sps:$4 sm:$0xff]  }
  0xdb   :  { %5266 = vmatpush1.bf16.msra.mxu0 %v7721_v40  ;;  %v7817_v40 = vld [vmem:[%s11511_s1 + $0x1040] ss:$16 sps:$4 sm:$0xff]  }
  0xdc   :  { %5309 = vmatpush1.bf16.msra.mxu1 %v7724_v41  ;;  %5267 = vmatprep.subr.bf16.mxu0 %v7729_v42  ;;  %v7820_v41 = vld [vmem:[%s11511_s1 + $0x1240] ss:$16 sps:$4 sm:$0xff]   ;;  %v7825_v42 = vld [vmem:[%s11511_s1 + $0x1024] ss:$16 sps:$4 sm:$0xff]  }
  0xdd   :  { %5310 = vmatprep.subr.bf16.mxu1 %v7732_v43  ;;  %v7828_v43 = vld [vmem:[%s11511_s1 + $0x1224] ss:$16 sps:$4 sm:$0xff]  }
  0xdf   :  { %5268 = vmatpush1.bf16.msra.mxu0 %v7727_v44  ;;  %v7823_v44 = vld [vmem:[%s11511_s1 + $0x1020] ss:$16 sps:$4 sm:$0xff]  }
  0xe0   :  { %5311 = vmatpush1.bf16.msra.mxu1 %v7730_v45  ;;  %5269 = vmatprep.subr.bf16.mxu0 %v7735_v46  ;;  %v7826_v45 = vld [vmem:[%s11511_s1 + $0x1220] ss:$16 sps:$4 sm:$0xff]   ;;  %v7831_v46 = vld [vmem:[%s11511_s1 + $0x1004] ss:$16 sps:$4 sm:$0xff]  }
  0xe1   :  { %5312 = vmatprep.subr.bf16.mxu1 %v7738_v47  ;;  %v7834_v47 = vld [vmem:[%s11511_s1 + $0x1204] ss:$16 sps:$4 sm:$0xff]  }
  0xe3   :  { %5270 = vmatpush2.bf16.msra.mxu0 %v7733_v48  ;;  %v7829_v48 = vld [vmem:[%s11511_s1 + $0x1000] ss:$16 sps:$4 sm:$0xff]  }
  0xe4   :  { %5313 = vmatpush2.bf16.msra.mxu1 %v7736_v49  ;;  %5271 = vmatprep.subr.bf16.mxu0 %v7741_v50  ;;  %v7832_v49 = vld [vmem:[%s11511_s1 + $0x1200] ss:$16 sps:$4 sm:$0xff]   ;;  %v7837_v50 = vld [vmem:[%s11511_s1 + $0x11e4] ss:$16 sps:$4 sm:$0xff]  }
  0xe5   :  { %5314 = vmatprep.subr.bf16.mxu1 %v7744_v51  ;;  %v7840_v51 = vld [vmem:[%s11511_s1 + $0x13e4] ss:$16 sps:$4 sm:$0xff]  }
  0xe7   :  { %5272 = vmatpush2.bf16.msra.mxu0 %v7739_v52  ;;  %v7835_v52 = vld [vmem:[%s11511_s1 + $0x11e0] ss:$16 sps:$4 sm:$0xff]  }
  0xe8   :  { %5315 = vmatpush2.bf16.msra.mxu1 %v7742_v53  ;;  %5273 = vmatprep.subr.bf16.mxu0 %v7747_v54  ;;  %v7838_v53 = vld [vmem:[%s11511_s1 + $0x13e0] ss:$16 sps:$4 sm:$0xff]   ;;  %v7843_v54 = vld [vmem:[%s11511_s1 + $0x11c4] ss:$16 sps:$4 sm:$0xff]  }
  0xe9   :  { %5316 = vmatprep.subr.bf16.mxu1 %v7750_v55  ;;  %v7846_v55 = vld [vmem:[%s11511_s1 + $0x13c4] ss:$16 sps:$4 sm:$0xff]  }
  0xeb   :  { %5274 = vmatpush2.bf16.msra.mxu0 %v7745_v56  ;;  %v7841_v56 = vld [vmem:[%s11511_s1 + $0x11c0] ss:$16 sps:$4 sm:$0xff]  }
  0xec   :  { %5317 = vmatpush2.bf16.msra.mxu1 %v7748_v57  ;;  %5275 = vmatprep.subr.bf16.mxu0 %v7753_v58  ;;  %v7844_v57 = vld [vmem:[%s11511_s1 + $0x13c0] ss:$16 sps:$4 sm:$0xff]   ;;  %v7849_v58 = vld [vmem:[%s11511_s1 + $0x11a4] ss:$16 sps:$4 sm:$0xff]  }
  0xed   :  { %5318 = vmatprep.subr.bf16.mxu1 %v7756_v59  ;;  %v7852_v59 = vld [vmem:[%s11511_s1 + $0x13a4] ss:$16 sps:$4 sm:$0xff]  }
  0xef   :  { %5276 = vmatpush2.bf16.msra.mxu0 %v7751_v60  ;;  %v7847_v60 = vld [vmem:[%s11511_s1 + $0x11a0] ss:$16 sps:$4 sm:$0xff]  }
  0xf0   :  { %5319 = vmatpush2.bf16.msra.mxu1 %v7754_v61  ;;  %5277 = vmatprep.subr.bf16.mxu0 %v7759_v62  ;;  %v7850_v61 = vld [vmem:[%s11511_s1 + $0x13a0] ss:$16 sps:$4 sm:$0xff]   ;;  %v7855_v62 = vld [vmem:[%s11511_s1 + $0x1184] ss:$16 sps:$4 sm:$0xff]  }
  0xf1   :  { %5320 = vmatprep.subr.bf16.mxu1 %v7762_v63  ;;  %v7858_v63 = vld [vmem:[%s11511_s1 + $0x1384] ss:$16 sps:$4 sm:$0xff]  }
  0xf3   :  { %5278 = vmatpush2.bf16.msra.mxu0 %v7757_v0  ;;  %v7853_v0 = vld [vmem:[%s11511_s1 + $0x1180] ss:$16 sps:$4 sm:$0xff]  }
  0xf4   :  { %5321 = vmatpush2.bf16.msra.mxu1 %v7760_v1  ;;  %5279 = vmatprep.subr.bf16.mxu0 %v7765_v2  ;;  %v7856_v1 = vld [vmem:[%s11511_s1 + $0x1380] ss:$16 sps:$4 sm:$0xff]   ;;  %v7861_v2 = vld [vmem:[%s11511_s1 + $0x1164] ss:$16 sps:$4 sm:$0xff]  }
  0xf5   :  { %5322 = vmatprep.subr.bf16.mxu1 %v7768_v3  ;;  %v7864_v3 = vld [vmem:[%s11511_s1 + $0x1364] ss:$16 sps:$4 sm:$0xff]  }
  0xf7   :  { %5280 = vmatpush2.bf16.msra.mxu0 %v7763_v4  ;;  %v7859_v4 = vld [vmem:[%s11511_s1 + $0x1160] ss:$16 sps:$4 sm:$0xff]  }
  0xf8   :  { %5323 = vmatpush2.bf16.msra.mxu1 %v7766_v5  ;;  %5281 = vmatprep.subr.bf16.mxu0 %v7771_v6  ;;  %v7862_v5 = vld [vmem:[%s11511_s1 + $0x1360] ss:$16 sps:$4 sm:$0xff]   ;;  %v7867_v6 = vld [vmem:[%s11511_s1 + $0x1144] ss:$16 sps:$4 sm:$0xff]  }
  0xf9   :  { %5324 = vmatprep.subr.bf16.mxu1 %v7774_v7  ;;  %v7870_v7 = vld [vmem:[%s11511_s1 + $0x1344] ss:$16 sps:$4 sm:$0xff]  }
  0xfb   :  { %5282 = vmatpush2.bf16.msra.mxu0 %v7769_v8  ;;  %v7865_v8 = vld [vmem:[%s11511_s1 + $0x1140] ss:$16 sps:$4 sm:$0xff]  }
  0xfc   :  { %5325 = vmatpush2.bf16.msra.mxu1 %v7772_v9  ;;  %5283 = vmatprep.subr.bf16.mxu0 %v7777_v10  ;;  %v7868_v9 = vld [vmem:[%s11511_s1 + $0x1340] ss:$16 sps:$4 sm:$0xff]   ;;  %v7873_v10 = vld [vmem:[%s11511_s1 + $0x1124] ss:$16 sps:$4 sm:$0xff]  }
  0xfd   :  { %5326 = vmatprep.subr.bf16.mxu1 %v7780_v11  ;;  %v7876_v11 = vld [vmem:[%s11511_s1 + $0x1324] ss:$16 sps:$4 sm:$0xff]  }
  0xff   :  { %5284 = vmatpush2.bf16.msra.mxu0 %v7775_v12  ;;  %v7871_v12 = vld [vmem:[%s11511_s1 + $0x1120] ss:$16 sps:$4 sm:$0xff]  }
 0x100   :  { %5327 = vmatpush2.bf16.msra.mxu1 %v7778_v13  ;;  %5339 = vmatprep.subr.bf16.mxu0 %v7789_v14  ;;  %v7874_v13 = vld [vmem:[%s11511_s1 + $0x1320] ss:$16 sps:$4 sm:$0xff]   ;;  %v7879_v14 = vld [vmem:[%s11511_s1 + $0x1104] ss:$16 sps:$4 sm:$0xff]  }
 0x101   :  { %5382 = vmatprep.subr.bf16.mxu1 %v7792_v15  ;;  %v7882_v15 = vld [vmem:[%s11511_s1 + $0x1304] ss:$16 sps:$4 sm:$0xff]  }
 0x102   :  { %5286 = vmatmul.mubr.bf16.vlgmr.msra.gmra.mxu0 %v7781_v16  ;;  %v7877_v16 = vld [vmem:[%s11511_s1 + $0x1100] ss:$16 sps:$4 sm:$0xff]  }
 0x103   :  { %5329 = vmatmul.mubr.bf16.vlgmr.msra.gmra.mxu1 %v7784_v17  ;;  %5340 = vmatpush1.bf16.msra.mxu0 %v7787_v18  ;;  %v7880_v17 = vld [vmem:[%s11511_s1 + $0x1300] ss:$16 sps:$4 sm:$0xff]  }
 0x104   :  { %5383 = vmatpush1.bf16.msra.mxu1 %v7790_v19  ;;  %5341 = vmatprep.subr.bf16.mxu0 %v7795_v20  ;;  %v7883_v18 = vld [vmem:[%s11512_s0 + $0x40] ss:$100 sps:$4 sm:$0xff]   ;;  %v7886_v19 = vld [vmem:[%s11512_s0 + $0x48] ss:$100 sps:$4 sm:$0xff]  }
 0x105   :  { %5384 = vmatprep.subr.bf16.mxu1 %v7798_v21  ;;  %5371 = vmatprep.mubr.bf16.mxu0 %v7885_v22  ;;  %v7891_v20 = vld [vmem:[%s11511_s1 + $0x14e4] ss:$16 sps:$4 sm:$0xff]   ;;  %v7889_v22 = vld [vmem:[%s11511_s1 + $0x14e0] ss:$16 sps:$4 sm:$0xff]  }
 0x106   :  { %5414 = vmatprep.mubr.bf16.mxu1 %v7888_v23  ;;  %v7894_v21 = vld [vmem:[%s11511_s1 + $0x16e4] ss:$16 sps:$4 sm:$0xff]   ;;  %v7892_v23 = vld [vmem:[%s11511_s1 + $0x16e0] ss:$16 sps:$4 sm:$0xff]  }
 0x107   :  { %5342 = vmatpush1.bf16.msra.mxu0 %v7793_v24  ;;  %v7897_v24 = vld [vmem:[%s11511_s1 + $0x14c4] ss:$16 sps:$4 sm:$0xff]  }
 0x108   :  { %5385 = vmatpush1.bf16.msra.mxu1 %v7796_v25  ;;  %5343 = vmatprep.subr.bf16.mxu0 %v7801_v26  ;;  %v7900_v25 = vld [vmem:[%s11511_s1 + $0x16c4] ss:$16 sps:$4 sm:$0xff]   ;;  %v7895_v26 = vld [vmem:[%s11511_s1 + $0x14c0] ss:$16 sps:$4 sm:$0xff]  }
 0x109   :  { %5386 = vmatprep.subr.bf16.mxu1 %v7804_v27  ;;  %v7898_v27 = vld [vmem:[%s11511_s1 + $0x16c0] ss:$16 sps:$4 sm:$0xff]  }
 0x10b   :  { %5344 = vmatpush1.bf16.msra.mxu0 %v7799_v28  ;;  %v7987_v28 = vld [vmem:[%s11512_s0 + $0x54] ss:$100 sps:$4 sm:$0xff]  }
 0x10c   :  { %5387 = vmatpush1.bf16.msra.mxu1 %v7802_v29  ;;  %5345 = vmatprep.subr.bf16.mxu0 %v7807_v30  ;;  %v7990_v29 = vld [vmem:[%s11512_s0 + $0x5c] ss:$100 sps:$4 sm:$0xff]   ;;  %v7903_v30 = vld [vmem:[%s11511_s1 + $0x14a4] ss:$16 sps:$4 sm:$0xff]  }
 0x10d   :  { %5388 = vmatprep.subr.bf16.mxu1 %v7810_v31  ;;  %v7906_v31 = vld [vmem:[%s11511_s1 + $0x16a4] ss:$16 sps:$4 sm:$0xff]  }
 0x10f   :  { %5346 = vmatpush1.bf16.msra.mxu0 %v7805_v32  ;;  %v7901_v32 = vld [vmem:[%s11511_s1 + $0x14a0] ss:$16 sps:$4 sm:$0xff]  }
 0x110   :  { %5389 = vmatpush1.bf16.msra.mxu1 %v7808_v33  ;;  %5347 = vmatprep.subr.bf16.mxu0 %v7813_v34  ;;  %v7904_v33 = vld [vmem:[%s11511_s1 + $0x16a0] ss:$16 sps:$4 sm:$0xff]   ;;  %v7909_v34 = vld [vmem:[%s11511_s1 + $0x1484] ss:$16 sps:$4 sm:$0xff]  }
 0x111   :  { %5390 = vmatprep.subr.bf16.mxu1 %v7816_v35  ;;  %v7912_v35 = vld [vmem:[%s11511_s1 + $0x1684] ss:$16 sps:$4 sm:$0xff]  }
 0x113   :  { %5348 = vmatpush1.bf16.msra.mxu0 %v7811_v36  ;;  %v7907_v36 = vld [vmem:[%s11511_s1 + $0x1480] ss:$16 sps:$4 sm:$0xff]  }
 0x114   :  { %5391 = vmatpush1.bf16.msra.mxu1 %v7814_v37  ;;  %5349 = vmatprep.subr.bf16.mxu0 %v7819_v38  ;;  %v7910_v37 = vld [vmem:[%s11511_s1 + $0x1680] ss:$16 sps:$4 sm:$0xff]   ;;  %v7915_v38 = vld [vmem:[%s11511_s1 + $0x1464] ss:$16 sps:$4 sm:$0xff]  }
 0x115   :  { %5392 = vmatprep.subr.bf16.mxu1 %v7822_v39  ;;  %v7918_v39 = vld [vmem:[%s11511_s1 + $0x1664] ss:$16 sps:$4 sm:$0xff]  }
 0x117   :  { %5350 = vmatpush1.bf16.msra.mxu0 %v7817_v40  ;;  %v7913_v40 = vld [vmem:[%s11511_s1 + $0x1460] ss:$16 sps:$4 sm:$0xff]  }
 0x118   :  { %5393 = vmatpush1.bf16.msra.mxu1 %v7820_v41  ;;  %5351 = vmatprep.subr.bf16.mxu0 %v7825_v42  ;;  %v7916_v41 = vld [vmem:[%s11511_s1 + $0x1660] ss:$16 sps:$4 sm:$0xff]   ;;  %v7921_v42 = vld [vmem:[%s11511_s1 + $0x1444] ss:$16 sps:$4 sm:$0xff]  }
 0x119   :  { %5394 = vmatprep.subr.bf16.mxu1 %v7828_v43  ;;  %v7924_v43 = vld [vmem:[%s11511_s1 + $0x1644] ss:$16 sps:$4 sm:$0xff]  }
 0x11b   :  { %5352 = vmatpush1.bf16.msra.mxu0 %v7823_v44  ;;  %v7919_v44 = vld [vmem:[%s11511_s1 + $0x1440] ss:$16 sps:$4 sm:$0xff]  }
 0x11c   :  { %5395 = vmatpush1.bf16.msra.mxu1 %v7826_v45  ;;  %5353 = vmatprep.subr.bf16.mxu0 %v7831_v46  ;;  %v7922_v45 = vld [vmem:[%s11511_s1 + $0x1640] ss:$16 sps:$4 sm:$0xff]   ;;  %v7927_v46 = vld [vmem:[%s11511_s1 + $0x1424] ss:$16 sps:$4 sm:$0xff]  }
 0x11d   :  { %5396 = vmatprep.subr.bf16.mxu1 %v7834_v47  ;;  %v7930_v47 = vld [vmem:[%s11511_s1 + $0x1624] ss:$16 sps:$4 sm:$0xff]  }
 0x11f   :  { %5354 = vmatpush1.bf16.msra.mxu0 %v7829_v48  ;;  %v7925_v48 = vld [vmem:[%s11511_s1 + $0x1420] ss:$16 sps:$4 sm:$0xff]  }
 0x120   :  { %5397 = vmatpush1.bf16.msra.mxu1 %v7832_v49  ;;  %5355 = vmatprep.subr.bf16.mxu0 %v7837_v50  ;;  %v7928_v49 = vld [vmem:[%s11511_s1 + $0x1620] ss:$16 sps:$4 sm:$0xff]   ;;  %v7933_v50 = vld [vmem:[%s11511_s1 + $0x1404] ss:$16 sps:$4 sm:$0xff]  }
 0x121   :  { %5398 = vmatprep.subr.bf16.mxu1 %v7840_v51  ;;  %v7936_v51 = vld [vmem:[%s11511_s1 + $0x1604] ss:$16 sps:$4 sm:$0xff]  }
 0x123   :  { %5356 = vmatpush2.bf16.msra.mxu0 %v7835_v52  ;;  %v7931_v52 = vld [vmem:[%s11511_s1 + $0x1400] ss:$16 sps:$4 sm:$0xff]  }
 0x124   :  { %5399 = vmatpush2.bf16.msra.mxu1 %v7838_v53  ;;  %5357 = vmatprep.subr.bf16.mxu0 %v7843_v54  ;;  %v7934_v53 = vld [vmem:[%s11511_s1 + $0x1600] ss:$16 sps:$4 sm:$0xff]   ;;  %v7939_v54 = vld [vmem:[%s11511_s1 + $0x15e4] ss:$16 sps:$4 sm:$0xff]  }
 0x125   :  { %5400 = vmatprep.subr.bf16.mxu1 %v7846_v55  ;;  %v7942_v55 = vld [vmem:[%s11511_s1 + $0x17e4] ss:$16 sps:$4 sm:$0xff]  }
 0x127   :  { %5358 = vmatpush2.bf16.msra.mxu0 %v7841_v56  ;;  %v7937_v56 = vld [vmem:[%s11511_s1 + $0x15e0] ss:$16 sps:$4 sm:$0xff]  }
 0x128   :  { %5401 = vmatpush2.bf16.msra.mxu1 %v7844_v57  ;;  %5359 = vmatprep.subr.bf16.mxu0 %v7849_v58  ;;  %v7940_v57 = vld [vmem:[%s11511_s1 + $0x17e0] ss:$16 sps:$4 sm:$0xff]   ;;  %v7945_v58 = vld [vmem:[%s11511_s1 + $0x15c4] ss:$16 sps:$4 sm:$0xff]  }
 0x129   :  { %5402 = vmatprep.subr.bf16.mxu1 %v7852_v59  ;;  %v7948_v59 = vld [vmem:[%s11511_s1 + $0x17c4] ss:$16 sps:$4 sm:$0xff]  }
 0x12b   :  { %5360 = vmatpush2.bf16.msra.mxu0 %v7847_v60  ;;  %v7943_v60 = vld [vmem:[%s11511_s1 + $0x15c0] ss:$16 sps:$4 sm:$0xff]  }
 0x12c   :  { %5403 = vmatpush2.bf16.msra.mxu1 %v7850_v61  ;;  %5361 = vmatprep.subr.bf16.mxu0 %v7855_v62  ;;  %v7946_v61 = vld [vmem:[%s11511_s1 + $0x17c0] ss:$16 sps:$4 sm:$0xff]   ;;  %v7951_v62 = vld [vmem:[%s11511_s1 + $0x15a4] ss:$16 sps:$4 sm:$0xff]  }
 0x12d   :  { %5404 = vmatprep.subr.bf16.mxu1 %v7858_v63  ;;  %v7954_v63 = vld [vmem:[%s11511_s1 + $0x17a4] ss:$16 sps:$4 sm:$0xff]  }
 0x12f   :  { %5362 = vmatpush2.bf16.msra.mxu0 %v7853_v0  ;;  %v7949_v0 = vld [vmem:[%s11511_s1 + $0x15a0] ss:$16 sps:$4 sm:$0xff]  }
 0x130   :  { %5405 = vmatpush2.bf16.msra.mxu1 %v7856_v1  ;;  %5363 = vmatprep.subr.bf16.mxu0 %v7861_v2  ;;  %v7952_v1 = vld [vmem:[%s11511_s1 + $0x17a0] ss:$16 sps:$4 sm:$0xff]   ;;  %v7957_v2 = vld [vmem:[%s11511_s1 + $0x1584] ss:$16 sps:$4 sm:$0xff]  }
 0x131   :  { %5406 = vmatprep.subr.bf16.mxu1 %v7864_v3  ;;  %v7960_v3 = vld [vmem:[%s11511_s1 + $0x1784] ss:$16 sps:$4 sm:$0xff]  }
 0x133   :  { %5364 = vmatpush2.bf16.msra.mxu0 %v7859_v4  ;;  %v7955_v4 = vld [vmem:[%s11511_s1 + $0x1580] ss:$16 sps:$4 sm:$0xff]  }
 0x134   :  { %5407 = vmatpush2.bf16.msra.mxu1 %v7862_v5  ;;  %5365 = vmatprep.subr.bf16.mxu0 %v7867_v6  ;;  %v7958_v5 = vld [vmem:[%s11511_s1 + $0x1780] ss:$16 sps:$4 sm:$0xff]   ;;  %v7963_v6 = vld [vmem:[%s11511_s1 + $0x1564] ss:$16 sps:$4 sm:$0xff]  }
 0x135   :  { %5408 = vmatprep.subr.bf16.mxu1 %v7870_v7  ;;  %v7966_v7 = vld [vmem:[%s11511_s1 + $0x1764] ss:$16 sps:$4 sm:$0xff]  }
 0x137   :  { %5366 = vmatpush2.bf16.msra.mxu0 %v7865_v8  ;;  %v7961_v8 = vld [vmem:[%s11511_s1 + $0x1560] ss:$16 sps:$4 sm:$0xff]  }
 0x138   :  { %5409 = vmatpush2.bf16.msra.mxu1 %v7868_v9  ;;  %5367 = vmatprep.subr.bf16.mxu0 %v7873_v10  ;;  %v7964_v9 = vld [vmem:[%s11511_s1 + $0x1760] ss:$16 sps:$4 sm:$0xff]   ;;  %v7969_v10 = vld [vmem:[%s11511_s1 + $0x1544] ss:$16 sps:$4 sm:$0xff]  }
 0x139   :  { %5410 = vmatprep.subr.bf16.mxu1 %v7876_v11  ;;  %v7972_v11 = vld [vmem:[%s11511_s1 + $0x1744] ss:$16 sps:$4 sm:$0xff]  }
 0x13b   :  { %5368 = vmatpush2.bf16.msra.mxu0 %v7871_v12  ;;  %v7967_v12 = vld [vmem:[%s11511_s1 + $0x1540] ss:$16 sps:$4 sm:$0xff]  }
 0x13c   :  { %5411 = vmatpush2.bf16.msra.mxu1 %v7874_v13  ;;  %5369 = vmatprep.subr.bf16.mxu0 %v7879_v14  ;;  %v7970_v13 = vld [vmem:[%s11511_s1 + $0x1740] ss:$16 sps:$4 sm:$0xff]   ;;  %v7975_v14 = vld [vmem:[%s11511_s1 + $0x1524] ss:$16 sps:$4 sm:$0xff]  }
 0x13d   :  { %5412 = vmatprep.subr.bf16.mxu1 %v7882_v15  ;;  %v7978_v15 = vld [vmem:[%s11511_s1 + $0x1724] ss:$16 sps:$4 sm:$0xff]  }
 0x13f   :  { %5370 = vmatpush2.bf16.msra.mxu0 %v7877_v16  ;;  %v7973_v16 = vld [vmem:[%s11511_s1 + $0x1520] ss:$16 sps:$4 sm:$0xff]  }
 0x140   :  { %5413 = vmatpush2.bf16.msra.mxu1 %v7880_v17  ;;  %5425 = vmatprep.subr.bf16.mxu0 %v7891_v20  ;;  %v7976_v17 = vld [vmem:[%s11511_s1 + $0x1720] ss:$16 sps:$4 sm:$0xff]  }
 0x141   :  { %5468 = vmatprep.subr.bf16.mxu1 %v7894_v21  ;;  %v7979_v20 = vld [vmem:[%s11511_s1 + $0x1500] ss:$16 sps:$4 sm:$0xff]  }
 0x142   :  { %5372 = vmatmul.mubr.bf16.vlgmr.msra.gmra.mxu0 %v7883_v18  ;;  %v7981_v18 = vld [vmem:[%s11511_s1 + $0x1504] ss:$16 sps:$4 sm:$0xff]   ;;  %v7982_v21 = vld [vmem:[%s11511_s1 + $0x1700] ss:$16 sps:$4 sm:$0xff]  }
 0x143   :  { %5415 = vmatmul.mubr.bf16.vlgmr.msra.gmra.mxu1 %v7886_v19  ;;  %5426 = vmatpush1.bf16.msra.mxu0 %v7889_v22  ;;  %v7984_v19 = vld [vmem:[%s11511_s1 + $0x1704] ss:$16 sps:$4 sm:$0xff]  }
 0x144   :  { %5469 = vmatpush1.bf16.msra.mxu1 %v7892_v23  ;;  %5427 = vmatprep.subr.bf16.mxu0 %v7897_v24  ;;  %v7985_v22 = vld [vmem:[%s11512_s0 + $0x50] ss:$100 sps:$4 sm:$0xff]   ;;  %v7988_v23 = vld [vmem:[%s11512_s0 + $0x58] ss:$100 sps:$4 sm:$0xff]  }
 0x145   :  { %5470 = vmatprep.subr.bf16.mxu1 %v7900_v25  ;;  %5457 = vmatprep.mubr.bf16.mxu0 %v7987_v28  ;;  %v7993_v24 = vld [vmem:[%s11511_s1 + $0x18e4] ss:$16 sps:$4 sm:$0xff]   ;;  %v7996_v25 = vld [vmem:[%s11511_s1 + $0xec] ss:$16 sps:$4 sm:$0xff]  }
 0x146   :  { %5500 = vmatprep.mubr.bf16.mxu1 %v7990_v29  ;;  %v7999_v28 = vld [vmem:[%s11511_s1 + $0x18c4] ss:$16 sps:$4 sm:$0xff]   ;;  %v8002_v29 = vld [vmem:[%s11511_s1 + $0xcc] ss:$16 sps:$4 sm:$0xff]  }
 0x147   :  { %5428 = vmatpush1.bf16.msra.mxu0 %v7895_v26  ;;  %v7991_v26 = vld [vmem:[%s11511_s1 + $0x18e0] ss:$16 sps:$4 sm:$0xff]  }
 0x148   :  { %5471 = vmatpush1.bf16.msra.mxu1 %v7898_v27  ;;  %5429 = vmatprep.subr.bf16.mxu0 %v7903_v30  ;;  %v7994_v27 = vld [vmem:[%s11511_s1 + $0xe8] ss:$16 sps:$4 sm:$0xff]   ;;  %v7997_v30 = vld [vmem:[%s11511_s1 + $0x18c0] ss:$16 sps:$4 sm:$0xff]  }
 0x149   :  { %5472 = vmatprep.subr.bf16.mxu1 %v7906_v31  ;;  %v8000_v31 = vld [vmem:[%s11511_s1 + $0xc8] ss:$16 sps:$4 sm:$0xff]  }
 0x14b   :  { %5430 = vmatpush1.bf16.msra.mxu0 %v7901_v32  ;;  %v8005_v32 = vld [vmem:[%s11511_s1 + $0x18a4] ss:$16 sps:$4 sm:$0xff]  }
 0x14c   :  { %5473 = vmatpush1.bf16.msra.mxu1 %v7904_v33  ;;  %5431 = vmatprep.subr.bf16.mxu0 %v7909_v34  ;;  %v8008_v33 = vld [vmem:[%s11511_s1 + $0xac] ss:$16 sps:$4 sm:$0xff]   ;;  %v8003_v34 = vld [vmem:[%s11511_s1 + $0x18a0] ss:$16 sps:$4 sm:$0xff]  }
 0x14d   :  { %5474 = vmatprep.subr.bf16.mxu1 %v7912_v35  ;;  %v8006_v35 = vld [vmem:[%s11511_s1 + $0xa8] ss:$16 sps:$4 sm:$0xff]  }
 0x14f   :  { %5432 = vmatpush1.bf16.msra.mxu0 %v7907_v36  ;;  %v8673_v36 = vmov 0  }
 0x150   :  { %5475 = vmatpush1.bf16.msra.mxu1 %v7910_v37  ;;  %5433 = vmatprep.subr.bf16.mxu0 %v7915_v38  ;;  %v8648_v37 = vld [vmem:[%s11512_s0 + $0x4] ss:$100 sps:$4 sm:$0xff]  }
 0x151   :  { %5476 = vmatprep.subr.bf16.mxu1 %v7918_v39  ;;  %v8011_v38 = vld [vmem:[%s11511_s1 + $0x1884] ss:$16 sps:$4 sm:$0xff]   ;;  %v8014_v39 = vld [vmem:[%s11511_s1 + $0x8c] ss:$16 sps:$4 sm:$0xff]  }
 0x153   :  { %5434 = vmatpush1.bf16.msra.mxu0 %v7913_v40  ;;  %v8009_v40 = vld [vmem:[%s11511_s1 + $0x1880] ss:$16 sps:$4 sm:$0xff]  }
 0x154   :  { %5477 = vmatpush1.bf16.msra.mxu1 %v7916_v41  ;;  %5435 = vmatprep.subr.bf16.mxu0 %v7921_v42  ;;  %v8012_v41 = vld [vmem:[%s11511_s1 + $0x88] ss:$16 sps:$4 sm:$0xff]   ;;  %v8017_v42 = vld [vmem:[%s11511_s1 + $0x1864] ss:$16 sps:$4 sm:$0xff]  }
 0x155   :  { %5478 = vmatprep.subr.bf16.mxu1 %v7924_v43  ;;  %v8020_v43 = vld [vmem:[%s11511_s1 + $0x6c] ss:$16 sps:$4 sm:$0xff]  }
 0x157   :  { %5436 = vmatpush1.bf16.msra.mxu0 %v7919_v44  ;;  %v8015_v44 = vld [vmem:[%s11511_s1 + $0x1860] ss:$16 sps:$4 sm:$0xff]  }
 0x158   :  { %5479 = vmatpush1.bf16.msra.mxu1 %v7922_v45  ;;  %5437 = vmatprep.subr.bf16.mxu0 %v7927_v46  ;;  %v8018_v45 = vld [vmem:[%s11511_s1 + $0x68] ss:$16 sps:$4 sm:$0xff]   ;;  %v8023_v46 = vld [vmem:[%s11511_s1 + $0x1844] ss:$16 sps:$4 sm:$0xff]  }
 0x159   :  { %5480 = vmatprep.subr.bf16.mxu1 %v7930_v47  ;;  %v8026_v47 = vld [vmem:[%s11511_s1 + $0x4c] ss:$16 sps:$4 sm:$0xff]  }
 0x15b   :  { %5438 = vmatpush1.bf16.msra.mxu0 %v7925_v48  ;;  %v8021_v48 = vld [vmem:[%s11511_s1 + $0x1840] ss:$16 sps:$4 sm:$0xff]  }
 0x15c   :  { %5481 = vmatpush1.bf16.msra.mxu1 %v7928_v49  ;;  %5439 = vmatprep.subr.bf16.mxu0 %v7933_v50  ;;  %v8024_v49 = vld [vmem:[%s11511_s1 + $0x48] ss:$16 sps:$4 sm:$0xff]   ;;  %v8029_v50 = vld [vmem:[%s11511_s1 + $0x1824] ss:$16 sps:$4 sm:$0xff]  }
 0x15d   :  { %5482 = vmatprep.subr.bf16.mxu1 %v7936_v51  ;;  %v8032_v51 = vld [vmem:[%s11511_s1 + $0x2c] ss:$16 sps:$4 sm:$0xff]  }
 0x15f   :  { %5440 = vmatpush1.bf16.msra.mxu0 %v7931_v52  ;;  %v8027_v52 = vld [vmem:[%s11511_s1 + $0x1820] ss:$16 sps:$4 sm:$0xff]  }
 0x160   :  { %5483 = vmatpush1.bf16.msra.mxu1 %v7934_v53  ;;  %5441 = vmatprep.subr.bf16.mxu0 %v7939_v54  ;;  %v8030_v53 = vld [vmem:[%s11511_s1 + $0x28] ss:$16 sps:$4 sm:$0xff]   ;;  %v8035_v54 = vld [vmem:[%s11511_s1 + $0x1804] ss:$16 sps:$4 sm:$0xff]  }
 0x161   :  { %5484 = vmatprep.subr.bf16.mxu1 %v7942_v55  ;;  %v8038_v55 = vld [vmem:[%s11511_s1 + $0xc] ss:$16 sps:$4 sm:$0xff]  }
 0x163   :  { %5442 = vmatpush2.bf16.msra.mxu0 %v7937_v56  ;;  %v8033_v56 = vld [vmem:[%s11511_s1 + $0x1800] ss:$16 sps:$4 sm:$0xff]  }
 0x164   :  { %5485 = vmatpush2.bf16.msra.mxu1 %v7940_v57  ;;  %5443 = vmatprep.subr.bf16.mxu0 %v7945_v58  ;;  %v8036_v57 = vld [vmem:[%s11511_s1 + $0x8] ss:$16 sps:$4 sm:$0xff]   ;;  %v8039_v58 = vld [vmem:[%s11512_s0 + $0x60] ss:$100 sps:$4 sm:$0xff]  }
 0x165   :  { %5486 = vmatprep.subr.bf16.mxu1 %v7948_v59  ;;  %v8042_v59 = vld [vmem:[%s11511_s1 + $0x1ec] ss:$16 sps:$4 sm:$0xff]  }
 0x167   :  { %5444 = vmatpush2.bf16.msra.mxu0 %v7943_v60  ;;  %v8045_v60 = vld [vmem:[%s11511_s1 + $0x2ec] ss:$16 sps:$4 sm:$0xff]  }
 0x168   :  { %5487 = vmatpush2.bf16.msra.mxu1 %v7946_v61  ;;  %5445 = vmatprep.subr.bf16.mxu0 %v7951_v62  ;;  %v8040_v61 = vld [vmem:[%s11511_s1 + $0x1e8] ss:$16 sps:$4 sm:$0xff]  }
 0x169   :  { %5488 = vmatprep.subr.bf16.mxu1 %v7954_v63  ;;  %v8043_v62 = vld [vmem:[%s11511_s1 + $0x2e8] ss:$16 sps:$4 sm:$0xff]   ;;  %v8048_v63 = vld [vmem:[%s11511_s1 + $0x1cc] ss:$16 sps:$4 sm:$0xff]  }
 0x16b   :  { %5446 = vmatpush2.bf16.msra.mxu0 %v7949_v0  ;;  %v8051_v0 = vld [vmem:[%s11511_s1 + $0x2cc] ss:$16 sps:$4 sm:$0xff]  }
 0x16c   :  { %5489 = vmatpush2.bf16.msra.mxu1 %v7952_v1  ;;  %5447 = vmatprep.subr.bf16.mxu0 %v7957_v2  ;;  %v8046_v1 = vld [vmem:[%s11511_s1 + $0x1c8] ss:$16 sps:$4 sm:$0xff]  }
 0x16d   :  { %5490 = vmatprep.subr.bf16.mxu1 %v7960_v3  ;;  %v8049_v2 = vld [vmem:[%s11511_s1 + $0x2c8] ss:$16 sps:$4 sm:$0xff]   ;;  %v8054_v3 = vld [vmem:[%s11511_s1 + $0x1ac] ss:$16 sps:$4 sm:$0xff]  }
 0x16f   :  { %5448 = vmatpush2.bf16.msra.mxu0 %v7955_v4  ;;  %v8057_v4 = vld [vmem:[%s11511_s1 + $0x2ac] ss:$16 sps:$4 sm:$0xff]  }
 0x170   :  { %5491 = vmatpush2.bf16.msra.mxu1 %v7958_v5  ;;  %5449 = vmatprep.subr.bf16.mxu0 %v7963_v6  ;;  %v8649_v5 = vld [vmem:[%s11512_s0 + $0xc] ss:$100 sps:$4 sm:$0xff]   ;;  %v8052_v6 = vld [vmem:[%s11511_s1 + $0x1a8] ss:$16 sps:$4 sm:$0xff]  }
 0x171   :  { %5492 = vmatprep.subr.bf16.mxu1 %v7966_v7  ;;  %v8055_v7 = vld [vmem:[%s11511_s1 + $0x2a8] ss:$16 sps:$4 sm:$0xff]  }
 0x173   :  { %5450 = vmatpush2.bf16.msra.mxu0 %v7961_v8  ;;  %v8060_v8 = vld [vmem:[%s11511_s1 + $0x18c] ss:$16 sps:$4 sm:$0xff]  }
 0x174   :  { %5493 = vmatpush2.bf16.msra.mxu1 %v7964_v9  ;;  %5451 = vmatprep.subr.bf16.mxu0 %v7969_v10  ;;  %v8063_v9 = vld [vmem:[%s11511_s1 + $0x28c] ss:$16 sps:$4 sm:$0xff]   ;;  %v8058_v10 = vld [vmem:[%s11511_s1 + $0x188] ss:$16 sps:$4 sm:$0xff]  }
 0x175   :  { %5494 = vmatprep.subr.bf16.mxu1 %v7972_v11  ;;  %v8061_v11 = vld [vmem:[%s11511_s1 + $0x288] ss:$16 sps:$4 sm:$0xff]  }
 0x177   :  { %5452 = vmatpush2.bf16.msra.mxu0 %v7967_v12  ;;  %v8066_v12 = vld [vmem:[%s11511_s1 + $0x16c] ss:$16 sps:$4 sm:$0xff]  }
 0x178   :  { %5495 = vmatpush2.bf16.msra.mxu1 %v7970_v13  ;;  %5453 = vmatprep.subr.bf16.mxu0 %v7975_v14  ;;  %v8069_v13 = vld [vmem:[%s11511_s1 + $0x26c] ss:$16 sps:$4 sm:$0xff]   ;;  %v8064_v14 = vld [vmem:[%s11511_s1 + $0x168] ss:$16 sps:$4 sm:$0xff]  }
 0x179   :  { %5496 = vmatprep.subr.bf16.mxu1 %v7978_v15  ;;  %v8067_v15 = vld [vmem:[%s11511_s1 + $0x268] ss:$16 sps:$4 sm:$0xff]  }
 0x17b   :  { %5454 = vmatpush2.bf16.msra.mxu0 %v7973_v16  ;;  %v8072_v16 = vld [vmem:[%s11511_s1 + $0x14c] ss:$16 sps:$4 sm:$0xff]  }
 0x17c   :  { %5497 = vmatpush2.bf16.msra.mxu1 %v7976_v17  ;;  %5455 = vmatprep.subr.bf16.mxu0 %v7981_v18  ;;  %v8075_v17 = vld [vmem:[%s11511_s1 + $0x24c] ss:$16 sps:$4 sm:$0xff]   ;;  %v8070_v18 = vld [vmem:[%s11511_s1 + $0x148] ss:$16 sps:$4 sm:$0xff]  }
 0x17d   :  { %5498 = vmatprep.subr.bf16.mxu1 %v7984_v19  ;;  %v8073_v19 = vld [vmem:[%s11511_s1 + $0x248] ss:$16 sps:$4 sm:$0xff]  }
 0x17f   :  { %5456 = vmatpush2.bf16.msra.mxu0 %v7979_v20  ;;  %v8078_v20 = vld [vmem:[%s11511_s1 + $0x12c] ss:$16 sps:$4 sm:$0xff]  }
 0x180   :  { %5499 = vmatpush2.bf16.msra.mxu1 %v7982_v21  ;;  %5511 = vmatprep.subr.bf16.mxu0 %v7993_v24  ;;  %v8081_v21 = vld [vmem:[%s11511_s1 + $0x22c] ss:$16 sps:$4 sm:$0xff]  }
 0x181   :  { %5554 = vmatprep.subr.bf16.mxu1 %v7996_v25  ;;  %v8084_v24 = vld [vmem:[%s11511_s1 + $0x10c] ss:$16 sps:$4 sm:$0xff]  }
 0x182   :  { %5458 = vmatmul.mubr.bf16.vlgmr.msra.gmra.mxu0 %v7985_v22  ;;  %v8076_v22 = vld [vmem:[%s11511_s1 + $0x128] ss:$16 sps:$4 sm:$0xff]   ;;  %v8087_v25 = vld [vmem:[%s11511_s1 + $0x20c] ss:$16 sps:$4 sm:$0xff]  }
 0x183   :  { %5501 = vmatmul.mubr.bf16.vlgmr.msra.gmra.mxu1 %v7988_v23  ;;  %5512 = vmatpush1.bf16.msra.mxu0 %v7991_v26  ;;  %v8079_v23 = vld [vmem:[%s11511_s1 + $0x228] ss:$16 sps:$4 sm:$0xff]  }
 0x184   :  { %5555 = vmatpush1.bf16.msra.mxu1 %v7994_v27  ;;  %5513 = vmatprep.subr.bf16.mxu0 %v7999_v28  ;;  %v8082_v26 = vld [vmem:[%s11511_s1 + $0x108] ss:$16 sps:$4 sm:$0xff]   ;;  %v8090_v28 = vld [vmem:[%s11511_s1 + $0x3ec] ss:$16 sps:$4 sm:$0xff]  }
 0x185   :  { %5556 = vmatprep.subr.bf16.mxu1 %v8002_v29  ;;  %5543 = vmatprep.mubr.bf16.mxu0 %v8673_v36  ;;  %v8085_v27 = vld [vmem:[%s11511_s1 + $0x208] ss:$16 sps:$4 sm:$0xff]   ;;  %v8093_v29 = vld [vmem:[%s11511_s1 + $0x4ec] ss:$16 sps:$4 sm:$0xff]  }
 0x186   :  { %5586 = vmatprep.mubr.bf16.mxu1 %v8648_v37  ;;  %v8650_v37 = vld [vmem:[%s11512_s0] ss:$100 sps:$4 sm:$0xff]  }
 0x187   :  { %5514 = vmatpush1.bf16.msra.mxu0 %v7997_v30  ;;  %v8088_v30 = vld [vmem:[%s11511_s1 + $0x3e8] ss:$16 sps:$4 sm:$0xff]  }
 0x188   :  { %5557 = vmatpush1.bf16.msra.mxu1 %v8000_v31  ;;  %5515 = vmatprep.subr.bf16.mxu0 %v8005_v32  ;;  %v8091_v31 = vld [vmem:[%s11511_s1 + $0x4e8] ss:$16 sps:$4 sm:$0xff]   ;;  %v8096_v32 = vld [vmem:[%s11511_s1 + $0x3cc] ss:$16 sps:$4 sm:$0xff]  }
 0x189   :  { %5558 = vmatprep.subr.bf16.mxu1 %v8008_v33  ;;  %v8099_v33 = vld [vmem:[%s11511_s1 + $0x4cc] ss:$16 sps:$4 sm:$0xff]  }
 0x18b   :  { %5516 = vmatpush1.bf16.msra.mxu0 %v8003_v34  ;;  %v8094_v34 = vld [vmem:[%s11511_s1 + $0x3c8] ss:$16 sps:$4 sm:$0xff]  }
 0x18c   :  { %5559 = vmatpush1.bf16.msra.mxu1 %v8006_v35  ;;  %5517 = vmatprep.subr.bf16.mxu0 %v8011_v38  ;;  %v8097_v35 = vld [vmem:[%s11511_s1 + $0x4c8] ss:$16 sps:$4 sm:$0xff]   ;;  %v8102_v38 = vld [vmem:[%s11511_s1 + $0x3ac] ss:$16 sps:$4 sm:$0xff]  }
 0x18d   :  { %5560 = vmatprep.subr.bf16.mxu1 %v8014_v39  ;;  %v8105_v39 = vld [vmem:[%s11511_s1 + $0x4ac] ss:$16 sps:$4 sm:$0xff]  }
 0x18f   :  { %5518 = vmatpush1.bf16.msra.mxu0 %v8009_v40  ;;  %v8100_v40 = vld [vmem:[%s11511_s1 + $0x3a8] ss:$16 sps:$4 sm:$0xff]  }
 0x190   :  { %5561 = vmatpush1.bf16.msra.mxu1 %v8012_v41  ;;  %5519 = vmatprep.subr.bf16.mxu0 %v8017_v42  ;;  %v8103_v41 = vld [vmem:[%s11511_s1 + $0x4a8] ss:$16 sps:$4 sm:$0xff]  }
 0x191   :  { %5562 = vmatprep.subr.bf16.mxu1 %v8020_v43  ;;  %v8651_v42 = vld [vmem:[%s11512_s0 + $0x14] ss:$100 sps:$4 sm:$0xff]   ;;  %v8108_v43 = vld [vmem:[%s11511_s1 + $0x38c] ss:$16 sps:$4 sm:$0xff]  }
 0x193   :  { %5520 = vmatpush1.bf16.msra.mxu0 %v8015_v44  ;;  %v8111_v44 = vld [vmem:[%s11511_s1 + $0x48c] ss:$16 sps:$4 sm:$0xff]  }
 0x194   :  { %5563 = vmatpush1.bf16.msra.mxu1 %v8018_v45  ;;  %5521 = vmatprep.subr.bf16.mxu0 %v8023_v46  ;;  %v8106_v45 = vld [vmem:[%s11511_s1 + $0x388] ss:$16 sps:$4 sm:$0xff]  }
 0x195   :  { %5564 = vmatprep.subr.bf16.mxu1 %v8026_v47  ;;  %v8109_v46 = vld [vmem:[%s11511_s1 + $0x488] ss:$16 sps:$4 sm:$0xff]   ;;  %v8114_v47 = vld [vmem:[%s11511_s1 + $0x36c] ss:$16 sps:$4 sm:$0xff]  }
 0x197   :  { %5522 = vmatpush1.bf16.msra.mxu0 %v8021_v48  ;;  %v8117_v48 = vld [vmem:[%s11511_s1 + $0x46c] ss:$16 sps:$4 sm:$0xff]  }
 0x198   :  { %5565 = vmatpush1.bf16.msra.mxu1 %v8024_v49  ;;  %5523 = vmatprep.subr.bf16.mxu0 %v8029_v50  ;;  %v8112_v49 = vld [vmem:[%s11511_s1 + $0x368] ss:$16 sps:$4 sm:$0xff]  }
 0x199   :  { %5566 = vmatprep.subr.bf16.mxu1 %v8032_v51  ;;  %v8115_v50 = vld [vmem:[%s11511_s1 + $0x468] ss:$16 sps:$4 sm:$0xff]   ;;  %v8120_v51 = vld [vmem:[%s11511_s1 + $0x34c] ss:$16 sps:$4 sm:$0xff]  }
 0x19b   :  { %5524 = vmatpush1.bf16.msra.mxu0 %v8027_v52  ;;  %v8123_v52 = vld [vmem:[%s11511_s1 + $0x44c] ss:$16 sps:$4 sm:$0xff]  }
 0x19c   :  { %5567 = vmatpush1.bf16.msra.mxu1 %v8030_v53  ;;  %5525 = vmatprep.subr.bf16.mxu0 %v8035_v54  ;;  %v8118_v53 = vld [vmem:[%s11511_s1 + $0x348] ss:$16 sps:$4 sm:$0xff]  }
 0x19d   :  { %5568 = vmatprep.subr.bf16.mxu1 %v8038_v55  ;;  %v8121_v54 = vld [vmem:[%s11511_s1 + $0x448] ss:$16 sps:$4 sm:$0xff]   ;;  %v8126_v55 = vld [vmem:[%s11511_s1 + $0x32c] ss:$16 sps:$4 sm:$0xff]  }
 0x19f   :  { %5526 = vmatpush1.bf16.msra.mxu0 %v8033_v56  ;;  %v8129_v56 = vld [vmem:[%s11511_s1 + $0x42c] ss:$16 sps:$4 sm:$0xff]  }
 0x1a0   :  { %5569 = vmatpush1.bf16.msra.mxu1 %v8036_v57  ;;  %5597 = vmatprep.subr.bf16.mxu0 %v8045_v60  ;;  %v8124_v57 = vld [vmem:[%s11511_s1 + $0x328] ss:$16 sps:$4 sm:$0xff]   ;;  %v8135_v60 = vld [vmem:[%s11511_s1 + $0x40c] ss:$16 sps:$4 sm:$0xff]  }
 0x1a1   :  { %5570 = vmatprep.subr.bf16.mxu1 %v8042_v59  ;;  %v8132_v59 = vld [vmem:[%s11511_s1 + $0x30c] ss:$16 sps:$4 sm:$0xff]  }
 0x1a2   :  { %5544 = vmatmul.mubr.bf16.vlgmr.msra.gmra.mxu0 %v8039_v58  ;;  %v8127_v58 = vld [vmem:[%s11511_s1 + $0x428] ss:$16 sps:$4 sm:$0xff]  }
 0x1a3   :  { %5598 = vmatpush1.bf16.msra.mxu0 %v8043_v62  ;;  %5629 = vmatprep.mubr.bf16.mxu0 %v8649_v5  ;;  %v8133_v62 = vld [vmem:[%s11511_s1 + $0x408] ss:$16 sps:$4 sm:$0xff]  }
 0x1a4   :  { %5571 = vmatpush2.bf16.msra.mxu1 %v8040_v61  ;;  %5599 = vmatprep.subr.bf16.mxu0 %v8051_v0  ;;  %v8130_v61 = vld [vmem:[%s11511_s1 + $0x308] ss:$16 sps:$4 sm:$0xff]   ;;  %v8141_v0 = vld [vmem:[%s11511_s1 + $0x6ec] ss:$16 sps:$4 sm:$0xff]  }
 0x1a5   :  { %5572 = vmatprep.subr.bf16.mxu1 %v8048_v63  ;;  %v8138_v63 = vld [vmem:[%s11511_s1 + $0x5ec] ss:$16 sps:$4 sm:$0xff]   ;;  %v8142_v5 = vld [vmem:[%s11511_s1 + $0x5c8] ss:$16 sps:$4 sm:$0xff]  }
 0x1a7   :  { %5600 = vmatpush1.bf16.msra.mxu0 %v8049_v2  ;;  %v8139_v2 = vld [vmem:[%s11511_s1 + $0x6e8] ss:$16 sps:$4 sm:$0xff]  }
 0x1a8   :  { %5573 = vmatpush2.bf16.msra.mxu1 %v8046_v1  ;;  %5601 = vmatprep.subr.bf16.mxu0 %v8057_v4  ;;  %v8136_v1 = vld [vmem:[%s11511_s1 + $0x5e8] ss:$16 sps:$4 sm:$0xff]   ;;  %v8147_v4 = vld [vmem:[%s11511_s1 + $0x6cc] ss:$16 sps:$4 sm:$0xff]  }
 0x1a9   :  { %5574 = vmatprep.subr.bf16.mxu1 %v8054_v3  ;;  %v8144_v3 = vld [vmem:[%s11511_s1 + $0x5cc] ss:$16 sps:$4 sm:$0xff]  }
 0x1ab   :  { %5602 = vmatpush1.bf16.msra.mxu0 %v8055_v7  ;;  %v8652_v7 = vld [vmem:[%s11512_s0 + $0x8] ss:$100 sps:$4 sm:$0xff]  }
 0x1ac   :  { %5575 = vmatpush2.bf16.msra.mxu1 %v8052_v6  ;;  %5603 = vmatprep.subr.bf16.mxu0 %v8063_v9  ;;  %v8145_v6 = vld [vmem:[%s11511_s1 + $0x6c8] ss:$16 sps:$4 sm:$0xff]   ;;  %v8153_v9 = vld [vmem:[%s11511_s1 + $0x6ac] ss:$16 sps:$4 sm:$0xff]  }
 0x1ad   :  { %5576 = vmatprep.subr.bf16.mxu1 %v8060_v8  ;;  %v8150_v8 = vld [vmem:[%s11511_s1 + $0x5ac] ss:$16 sps:$4 sm:$0xff]  }
 0x1af   :  { %5604 = vmatpush1.bf16.msra.mxu0 %v8061_v11  ;;  %v8151_v11 = vld [vmem:[%s11511_s1 + $0x6a8] ss:$16 sps:$4 sm:$0xff]  }
 0x1b0   :  { %5577 = vmatpush2.bf16.msra.mxu1 %v8058_v10  ;;  %5605 = vmatprep.subr.bf16.mxu0 %v8069_v13  ;;  %v8148_v10 = vld [vmem:[%s11511_s1 + $0x5a8] ss:$16 sps:$4 sm:$0xff]   ;;  %v8156_v13 = vld [vmem:[%s11511_s1 + $0x58c] ss:$16 sps:$4 sm:$0xff]  }
 0x1b1   :  { %5578 = vmatprep.subr.bf16.mxu1 %v8066_v12  ;;  %v8653_v12 = vld [vmem:[%s11512_s0 + $0x1c] ss:$100 sps:$4 sm:$0xff]  }
 0x1b3   :  { %5606 = vmatpush1.bf16.msra.mxu0 %v8067_v15  ;;  %v8154_v15 = vld [vmem:[%s11511_s1 + $0x588] ss:$16 sps:$4 sm:$0xff]  }
 0x1b4   :  { %5579 = vmatpush2.bf16.msra.mxu1 %v8064_v14  ;;  %5607 = vmatprep.subr.bf16.mxu0 %v8075_v17  ;;  %v8159_v14 = vld [vmem:[%s11511_s1 + $0x68c] ss:$16 sps:$4 sm:$0xff]  }
 0x1b5   :  { %5580 = vmatprep.subr.bf16.mxu1 %v8072_v16  ;;  %v8157_v16 = vld [vmem:[%s11511_s1 + $0x688] ss:$16 sps:$4 sm:$0xff]   ;;  %v8162_v17 = vld [vmem:[%s11511_s1 + $0x56c] ss:$16 sps:$4 sm:$0xff]  }
 0x1b7   :  { %5608 = vmatpush1.bf16.msra.mxu0 %v8073_v19  ;;  %v8160_v19 = vld [vmem:[%s11511_s1 + $0x568] ss:$16 sps:$4 sm:$0xff]  }
 0x1b8   :  { %5581 = vmatpush2.bf16.msra.mxu1 %v8070_v18  ;;  %5609 = vmatprep.subr.bf16.mxu0 %v8081_v21  ;;  %v8165_v18 = vld [vmem:[%s11511_s1 + $0x66c] ss:$16 sps:$4 sm:$0xff]  }
 0x1b9   :  { %5582 = vmatprep.subr.bf16.mxu1 %v8078_v20  ;;  %v8163_v20 = vld [vmem:[%s11511_s1 + $0x668] ss:$16 sps:$4 sm:$0xff]   ;;  %v8168_v21 = vld [vmem:[%s11511_s1 + $0x54c] ss:$16 sps:$4 sm:$0xff]  }
 0x1bb   :  { %5610 = vmatpush1.bf16.msra.mxu0 %v8079_v23  ;;  %v8166_v23 = vld [vmem:[%s11511_s1 + $0x548] ss:$16 sps:$4 sm:$0xff]  }
 0x1bc   :  { %5583 = vmatpush2.bf16.msra.mxu1 %v8076_v22  ;;  %5611 = vmatprep.subr.bf16.mxu0 %v8087_v25  ;;  %v8171_v22 = vld [vmem:[%s11511_s1 + $0x64c] ss:$16 sps:$4 sm:$0xff]  }
 0x1bd   :  { %5584 = vmatprep.subr.bf16.mxu1 %v8084_v24  ;;  %v8169_v24 = vld [vmem:[%s11511_s1 + $0x648] ss:$16 sps:$4 sm:$0xff]   ;;  %v8174_v25 = vld [vmem:[%s11511_s1 + $0x52c] ss:$16 sps:$4 sm:$0xff]  }
 0x1bf   :  { %5612 = vmatpush1.bf16.msra.mxu0 %v8085_v27  ;;  %v8172_v27 = vld [vmem:[%s11511_s1 + $0x528] ss:$16 sps:$4 sm:$0xff]  }
 0x1c0   :  { %5585 = vmatpush2.bf16.msra.mxu1 %v8082_v26  ;;  %5613 = vmatprep.subr.bf16.mxu0 %v8090_v28  ;;  %v8177_v26 = vld [vmem:[%s11511_s1 + $0x62c] ss:$16 sps:$4 sm:$0xff]   ;;  %v8175_v28 = vld [vmem:[%s11511_s1 + $0x628] ss:$16 sps:$4 sm:$0xff]  }
 0x1c1   :  { %5640 = vmatprep.subr.bf16.mxu1 %v8093_v29  ;;  %v8180_v29 = vld [vmem:[%s11511_s1 + $0x50c] ss:$16 sps:$4 sm:$0xff]  }
 0x1c3   :  { %5587 = vmatmul.mubr.bf16.vlgmr.msra.gmra.mxu1 %v8650_v37  ;;  %5614 = vmatpush2.bf16.msra.mxu0 %v8088_v30  ;;  %v8183_v30 = vld [vmem:[%s11511_s1 + $0x60c] ss:$16 sps:$4 sm:$0xff]   ;;  %v8187_v37 = vld [vmem:[%s11511_s1 + $0x8e8] ss:$16 sps:$4 sm:$0xff]  }
 0x1c4   :  { %5641 = vmatpush1.bf16.msra.mxu1 %v8091_v31  ;;  %5615 = vmatprep.subr.bf16.mxu0 %v8096_v32  ;;  %v8178_v31 = vld [vmem:[%s11511_s1 + $0x508] ss:$16 sps:$4 sm:$0xff]  }
 0x1c5   :  { %5642 = vmatprep.subr.bf16.mxu1 %v8099_v33  ;;  %5672 = vmatprep.mubr.bf16.mxu1 %v8651_v42  ;;  %v8181_v32 = vld [vmem:[%s11511_s1 + $0x608] ss:$16 sps:$4 sm:$0xff]   ;;  %v8186_v33 = vld [vmem:[%s11511_s1 + $0x7ec] ss:$16 sps:$4 sm:$0xff]  }
 0x1c6   :  { %v8193_v42 = vld [vmem:[%s11511_s1 + $0x8c8] ss:$16 sps:$4 sm:$0xff]  }
 0x1c7   :  { %5616 = vmatpush2.bf16.msra.mxu0 %v8094_v34  ;;  %v8189_v34 = vld [vmem:[%s11511_s1 + $0x8ec] ss:$16 sps:$4 sm:$0xff]  }
 0x1c8   :  { %5643 = vmatpush1.bf16.msra.mxu1 %v8097_v35  ;;  %5617 = vmatprep.subr.bf16.mxu0 %v8102_v38  ;;  %v8184_v35 = vld [vmem:[%s11511_s1 + $0x7e8] ss:$16 sps:$4 sm:$0xff]   ;;  %v8192_v38 = vld [vmem:[%s11511_s1 + $0x7cc] ss:$16 sps:$4 sm:$0xff]  }
 0x1c9   :  { %5644 = vmatprep.subr.bf16.mxu1 %v8105_v39  ;;  %v8195_v39 = vld [vmem:[%s11511_s1 + $0x8cc] ss:$16 sps:$4 sm:$0xff]  }
 0x1cb   :  { %5618 = vmatpush2.bf16.msra.mxu0 %v8100_v40  ;;  %v8654_v40 = vld [vmem:[%s11512_s0 + $0x10] ss:$100 sps:$4 sm:$0xff]  }
 0x1cc   :  { %5645 = vmatpush1.bf16.msra.mxu1 %v8103_v41  ;;  %5619 = vmatprep.subr.bf16.mxu0 %v8108_v43  ;;  %v8190_v41 = vld [vmem:[%s11511_s1 + $0x7c8] ss:$16 sps:$4 sm:$0xff]   ;;  %v8198_v43 = vld [vmem:[%s11511_s1 + $0x7ac] ss:$16 sps:$4 sm:$0xff]  }
 0x1cd   :  { %5646 = vmatprep.subr.bf16.mxu1 %v8111_v44  ;;  %v8201_v44 = vld [vmem:[%s11511_s1 + $0x8ac] ss:$16 sps:$4 sm:$0xff]  }
 0x1cf   :  { %5620 = vmatpush2.bf16.msra.mxu0 %v8106_v45  ;;  %v8655_v45 = vld [vmem:[%s11512_s0 + $0x24] ss:$100 sps:$4 sm:$0xff]  }
 0x1d0   :  { %5647 = vmatpush1.bf16.msra.mxu1 %v8109_v46  ;;  %5621 = vmatprep.subr.bf16.mxu0 %v8114_v47  ;;  %v8196_v46 = vld [vmem:[%s11511_s1 + $0x7a8] ss:$16 sps:$4 sm:$0xff]  }
 0x1d1   :  { %5648 = vmatprep.subr.bf16.mxu1 %v8117_v48  ;;  %v8199_v47 = vld [vmem:[%s11511_s1 + $0x8a8] ss:$16 sps:$4 sm:$0xff]   ;;  %v8204_v48 = vld [vmem:[%s11511_s1 + $0x78c] ss:$16 sps:$4 sm:$0xff]  }
 0x1d3   :  { %5622 = vmatpush2.bf16.msra.mxu0 %v8112_v49  ;;  %v8207_v49 = vld [vmem:[%s11511_s1 + $0x88c] ss:$16 sps:$4 sm:$0xff]  }
 0x1d4   :  { %5649 = vmatpush1.bf16.msra.mxu1 %v8115_v50  ;;  %5623 = vmatprep.subr.bf16.mxu0 %v8120_v51  ;;  %v8202_v50 = vld [vmem:[%s11511_s1 + $0x788] ss:$16 sps:$4 sm:$0xff]  }
 0x1d5   :  { %5650 = vmatprep.subr.bf16.mxu1 %v8123_v52  ;;  %v8205_v51 = vld [vmem:[%s11511_s1 + $0x888] ss:$16 sps:$4 sm:$0xff]   ;;  %v8210_v52 = vld [vmem:[%s11511_s1 + $0x76c] ss:$16 sps:$4 sm:$0xff]  }
 0x1d7   :  { %5624 = vmatpush2.bf16.msra.mxu0 %v8118_v53  ;;  %v8213_v53 = vld [vmem:[%s11511_s1 + $0x86c] ss:$16 sps:$4 sm:$0xff]  }
 0x1d8   :  { %5651 = vmatpush1.bf16.msra.mxu1 %v8121_v54  ;;  %5625 = vmatprep.subr.bf16.mxu0 %v8126_v55  ;;  %v8208_v54 = vld [vmem:[%s11511_s1 + $0x768] ss:$16 sps:$4 sm:$0xff]  }
 0x1d9   :  { %5652 = vmatprep.subr.bf16.mxu1 %v8129_v56  ;;  %v8211_v55 = vld [vmem:[%s11511_s1 + $0x868] ss:$16 sps:$4 sm:$0xff]   ;;  %v8216_v56 = vld [vmem:[%s11511_s1 + $0x74c] ss:$16 sps:$4 sm:$0xff]  }
 0x1db   :  { %5626 = vmatpush2.bf16.msra.mxu0 %v8124_v57  ;;  %v8219_v57 = vld [vmem:[%s11511_s1 + $0x84c] ss:$16 sps:$4 sm:$0xff]  }
 0x1dc   :  { %5653 = vmatpush1.bf16.msra.mxu1 %v8127_v58  ;;  %5627 = vmatprep.subr.bf16.mxu0 %v8132_v59  ;;  %v8214_v58 = vld [vmem:[%s11511_s1 + $0x748] ss:$16 sps:$4 sm:$0xff]  }
 0x1dd   :  { %5654 = vmatprep.subr.bf16.mxu1 %v8135_v60  ;;  %v8217_v59 = vld [vmem:[%s11511_s1 + $0x848] ss:$16 sps:$4 sm:$0xff]   ;;  %v8222_v60 = vld [vmem:[%s11511_s1 + $0x72c] ss:$16 sps:$4 sm:$0xff]  }
 0x1df   :  { %5628 = vmatpush2.bf16.msra.mxu0 %v8130_v61  ;;  %v8225_v61 = vld [vmem:[%s11511_s1 + $0x82c] ss:$16 sps:$4 sm:$0xff]  }
 0x1e0   :  { %5655 = vmatpush1.bf16.msra.mxu1 %v8133_v62  ;;  %5683 = vmatprep.subr.bf16.mxu0 %v8141_v0  ;;  %v8220_v62 = vld [vmem:[%s11511_s1 + $0x728] ss:$16 sps:$4 sm:$0xff]   ;;  %v8228_v0 = vld [vmem:[%s11511_s1 + $0x70c] ss:$16 sps:$4 sm:$0xff]  }
 0x1e1   :  { %5656 = vmatprep.subr.bf16.mxu1 %v8138_v63  ;;  %v8223_v63 = vld [vmem:[%s11511_s1 + $0x828] ss:$16 sps:$4 sm:$0xff]  }
 0x1e2   :  { %5630 = vmatmul.mubr.bf16.vlgmr.msra.gmra.mxu0 %v8652_v7  ;;  %v8235_v7 = vld [vmem:[%s11511_s1 + $0xae8] ss:$16 sps:$4 sm:$0xff]  }
 0x1e3   :  { %5684 = vmatpush1.bf16.msra.mxu0 %v8139_v2  ;;  %5715 = vmatprep.mubr.bf16.mxu0 %v8653_v12  ;;  %v8226_v2 = vld [vmem:[%s11511_s1 + $0x708] ss:$16 sps:$4 sm:$0xff]  }
 0x1e4   :  { %5657 = vmatpush2.bf16.msra.mxu1 %v8136_v1  ;;  %5685 = vmatprep.subr.bf16.mxu0 %v8147_v4  ;;  %v8231_v1 = vld [vmem:[%s11511_s1 + $0x80c] ss:$16 sps:$4 sm:$0xff]   ;;  %v8241_v12 = vld [vmem:[%s11511_s1 + $0xac8] ss:$16 sps:$4 sm:$0xff]  }
 0x1e5   :  { %5658 = vmatprep.subr.bf16.mxu1 %v8144_v3  ;;  %v8229_v3 = vld [vmem:[%s11511_s1 + $0x808] ss:$16 sps:$4 sm:$0xff]   ;;  %v8234_v4 = vld [vmem:[%s11511_s1 + $0x9ec] ss:$16 sps:$4 sm:$0xff]  }
 0x1e7   :  { %5686 = vmatpush1.bf16.msra.mxu0 %v8145_v6  ;;  %v8232_v6 = vld [vmem:[%s11511_s1 + $0x9e8] ss:$16 sps:$4 sm:$0xff]  }
 0x1e8   :  { %5659 = vmatpush2.bf16.msra.mxu1 %v8142_v5  ;;  %5687 = vmatprep.subr.bf16.mxu0 %v8153_v9  ;;  %v8237_v5 = vld [vmem:[%s11511_s1 + $0xaec] ss:$16 sps:$4 sm:$0xff]  }
 0x1e9   :  { %5660 = vmatprep.subr.bf16.mxu1 %v8150_v8  ;;  %v8240_v8 = vld [vmem:[%s11511_s1 + $0x9cc] ss:$16 sps:$4 sm:$0xff]  }
 0x1ea   :  { %v8243_v9 = vld [vmem:[%s11511_s1 + $0xacc] ss:$16 sps:$4 sm:$0xff]  }
 0x1eb   :  { %5688 = vmatpush1.bf16.msra.mxu0 %v8151_v11  ;;  %v8238_v11 = vld [vmem:[%s11511_s1 + $0x9c8] ss:$16 sps:$4 sm:$0xff]  }
 0x1ec   :  { %5661 = vmatpush2.bf16.msra.mxu1 %v8148_v10  ;;  %5689 = vmatprep.subr.bf16.mxu0 %v8159_v14  ;;  %v8656_v10 = vld [vmem:[%s11512_s0 + $0x18] ss:$100 sps:$4 sm:$0xff]  }
 0x1ed   :  { %5662 = vmatprep.subr.bf16.mxu1 %v8156_v13  ;;  %v8246_v13 = vld [vmem:[%s11511_s1 + $0x9ac] ss:$16 sps:$4 sm:$0xff]  }
 0x1ee   :  { %v8249_v14 = vld [vmem:[%s11511_s1 + $0xaac] ss:$16 sps:$4 sm:$0xff]  }
 0x1ef   :  { %5690 = vmatpush1.bf16.msra.mxu0 %v8157_v16  ;;  %v8244_v16 = vld [vmem:[%s11511_s1 + $0x9a8] ss:$16 sps:$4 sm:$0xff]  }
 0x1f0   :  { %5663 = vmatpush2.bf16.msra.mxu1 %v8154_v15  ;;  %5691 = vmatprep.subr.bf16.mxu0 %v8165_v18  ;;  %v8657_v15 = vld [vmem:[%s11512_s0 + $0x2c] ss:$100 sps:$4 sm:$0xff]  }
 0x1f1   :  { %5664 = vmatprep.subr.bf16.mxu1 %v8162_v17  ;;  %v8247_v17 = vld [vmem:[%s11511_s1 + $0xaa8] ss:$16 sps:$4 sm:$0xff]   ;;  %v8252_v18 = vld [vmem:[%s11511_s1 + $0x98c] ss:$16 sps:$4 sm:$0xff]  }
 0x1f3   :  { %5692 = vmatpush1.bf16.msra.mxu0 %v8163_v20  ;;  %v8250_v20 = vld [vmem:[%s11511_s1 + $0x988] ss:$16 sps:$4 sm:$0xff]  }
 0x1f4   :  { %5665 = vmatpush2.bf16.msra.mxu1 %v8160_v19  ;;  %5693 = vmatprep.subr.bf16.mxu0 %v8171_v22  ;;  %v8255_v19 = vld [vmem:[%s11511_s1 + $0xa8c] ss:$16 sps:$4 sm:$0xff]  }
 0x1f5   :  { %5666 = vmatprep.subr.bf16.mxu1 %v8168_v21  ;;  %v8253_v21 = vld [vmem:[%s11511_s1 + $0xa88] ss:$16 sps:$4 sm:$0xff]   ;;  %v8258_v22 = vld [vmem:[%s11511_s1 + $0x96c] ss:$16 sps:$4 sm:$0xff]  }
 0x1f7   :  { %5694 = vmatpush1.bf16.msra.mxu0 %v8169_v24  ;;  %v8256_v24 = vld [vmem:[%s11511_s1 + $0x968] ss:$16 sps:$4 sm:$0xff]  }
 0x1f8   :  { %5667 = vmatpush2.bf16.msra.mxu1 %v8166_v23  ;;  %5695 = vmatprep.subr.bf16.mxu0 %v8177_v26  ;;  %v8261_v23 = vld [vmem:[%s11511_s1 + $0xa6c] ss:$16 sps:$4 sm:$0xff]  }
 0x1f9   :  { %5668 = vmatprep.subr.bf16.mxu1 %v8174_v25  ;;  %v8259_v25 = vld [vmem:[%s11511_s1 + $0xa68] ss:$16 sps:$4 sm:$0xff]   ;;  %v8264_v26 = vld [vmem:[%s11511_s1 + $0x94c] ss:$16 sps:$4 sm:$0xff]  }
 0x1fb   :  { %5696 = vmatpush1.bf16.msra.mxu0 %v8175_v28  ;;  %v8262_v28 = vld [vmem:[%s11511_s1 + $0x948] ss:$16 sps:$4 sm:$0xff]  }
 0x1fc   :  { %5669 = vmatpush2.bf16.msra.mxu1 %v8172_v27  ;;  %5697 = vmatprep.subr.bf16.mxu0 %v8183_v30  ;;  %v8267_v27 = vld [vmem:[%s11511_s1 + $0xa4c] ss:$16 sps:$4 sm:$0xff]  }
 0x1fd   :  { %5670 = vmatprep.subr.bf16.mxu1 %v8180_v29  ;;  %v8265_v29 = vld [vmem:[%s11511_s1 + $0xa48] ss:$16 sps:$4 sm:$0xff]   ;;  %v8270_v30 = vld [vmem:[%s11511_s1 + $0x92c] ss:$16 sps:$4 sm:$0xff]  }
 0x1ff   :  { %5698 = vmatpush1.bf16.msra.mxu0 %v8181_v32  ;;  %v8268_v32 = vld [vmem:[%s11511_s1 + $0x928] ss:$16 sps:$4 sm:$0xff]  }
 0x200   :  { %5671 = vmatpush2.bf16.msra.mxu1 %v8178_v31  ;;  %5699 = vmatprep.subr.bf16.mxu0 %v8186_v33  ;;  %v8273_v31 = vld [vmem:[%s11511_s1 + $0xa2c] ss:$16 sps:$4 sm:$0xff]   ;;  %v8271_v33 = vld [vmem:[%s11511_s1 + $0xa28] ss:$16 sps:$4 sm:$0xff]  }
 0x201   :  { %5726 = vmatprep.subr.bf16.mxu1 %v8189_v34  ;;  %v8276_v34 = vld [vmem:[%s11511_s1 + $0x90c] ss:$16 sps:$4 sm:$0xff]  }
 0x203   :  { %5673 = vmatmul.mubr.bf16.vlgmr.msra.gmra.mxu1 %v8654_v40  ;;  %5700 = vmatpush2.bf16.msra.mxu0 %v8184_v35  ;;  %v8279_v35 = vld [vmem:[%s11511_s1 + $0xa0c] ss:$16 sps:$4 sm:$0xff]  }
 0x204   :  { %5727 = vmatpush1.bf16.msra.mxu1 %v8187_v37  ;;  %5701 = vmatprep.subr.bf16.mxu0 %v8192_v38  ;;  %v8274_v37 = vld [vmem:[%s11511_s1 + $0x908] ss:$16 sps:$4 sm:$0xff]   ;;  %v8285_v40 = vld [vmem:[%s11511_s1 + $0xcec] ss:$16 sps:$4 sm:$0xff]  }
 0x205   :  { %5728 = vmatprep.subr.bf16.mxu1 %v8195_v39  ;;  %5758 = vmatprep.mubr.bf16.mxu1 %v8655_v45  ;;  %v8277_v38 = vld [vmem:[%s11511_s1 + $0xa08] ss:$16 sps:$4 sm:$0xff]   ;;  %v8282_v39 = vld [vmem:[%s11511_s1 + $0xbec] ss:$16 sps:$4 sm:$0xff]   ;;  %v8658_v45 = vld [vmem:[%s11512_s0 + $0x20] ss:$100 sps:$4 sm:$0xff]  }
 0x207   :  { %5702 = vmatpush2.bf16.msra.mxu0 %v8190_v41  ;;  %v8280_v41 = vld [vmem:[%s11511_s1 + $0xbe8] ss:$16 sps:$4 sm:$0xff]  }
 0x208   :  { %5729 = vmatpush1.bf16.msra.mxu1 %v8193_v42  ;;  %5703 = vmatprep.subr.bf16.mxu0 %v8198_v43  ;;  %v8283_v42 = vld [vmem:[%s11511_s1 + $0xce8] ss:$16 sps:$4 sm:$0xff]   ;;  %v8288_v43 = vld [vmem:[%s11511_s1 + $0xbcc] ss:$16 sps:$4 sm:$0xff]  }
 0x209   :  { %5730 = vmatprep.subr.bf16.mxu1 %v8201_v44  ;;  %v8291_v44 = vld [vmem:[%s11511_s1 + $0xccc] ss:$16 sps:$4 sm:$0xff]  }
 0x20b   :  { %5704 = vmatpush2.bf16.msra.mxu0 %v8196_v46  ;;  %v8286_v46 = vld [vmem:[%s11511_s1 + $0xbc8] ss:$16 sps:$4 sm:$0xff]  }
 0x20c   :  { %5731 = vmatpush1.bf16.msra.mxu1 %v8199_v47  ;;  %5705 = vmatprep.subr.bf16.mxu0 %v8204_v48  ;;  %v8289_v47 = vld [vmem:[%s11511_s1 + $0xcc8] ss:$16 sps:$4 sm:$0xff]   ;;  %v8294_v48 = vld [vmem:[%s11511_s1 + $0xbac] ss:$16 sps:$4 sm:$0xff]  }
 0x20d   :  { %5732 = vmatprep.subr.bf16.mxu1 %v8207_v49  ;;  %v8297_v49 = vld [vmem:[%s11511_s1 + $0xcac] ss:$16 sps:$4 sm:$0xff]  }
 0x20f   :  { %5706 = vmatpush2.bf16.msra.mxu0 %v8202_v50  ;;  %v8659_v50 = vld [vmem:[%s11512_s0 + $0x34] ss:$100 sps:$4 sm:$0xff]  }
 0x210   :  { %5733 = vmatpush1.bf16.msra.mxu1 %v8205_v51  ;;  %5707 = vmatprep.subr.bf16.mxu0 %v8210_v52  ;;  %v8292_v51 = vld [vmem:[%s11511_s1 + $0xba8] ss:$16 sps:$4 sm:$0xff]  }
 0x211   :  { %5734 = vmatprep.subr.bf16.mxu1 %v8213_v53  ;;  %v8295_v52 = vld [vmem:[%s11511_s1 + $0xca8] ss:$16 sps:$4 sm:$0xff]   ;;  %v8300_v53 = vld [vmem:[%s11511_s1 + $0xb8c] ss:$16 sps:$4 sm:$0xff]  }
 0x213   :  { %5708 = vmatpush2.bf16.msra.mxu0 %v8208_v54  ;;  %v8303_v54 = vld [vmem:[%s11511_s1 + $0xc8c] ss:$16 sps:$4 sm:$0xff]  }
 0x214   :  { %5735 = vmatpush1.bf16.msra.mxu1 %v8211_v55  ;;  %5709 = vmatprep.subr.bf16.mxu0 %v8216_v56  ;;  %v8298_v55 = vld [vmem:[%s11511_s1 + $0xb88] ss:$16 sps:$4 sm:$0xff]  }
 0x215   :  { %5736 = vmatprep.subr.bf16.mxu1 %v8219_v57  ;;  %v8301_v56 = vld [vmem:[%s11511_s1 + $0xc88] ss:$16 sps:$4 sm:$0xff]   ;;  %v8306_v57 = vld [vmem:[%s11511_s1 + $0xb6c] ss:$16 sps:$4 sm:$0xff]  }
 0x217   :  { %5710 = vmatpush2.bf16.msra.mxu0 %v8214_v58  ;;  %v8309_v58 = vld [vmem:[%s11511_s1 + $0xc6c] ss:$16 sps:$4 sm:$0xff]  }
 0x218   :  { %5737 = vmatpush1.bf16.msra.mxu1 %v8217_v59  ;;  %5711 = vmatprep.subr.bf16.mxu0 %v8222_v60  ;;  %v8304_v59 = vld [vmem:[%s11511_s1 + $0xb68] ss:$16 sps:$4 sm:$0xff]  }
 0x219   :  { %5738 = vmatprep.subr.bf16.mxu1 %v8225_v61  ;;  %v8307_v60 = vld [vmem:[%s11511_s1 + $0xc68] ss:$16 sps:$4 sm:$0xff]   ;;  %v8312_v61 = vld [vmem:[%s11511_s1 + $0xb4c] ss:$16 sps:$4 sm:$0xff]  }
 0x21b   :  { %5712 = vmatpush2.bf16.msra.mxu0 %v8220_v62  ;;  %v8315_v62 = vld [vmem:[%s11511_s1 + $0xc4c] ss:$16 sps:$4 sm:$0xff]  }
 0x21c   :  { %5739 = vmatpush1.bf16.msra.mxu1 %v8223_v63  ;;  %5713 = vmatprep.subr.bf16.mxu0 %v8228_v0  ;;  %v8310_v63 = vld [vmem:[%s11511_s1 + $0xb48] ss:$16 sps:$4 sm:$0xff]  }
 0x21d   :  { %5740 = vmatprep.subr.bf16.mxu1 %v8231_v1  ;;  %v8313_v0 = vld [vmem:[%s11511_s1 + $0xc48] ss:$16 sps:$4 sm:$0xff]   ;;  %v8318_v1 = vld [vmem:[%s11511_s1 + $0xb2c] ss:$16 sps:$4 sm:$0xff]  }
 0x21f   :  { %5714 = vmatpush2.bf16.msra.mxu0 %v8226_v2  ;;  %v8321_v2 = vld [vmem:[%s11511_s1 + $0xc2c] ss:$16 sps:$4 sm:$0xff]  }
 0x220   :  { %5741 = vmatpush1.bf16.msra.mxu1 %v8229_v3  ;;  %5769 = vmatprep.subr.bf16.mxu0 %v8237_v5  ;;  %v8316_v3 = vld [vmem:[%s11511_s1 + $0xb28] ss:$16 sps:$4 sm:$0xff]   ;;  %v8324_v5 = vld [vmem:[%s11511_s1 + $0xb0c] ss:$16 sps:$4 sm:$0xff]  }
 0x221   :  { %5742 = vmatprep.subr.bf16.mxu1 %v8234_v4  ;;  %v8319_v4 = vld [vmem:[%s11511_s1 + $0xc28] ss:$16 sps:$4 sm:$0xff]  }
 0x222   :  { %5716 = vmatmul.mubr.bf16.vlgmr.msra.gmra.mxu0 %v8656_v10  ;;  %v8333_v10 = vld [vmem:[%s11511_s1 + $0xeec] ss:$16 sps:$4 sm:$0xff]  }
 0x223   :  { %5770 = vmatpush1.bf16.msra.mxu0 %v8235_v7  ;;  %5801 = vmatprep.mubr.bf16.mxu0 %v8657_v15  ;;  %v8322_v7 = vld [vmem:[%s11511_s1 + $0xb08] ss:$16 sps:$4 sm:$0xff]  }
 0x224   :  { %5743 = vmatpush2.bf16.msra.mxu1 %v8232_v6  ;;  %5771 = vmatprep.subr.bf16.mxu0 %v8243_v9  ;;  %v8327_v6 = vld [vmem:[%s11511_s1 + $0xc0c] ss:$16 sps:$4 sm:$0xff]  }
 0x225   :  { %5744 = vmatprep.subr.bf16.mxu1 %v8240_v8  ;;  %v8325_v8 = vld [vmem:[%s11511_s1 + $0xc08] ss:$16 sps:$4 sm:$0xff]   ;;  %v8330_v9 = vld [vmem:[%s11511_s1 + $0xdec] ss:$16 sps:$4 sm:$0xff]  }
 0x226   :  { %v8660_v15 = vld [vmem:[%s11512_s0 + $0x28] ss:$100 sps:$4 sm:$0xff]  }
 0x227   :  { %5772 = vmatpush1.bf16.msra.mxu0 %v8241_v12  ;;  %v8331_v12 = vld [vmem:[%s11511_s1 + $0xee8] ss:$16 sps:$4 sm:$0xff]  }
 0x228   :  { %5745 = vmatpush2.bf16.msra.mxu1 %v8238_v11  ;;  %5773 = vmatprep.subr.bf16.mxu0 %v8249_v14  ;;  %v8328_v11 = vld [vmem:[%s11511_s1 + $0xde8] ss:$16 sps:$4 sm:$0xff]   ;;  %v8339_v14 = vld [vmem:[%s11511_s1 + $0xecc] ss:$16 sps:$4 sm:$0xff]  }
 0x229   :  { %5746 = vmatprep.subr.bf16.mxu1 %v8246_v13  ;;  %v8336_v13 = vld [vmem:[%s11511_s1 + $0xdcc] ss:$16 sps:$4 sm:$0xff]  }
 0x22b   :  { %5774 = vmatpush1.bf16.msra.mxu0 %v8247_v17  ;;  %v8337_v17 = vld [vmem:[%s11511_s1 + $0xec8] ss:$16 sps:$4 sm:$0xff]  }
 0x22c   :  { %5747 = vmatpush2.bf16.msra.mxu1 %v8244_v16  ;;  %5775 = vmatprep.subr.bf16.mxu0 %v8255_v19  ;;  %v8334_v16 = vld [vmem:[%s11511_s1 + $0xdc8] ss:$16 sps:$4 sm:$0xff]   ;;  %v8345_v19 = vld [vmem:[%s11511_s1 + $0xeac] ss:$16 sps:$4 sm:$0xff]  }
 0x22d   :  { %5748 = vmatprep.subr.bf16.mxu1 %v8252_v18  ;;  %v8342_v18 = vld [vmem:[%s11511_s1 + $0xdac] ss:$16 sps:$4 sm:$0xff]  }
 0x22f   :  { %5776 = vmatpush1.bf16.msra.mxu0 %v8253_v21  ;;  %v8340_v21 = vld [vmem:[%s11511_s1 + $0xda8] ss:$16 sps:$4 sm:$0xff]  }
 0x230   :  { %5749 = vmatpush2.bf16.msra.mxu1 %v8250_v20  ;;  %5777 = vmatprep.subr.bf16.mxu0 %v8261_v23  ;;  %v8661_v20 = vld [vmem:[%s11512_s0 + $0x3c] ss:$100 sps:$4 sm:$0xff]  }
 0x231   :  { %5750 = vmatprep.subr.bf16.mxu1 %v8258_v22  ;;  %v8343_v22 = vld [vmem:[%s11511_s1 + $0xea8] ss:$16 sps:$4 sm:$0xff]   ;;  %v8348_v23 = vld [vmem:[%s11511_s1 + $0xd8c] ss:$16 sps:$4 sm:$0xff]  }
 0x233   :  { %5778 = vmatpush1.bf16.msra.mxu0 %v8259_v25  ;;  %v8346_v25 = vld [vmem:[%s11511_s1 + $0xd88] ss:$16 sps:$4 sm:$0xff]  }
 0x234   :  { %5751 = vmatpush2.bf16.msra.mxu1 %v8256_v24  ;;  %5779 = vmatprep.subr.bf16.mxu0 %v8267_v27  ;;  %v8351_v24 = vld [vmem:[%s11511_s1 + $0xe8c] ss:$16 sps:$4 sm:$0xff]  }
 0x235   :  { %5752 = vmatprep.subr.bf16.mxu1 %v8264_v26  ;;  %v8349_v26 = vld [vmem:[%s11511_s1 + $0xe88] ss:$16 sps:$4 sm:$0xff]   ;;  %v8354_v27 = vld [vmem:[%s11511_s1 + $0xd6c] ss:$16 sps:$4 sm:$0xff]  }
 0x237   :  { %5780 = vmatpush1.bf16.msra.mxu0 %v8265_v29  ;;  %v8352_v29 = vld [vmem:[%s11511_s1 + $0xd68] ss:$16 sps:$4 sm:$0xff]  }
 0x238   :  { %5753 = vmatpush2.bf16.msra.mxu1 %v8262_v28  ;;  %5781 = vmatprep.subr.bf16.mxu0 %v8273_v31  ;;  %v8357_v28 = vld [vmem:[%s11511_s1 + $0xe6c] ss:$16 sps:$4 sm:$0xff]  }
 0x239   :  { %5754 = vmatprep.subr.bf16.mxu1 %v8270_v30  ;;  %v8355_v30 = vld [vmem:[%s11511_s1 + $0xe68] ss:$16 sps:$4 sm:$0xff]   ;;  %v8360_v31 = vld [vmem:[%s11511_s1 + $0xd4c] ss:$16 sps:$4 sm:$0xff]  }
 0x23b   :  { %5782 = vmatpush1.bf16.msra.mxu0 %v8271_v33  ;;  %v8358_v33 = vld [vmem:[%s11511_s1 + $0xd48] ss:$16 sps:$4 sm:$0xff]  }
 0x23c   :  { %5755 = vmatpush2.bf16.msra.mxu1 %v8268_v32  ;;  %5783 = vmatprep.subr.bf16.mxu0 %v8279_v35  ;;  %v8363_v32 = vld [vmem:[%s11511_s1 + $0xe4c] ss:$16 sps:$4 sm:$0xff]  }
 0x23d   :  { %5756 = vmatprep.subr.bf16.mxu1 %v8276_v34  ;;  %v8361_v34 = vld [vmem:[%s11511_s1 + $0xe48] ss:$16 sps:$4 sm:$0xff]   ;;  %v8366_v35 = vld [vmem:[%s11511_s1 + $0xd2c] ss:$16 sps:$4 sm:$0xff]  }
 0x23f   :  { %5784 = vmatpush1.bf16.msra.mxu0 %v8277_v38  ;;  %v8364_v38 = vld [vmem:[%s11511_s1 + $0xd28] ss:$16 sps:$4 sm:$0xff]  }
 0x240   :  { %5757 = vmatpush2.bf16.msra.mxu1 %v8274_v37  ;;  %5785 = vmatprep.subr.bf16.mxu0 %v8282_v39  ;;  %v8369_v37 = vld [vmem:[%s11511_s1 + $0xe2c] ss:$16 sps:$4 sm:$0xff]   ;;  %v8367_v39 = vld [vmem:[%s11511_s1 + $0xe28] ss:$16 sps:$4 sm:$0xff]  }
 0x241   :  { %5812 = vmatprep.subr.bf16.mxu1 %v8285_v40  ;;  %v8372_v40 = vld [vmem:[%s11511_s1 + $0xd0c] ss:$16 sps:$4 sm:$0xff]  }
 0x243   :  { %5759 = vmatmul.mubr.bf16.vlgmr.msra.gmra.mxu1 %v8658_v45  ;;  %5786 = vmatpush2.bf16.msra.mxu0 %v8280_v41  ;;  %v8375_v41 = vld [vmem:[%s11511_s1 + $0xe0c] ss:$16 sps:$4 sm:$0xff]  }
 0x244   :  { %5813 = vmatpush1.bf16.msra.mxu1 %v8283_v42  ;;  %5787 = vmatprep.subr.bf16.mxu0 %v8288_v43  ;;  %v8370_v42 = vld [vmem:[%s11511_s1 + $0xd08] ss:$16 sps:$4 sm:$0xff]   ;;  %v8381_v45 = vld [vmem:[%s11511_s1 + $0x10ec] ss:$16 sps:$4 sm:$0xff]  }
 0x245   :  { %5814 = vmatprep.subr.bf16.mxu1 %v8291_v44  ;;  %5844 = vmatprep.mubr.bf16.mxu1 %v8659_v50  ;;  %v8373_v43 = vld [vmem:[%s11511_s1 + $0xe08] ss:$16 sps:$4 sm:$0xff]   ;;  %v8378_v44 = vld [vmem:[%s11511_s1 + $0xfec] ss:$16 sps:$4 sm:$0xff]   ;;  %v8662_v50 = vld [vmem:[%s11512_s0 + $0x30] ss:$100 sps:$4 sm:$0xff]  }
 0x247   :  { %5788 = vmatpush2.bf16.msra.mxu0 %v8286_v46  ;;  %v8376_v46 = vld [vmem:[%s11511_s1 + $0xfe8] ss:$16 sps:$4 sm:$0xff]  }
 0x248   :  { %5815 = vmatpush1.bf16.msra.mxu1 %v8289_v47  ;;  %5789 = vmatprep.subr.bf16.mxu0 %v8294_v48  ;;  %v8379_v47 = vld [vmem:[%s11511_s1 + $0x10e8] ss:$16 sps:$4 sm:$0xff]   ;;  %v8384_v48 = vld [vmem:[%s11511_s1 + $0xfcc] ss:$16 sps:$4 sm:$0xff]  }
 0x249   :  { %5816 = vmatprep.subr.bf16.mxu1 %v8297_v49  ;;  %v8387_v49 = vld [vmem:[%s11511_s1 + $0x10cc] ss:$16 sps:$4 sm:$0xff]  }
 0x24b   :  { %5790 = vmatpush2.bf16.msra.mxu0 %v8292_v51  ;;  %v8382_v51 = vld [vmem:[%s11511_s1 + $0xfc8] ss:$16 sps:$4 sm:$0xff]  }
 0x24c   :  { %5817 = vmatpush1.bf16.msra.mxu1 %v8295_v52  ;;  %5791 = vmatprep.subr.bf16.mxu0 %v8300_v53  ;;  %v8385_v52 = vld [vmem:[%s11511_s1 + $0x10c8] ss:$16 sps:$4 sm:$0xff]   ;;  %v8390_v53 = vld [vmem:[%s11511_s1 + $0xfac] ss:$16 sps:$4 sm:$0xff]  }
 0x24d   :  { %5818 = vmatprep.subr.bf16.mxu1 %v8303_v54  ;;  %v8393_v54 = vld [vmem:[%s11511_s1 + $0x10ac] ss:$16 sps:$4 sm:$0xff]  }
 0x24f   :  { %5792 = vmatpush2.bf16.msra.mxu0 %v8298_v55  ;;  %v8663_v55 = vld [vmem:[%s11512_s0 + $0x44] ss:$100 sps:$4 sm:$0xff]  }
 0x250   :  { %5819 = vmatpush1.bf16.msra.mxu1 %v8301_v56  ;;  %5793 = vmatprep.subr.bf16.mxu0 %v8306_v57  ;;  %v8388_v56 = vld [vmem:[%s11511_s1 + $0xfa8] ss:$16 sps:$4 sm:$0xff]  }
 0x251   :  { %5820 = vmatprep.subr.bf16.mxu1 %v8309_v58  ;;  %v8391_v57 = vld [vmem:[%s11511_s1 + $0x10a8] ss:$16 sps:$4 sm:$0xff]   ;;  %v8396_v58 = vld [vmem:[%s11511_s1 + $0xf8c] ss:$16 sps:$4 sm:$0xff]  }
 0x253   :  { %5794 = vmatpush2.bf16.msra.mxu0 %v8304_v59  ;;  %v8399_v59 = vld [vmem:[%s11511_s1 + $0x108c] ss:$16 sps:$4 sm:$0xff]  }
 0x254   :  { %5821 = vmatpush1.bf16.msra.mxu1 %v8307_v60  ;;  %5795 = vmatprep.subr.bf16.mxu0 %v8312_v61  ;;  %v8394_v60 = vld [vmem:[%s11511_s1 + $0xf88] ss:$16 sps:$4 sm:$0xff]  }
 0x255   :  { %5822 = vmatprep.subr.bf16.mxu1 %v8315_v62  ;;  %v8397_v61 = vld [vmem:[%s11511_s1 + $0x1088] ss:$16 sps:$4 sm:$0xff]   ;;  %v8402_v62 = vld [vmem:[%s11511_s1 + $0xf6c] ss:$16 sps:$4 sm:$0xff]  }
 0x257   :  { %5796 = vmatpush2.bf16.msra.mxu0 %v8310_v63  ;;  %v8405_v63 = vld [vmem:[%s11511_s1 + $0x106c] ss:$16 sps:$4 sm:$0xff]  }
 0x258   :  { %5823 = vmatpush1.bf16.msra.mxu1 %v8313_v0  ;;  %5797 = vmatprep.subr.bf16.mxu0 %v8318_v1  ;;  %v8400_v0 = vld [vmem:[%s11511_s1 + $0xf68] ss:$16 sps:$4 sm:$0xff]  }
 0x259   :  { %5824 = vmatprep.subr.bf16.mxu1 %v8321_v2  ;;  %v8403_v1 = vld [vmem:[%s11511_s1 + $0x1068] ss:$16 sps:$4 sm:$0xff]   ;;  %v8408_v2 = vld [vmem:[%s11511_s1 + $0xf4c] ss:$16 sps:$4 sm:$0xff]  }
 0x25b   :  { %5798 = vmatpush2.bf16.msra.mxu0 %v8316_v3  ;;  %v8411_v3 = vld [vmem:[%s11511_s1 + $0x104c] ss:$16 sps:$4 sm:$0xff]  }
 0x25c   :  { %5825 = vmatpush1.bf16.msra.mxu1 %v8319_v4  ;;  %5799 = vmatprep.subr.bf16.mxu0 %v8324_v5  ;;  %v8406_v4 = vld [vmem:[%s11511_s1 + $0xf48] ss:$16 sps:$4 sm:$0xff]  }
 0x25d   :  { %5826 = vmatprep.subr.bf16.mxu1 %v8327_v6  ;;  %v8409_v5 = vld [vmem:[%s11511_s1 + $0x1048] ss:$16 sps:$4 sm:$0xff]   ;;  %v8414_v6 = vld [vmem:[%s11511_s1 + $0xf2c] ss:$16 sps:$4 sm:$0xff]  }
 0x25f   :  { %5800 = vmatpush2.bf16.msra.mxu0 %v8322_v7  ;;  %v8417_v7 = vld [vmem:[%s11511_s1 + $0x102c] ss:$16 sps:$4 sm:$0xff]  }
 0x260   :  { %5827 = vmatpush1.bf16.msra.mxu1 %v8325_v8  ;;  %5855 = vmatprep.subr.bf16.mxu0 %v8333_v10  ;;  %v8412_v8 = vld [vmem:[%s11511_s1 + $0xf28] ss:$16 sps:$4 sm:$0xff]   ;;  %v8420_v10 = vld [vmem:[%s11511_s1 + $0xf0c] ss:$16 sps:$4 sm:$0xff]  }
 0x261   :  { %5828 = vmatprep.subr.bf16.mxu1 %v8330_v9  ;;  %v8415_v9 = vld [vmem:[%s11511_s1 + $0x1028] ss:$16 sps:$4 sm:$0xff]  }
 0x262   :  { %5802 = vmatmul.mubr.bf16.vlgmr.msra.gmra.mxu0 %v8660_v15  ;;  %v8429_v15 = vld [vmem:[%s11511_s1 + $0x12ec] ss:$16 sps:$4 sm:$0xff]  }
 0x263   :  { %5856 = vmatpush1.bf16.msra.mxu0 %v8331_v12  ;;  %5887 = vmatprep.mubr.bf16.mxu0 %v8661_v20  ;;  %v8418_v12 = vld [vmem:[%s11511_s1 + $0xf08] ss:$16 sps:$4 sm:$0xff]  }
 0x264   :  { %5829 = vmatpush2.bf16.msra.mxu1 %v8328_v11  ;;  %5857 = vmatprep.subr.bf16.mxu0 %v8339_v14  ;;  %v8423_v11 = vld [vmem:[%s11511_s1 + $0x100c] ss:$16 sps:$4 sm:$0xff]   ;;  %v8430_v20 = vld [vmem:[%s11511_s1 + $0x11c8] ss:$16 sps:$4 sm:$0xff]  }
 0x265   :  { %5830 = vmatprep.subr.bf16.mxu1 %v8336_v13  ;;  %v8421_v13 = vld [vmem:[%s11511_s1 + $0x1008] ss:$16 sps:$4 sm:$0xff]   ;;  %v8426_v14 = vld [vmem:[%s11511_s1 + $0x11ec] ss:$16 sps:$4 sm:$0xff]  }
 0x267   :  { %5858 = vmatpush1.bf16.msra.mxu0 %v8337_v17  ;;  %v8427_v17 = vld [vmem:[%s11511_s1 + $0x12e8] ss:$16 sps:$4 sm:$0xff]  }
 0x268   :  { %5831 = vmatpush2.bf16.msra.mxu1 %v8334_v16  ;;  %5859 = vmatprep.subr.bf16.mxu0 %v8345_v19  ;;  %v8424_v16 = vld [vmem:[%s11511_s1 + $0x11e8] ss:$16 sps:$4 sm:$0xff]   ;;  %v8435_v19 = vld [vmem:[%s11511_s1 + $0x12cc] ss:$16 sps:$4 sm:$0xff]  }
 0x269   :  { %5832 = vmatprep.subr.bf16.mxu1 %v8342_v18  ;;  %v8432_v18 = vld [vmem:[%s11511_s1 + $0x11cc] ss:$16 sps:$4 sm:$0xff]  }
 0x26b   :  { %5860 = vmatpush1.bf16.msra.mxu0 %v8343_v22  ;;  %v8664_v22 = vld [vmem:[%s11512_s0 + $0x38] ss:$100 sps:$4 sm:$0xff]  }
 0x26c   :  { %5833 = vmatpush2.bf16.msra.mxu1 %v8340_v21  ;;  %5861 = vmatprep.subr.bf16.mxu0 %v8351_v24  ;;  %v8433_v21 = vld [vmem:[%s11511_s1 + $0x12c8] ss:$16 sps:$4 sm:$0xff]   ;;  %v8441_v24 = vld [vmem:[%s11511_s1 + $0x12ac] ss:$16 sps:$4 sm:$0xff]  }
 0x26d   :  { %5834 = vmatprep.subr.bf16.mxu1 %v8348_v23  ;;  %v8438_v23 = vld [vmem:[%s11511_s1 + $0x11ac] ss:$16 sps:$4 sm:$0xff]  }
 0x26f   :  { %5862 = vmatpush1.bf16.msra.mxu0 %v8349_v26  ;;  %v8439_v26 = vld [vmem:[%s11511_s1 + $0x12a8] ss:$16 sps:$4 sm:$0xff]  }
 0x270   :  { %5835 = vmatpush2.bf16.msra.mxu1 %v8346_v25  ;;  %5863 = vmatprep.subr.bf16.mxu0 %v8357_v28  ;;  %v8436_v25 = vld [vmem:[%s11511_s1 + $0x11a8] ss:$16 sps:$4 sm:$0xff]   ;;  %v8444_v28 = vld [vmem:[%s11511_s1 + $0x118c] ss:$16 sps:$4 sm:$0xff]  }
 0x271   :  { %5836 = vmatprep.subr.bf16.mxu1 %v8354_v27  ;;  %v8665_v27 = vld [vmem:[%s11512_s0 + $0x4c] ss:$100 sps:$4 sm:$0xff]  }
 0x273   :  { %5864 = vmatpush1.bf16.msra.mxu0 %v8355_v30  ;;  %v8442_v30 = vld [vmem:[%s11511_s1 + $0x1188] ss:$16 sps:$4 sm:$0xff]  }
 0x274   :  { %5837 = vmatpush2.bf16.msra.mxu1 %v8352_v29  ;;  %5865 = vmatprep.subr.bf16.mxu0 %v8363_v32  ;;  %v8447_v29 = vld [vmem:[%s11511_s1 + $0x128c] ss:$16 sps:$4 sm:$0xff]  }
 0x275   :  { %5838 = vmatprep.subr.bf16.mxu1 %v8360_v31  ;;  %v8445_v31 = vld [vmem:[%s11511_s1 + $0x1288] ss:$16 sps:$4 sm:$0xff]   ;;  %v8450_v32 = vld [vmem:[%s11511_s1 + $0x116c] ss:$16 sps:$4 sm:$0xff]  }
 0x277   :  { %5866 = vmatpush1.bf16.msra.mxu0 %v8361_v34  ;;  %v8448_v34 = vld [vmem:[%s11511_s1 + $0x1168] ss:$16 sps:$4 sm:$0xff]  }
 0x278   :  { %5839 = vmatpush2.bf16.msra.mxu1 %v8358_v33  ;;  %5867 = vmatprep.subr.bf16.mxu0 %v8369_v37  ;;  %v8453_v33 = vld [vmem:[%s11511_s1 + $0x126c] ss:$16 sps:$4 sm:$0xff]  }
 0x279   :  { %5840 = vmatprep.subr.bf16.mxu1 %v8366_v35  ;;  %v8451_v35 = vld [vmem:[%s11511_s1 + $0x1268] ss:$16 sps:$4 sm:$0xff]   ;;  %v8456_v37 = vld [vmem:[%s11511_s1 + $0x114c] ss:$16 sps:$4 sm:$0xff]  }
 0x27b   :  { %5868 = vmatpush1.bf16.msra.mxu0 %v8367_v39  ;;  %v8454_v39 = vld [vmem:[%s11511_s1 + $0x1148] ss:$16 sps:$4 sm:$0xff]  }
 0x27c   :  { %5841 = vmatpush2.bf16.msra.mxu1 %v8364_v38  ;;  %5869 = vmatprep.subr.bf16.mxu0 %v8375_v41  ;;  %v8459_v38 = vld [vmem:[%s11511_s1 + $0x124c] ss:$16 sps:$4 sm:$0xff]  }
 0x27d   :  { %5842 = vmatprep.subr.bf16.mxu1 %v8372_v40  ;;  %v8457_v40 = vld [vmem:[%s11511_s1 + $0x1248] ss:$16 sps:$4 sm:$0xff]   ;;  %v8462_v41 = vld [vmem:[%s11511_s1 + $0x112c] ss:$16 sps:$4 sm:$0xff]  }
 0x27f   :  { %5870 = vmatpush1.bf16.msra.mxu0 %v8373_v43  ;;  %v8460_v43 = vld [vmem:[%s11511_s1 + $0x1128] ss:$16 sps:$4 sm:$0xff]  }
 0x280   :  { %5843 = vmatpush2.bf16.msra.mxu1 %v8370_v42  ;;  %5871 = vmatprep.subr.bf16.mxu0 %v8378_v44  ;;  %v8465_v42 = vld [vmem:[%s11511_s1 + $0x122c] ss:$16 sps:$4 sm:$0xff]   ;;  %v8463_v44 = vld [vmem:[%s11511_s1 + $0x1228] ss:$16 sps:$4 sm:$0xff]  }
 0x281   :  { %5898 = vmatprep.subr.bf16.mxu1 %v8381_v45  ;;  %v10934_v45 = vpop.f32.mrf.mxu0 }
 0x283   :  { %5845 = vmatmul.mubr.bf16.vlgmr.msra.gmra.mxu1 %v8662_v50  ;;  %5872 = vmatpush2.bf16.msra.mxu0 %v8376_v46  ;;  %v8468_v46 = vld [vmem:[%s11511_s1 + $0x110c] ss:$16 sps:$4 sm:$0xff]   ;;  %v8469_v50 = vld [vmem:[%s11511_s1 + $0x1208] ss:$16 sps:$4 sm:$0xff]  }
 0x284   :  { %5899 = vmatpush1.bf16.msra.mxu1 %v8379_v47  ;;  %5873 = vmatprep.subr.bf16.mxu0 %v8384_v48  ;;  %v8471_v47 = vld [vmem:[%s11511_s1 + $0x120c] ss:$16 sps:$4 sm:$0xff]   ;;  %v10942_v48 = vpop.f32.mrf.mxu0 }
 0x285   :  { %5900 = vmatprep.subr.bf16.mxu1 %v8387_v49  ;;  %5930 = vmatprep.mubr.bf16.mxu1 %v8663_v55  ;;  %v8466_v49 = vld [vmem:[%s11511_s1 + $0x1108] ss:$16 sps:$4 sm:$0xff]  }
 0x286   :  { %v8475_v55 = vld [vmem:[%s11511_s1 + $0x14e8] ss:$16 sps:$4 sm:$0xff]  }
 0x287   :  { %5874 = vmatpush2.bf16.msra.mxu0 %v8382_v51  ;;  %v8474_v51 = vld [vmem:[%s11511_s1 + $0x13ec] ss:$16 sps:$4 sm:$0xff]  }
 0x288   :  { %5901 = vmatpush1.bf16.msra.mxu1 %v8385_v52  ;;  %5875 = vmatprep.subr.bf16.mxu0 %v8390_v53  ;;  %v8477_v52 = vld [vmem:[%s11511_s1 + $0x14ec] ss:$16 sps:$4 sm:$0xff]   ;;  %v10956_v53 = vpop.f32.mrf.mxu0 }
 0x289   :  { %5902 = vmatprep.subr.bf16.mxu1 %v8393_v54  ;;  %v8472_v54 = vld [vmem:[%s11511_s1 + $0x13e8] ss:$16 sps:$4 sm:$0xff]  }
 0x28b   :  { %5876 = vmatpush2.bf16.msra.mxu0 %v8388_v56  ;;  %v8480_v56 = vld [vmem:[%s11511_s1 + $0x13cc] ss:$16 sps:$4 sm:$0xff]  }
 0x28c   :  { %5903 = vmatpush1.bf16.msra.mxu1 %v8391_v57  ;;  %5877 = vmatprep.subr.bf16.mxu0 %v8396_v58  ;;  %v8483_v57 = vld [vmem:[%s11511_s1 + $0x14cc] ss:$16 sps:$4 sm:$0xff]   ;;  %v10970_v58 = vpop.f32.mrf.mxu0 }
 0x28d   :  { %5904 = vmatprep.subr.bf16.mxu1 %v8399_v59  ;;  %v8666_v59 = vld [vmem:[%s11512_s0 + $0x40] ss:$100 sps:$4 sm:$0xff]  }
 0x28f   :  { %5878 = vmatpush2.bf16.msra.mxu0 %v8394_v60  ;;  %v8478_v60 = vld [vmem:[%s11511_s1 + $0x13c8] ss:$16 sps:$4 sm:$0xff]  }
 0x290   :  { %5905 = vmatpush1.bf16.msra.mxu1 %v8397_v61  ;;  %5879 = vmatprep.subr.bf16.mxu0 %v8402_v62  ;;  %v8481_v61 = vld [vmem:[%s11511_s1 + $0x14c8] ss:$16 sps:$4 sm:$0xff]   ;;  %v10981_v62 = vpop.f32.mrf.mxu1 }
 0x291   :  { %5906 = vmatprep.subr.bf16.mxu1 %v8405_v63  ;;  %v10983_v63 = vpop.f32.mrf.mxu0 }
 0x293   :  { %5880 = vmatpush2.bf16.msra.mxu0 %v8400_v0  ;;  %v8486_v0 = vld [vmem:[%s11511_s1 + $0x13ac] ss:$16 sps:$4 sm:$0xff]  }
 0x294   :  { %5907 = vmatpush1.bf16.msra.mxu1 %v8403_v1  ;;  %5881 = vmatprep.subr.bf16.mxu0 %v8408_v2  ;;  %v8489_v1 = vld [vmem:[%s11511_s1 + $0x14ac] ss:$16 sps:$4 sm:$0xff]   ;;  %v8667_v2 = vld [vmem:[%s11512_s0 + $0x54] ss:$100 sps:$4 sm:$0xff]  }
 0x295   :  { %5908 = vmatprep.subr.bf16.mxu1 %v8411_v3  ;;  %v8484_v3 = vld [vmem:[%s11511_s1 + $0x13a8] ss:$16 sps:$4 sm:$0xff]  }
 0x297   :  { %5882 = vmatpush2.bf16.msra.mxu0 %v8406_v4  ;;  %v8487_v4 = vld [vmem:[%s11511_s1 + $0x14a8] ss:$16 sps:$4 sm:$0xff]  }
 0x298   :  { %5909 = vmatpush1.bf16.msra.mxu1 %v8409_v5  ;;  %5883 = vmatprep.subr.bf16.mxu0 %v8414_v6  ;;  %v11000_v5 = vpop.f32.mrf.mxu1  ;;  %v11002_v6 = vpop.f32.mrf.mxu0 }
 0x299   :  { %5910 = vmatprep.subr.bf16.mxu1 %v8417_v7  ;;  %v8492_v7 = vld [vmem:[%s11511_s1 + $0x138c] ss:$16 sps:$4 sm:$0xff]  }
 0x29b   :  { %5884 = vmatpush2.bf16.msra.mxu0 %v8412_v8  ;;  %v8495_v8 = vld [vmem:[%s11511_s1 + $0x148c] ss:$16 sps:$4 sm:$0xff]  }
 0x29c   :  { %5911 = vmatpush1.bf16.msra.mxu1 %v8415_v9  ;;  %5885 = vmatprep.subr.bf16.mxu0 %v8420_v10  ;;  %v8490_v9 = vld [vmem:[%s11511_s1 + $0x1388] ss:$16 sps:$4 sm:$0xff]  }
 0x29d   :  { %5912 = vmatprep.subr.bf16.mxu1 %v8423_v11  ;;  %v8493_v10 = vld [vmem:[%s11511_s1 + $0x1488] ss:$16 sps:$4 sm:$0xff]   ;;  %v11016_v11 = vpop.f32.mrf.mxu1 }
 0x29f   :  { %5886 = vmatpush2.bf16.msra.mxu0 %v8418_v12  ;;  %v11018_v12 = vpop.f32.mrf.mxu0 }
 0x2a0   :  { %5913 = vmatpush1.bf16.msra.mxu1 %v8421_v13  ;;  %5941 = vmatprep.subr.bf16.mxu0 %v8429_v15  ;;  %v8498_v13 = vld [vmem:[%s11511_s1 + $0x136c] ss:$16 sps:$4 sm:$0xff]   ;;  %v8496_v15 = vld [vmem:[%s11511_s1 + $0x1368] ss:$16 sps:$4 sm:$0xff]  }
 0x2a1   :  { %5914 = vmatprep.subr.bf16.mxu1 %v8426_v14  ;;  %v8501_v14 = vld [vmem:[%s11511_s1 + $0x146c] ss:$16 sps:$4 sm:$0xff]  }
 0x2a2   :  { %5888 = vmatmul.mubr.bf16.vlgmr.msra.gmra.mxu0 %v8664_v22 }
 0x2a3   :  { %5942 = vmatpush1.bf16.msra.mxu0 %v8427_v17  ;;  %5973 = vmatprep.mubr.bf16.mxu0 %v8665_v27  ;;  %v11032_v17 = vpop.f32.mrf.mxu1 }
 0x2a4   :  { %5915 = vmatpush2.bf16.msra.mxu1 %v8424_v16  ;;  %5943 = vmatprep.subr.bf16.mxu0 %v8435_v19  ;;  %v8499_v16 = vld [vmem:[%s11511_s1 + $0x1468] ss:$16 sps:$4 sm:$0xff]   ;;  %v8504_v19 = vld [vmem:[%s11511_s1 + $0x134c] ss:$16 sps:$4 sm:$0xff]  }
 0x2a5   :  { %5916 = vmatprep.subr.bf16.mxu1 %v8432_v18  ;;  %v11034_v18 = vpop.f32.mrf.mxu0 }
 0x2a7   :  { %5944 = vmatpush1.bf16.msra.mxu0 %v8433_v21  ;;  %v11042_v21 = vpop.f32.mrf.mxu1  ;;  %v11044_v22 = vpop.f32.mrf.mxu0 }
 0x2a8   :  { %5917 = vmatpush2.bf16.msra.mxu1 %v8430_v20  ;;  %5945 = vmatprep.subr.bf16.mxu0 %v8441_v24  ;;  %v8507_v20 = vld [vmem:[%s11511_s1 + $0x144c] ss:$16 sps:$4 sm:$0xff]   ;;  %v8505_v24 = vld [vmem:[%s11511_s1 + $0x1448] ss:$16 sps:$4 sm:$0xff]  }
 0x2a9   :  { %5918 = vmatprep.subr.bf16.mxu1 %v8438_v23  ;;  %v8502_v23 = vld [vmem:[%s11511_s1 + $0x1348] ss:$16 sps:$4 sm:$0xff]   ;;  %v11058_v27 = vpop.f32.mrf.mxu1 }
 0x2ab   :  { %5946 = vmatpush1.bf16.msra.mxu0 %v8439_v26  ;;  %v8513_v26 = vld [vmem:[%s11511_s1 + $0x142c] ss:$16 sps:$4 sm:$0xff]  }
 0x2ac   :  { %5919 = vmatpush2.bf16.msra.mxu1 %v8436_v25  ;;  %5947 = vmatprep.subr.bf16.mxu0 %v8447_v29  ;;  %v8510_v25 = vld [vmem:[%s11511_s1 + $0x132c] ss:$16 sps:$4 sm:$0xff]   ;;  %v8508_v29 = vld [vmem:[%s11511_s1 + $0x1328] ss:$16 sps:$4 sm:$0xff]  }
 0x2ad   :  { %5920 = vmatprep.subr.bf16.mxu1 %v8444_v28  ;;  %v11060_v28 = vpop.f32.mrf.mxu0 }
 0x2af   :  { %5948 = vmatpush1.bf16.msra.mxu0 %v8445_v31  ;;  %v8516_v31 = vld [vmem:[%s11511_s1 + $0x130c] ss:$16 sps:$4 sm:$0xff]  }
 0x2b0   :  { %5921 = vmatpush2.bf16.msra.mxu1 %v8442_v30  ;;  %5949 = vmatprep.subr.bf16.mxu0 %v8453_v33  ;;  %v8511_v30 = vld [vmem:[%s11511_s1 + $0x1428] ss:$16 sps:$4 sm:$0xff]   ;;  %v11074_v33 = vpop.f32.mrf.mxu1 }
 0x2b1   :  { %5922 = vmatprep.subr.bf16.mxu1 %v8450_v32  ;;  %v8519_v32 = vld [vmem:[%s11511_s1 + $0x140c] ss:$16 sps:$4 sm:$0xff]  }
 0x2b3   :  { %5950 = vmatpush1.bf16.msra.mxu0 %v8451_v35  ;;  %v8514_v35 = vld [vmem:[%s11511_s1 + $0x1308] ss:$16 sps:$4 sm:$0xff]  }
 0x2b4   :  { %5923 = vmatpush2.bf16.msra.mxu1 %v8448_v34  ;;  %5951 = vmatprep.subr.bf16.mxu0 %v8459_v38  ;;  %v11076_v34 = vpop.f32.mrf.mxu0  ;;  %v8522_v38 = vld [vmem:[%s11511_s1 + $0x15ec] ss:$16 sps:$4 sm:$0xff]  }
 0x2b5   :  { %5924 = vmatprep.subr.bf16.mxu1 %v8456_v37  ;;  %v8517_v37 = vld [vmem:[%s11511_s1 + $0x1408] ss:$16 sps:$4 sm:$0xff]  }
 0x2b7   :  { %5952 = vmatpush1.bf16.msra.mxu0 %v8457_v40  ;;  %v11090_v40 = vpop.f32.mrf.mxu1 }
 0x2b8   :  { %5925 = vmatpush2.bf16.msra.mxu1 %v8454_v39  ;;  %5953 = vmatprep.subr.bf16.mxu0 %v8465_v42  ;;  %v8525_v39 = vld [vmem:[%s11511_s1 + $0x16ec] ss:$16 sps:$4 sm:$0xff]   ;;  %v8520_v42 = vld [vmem:[%s11511_s1 + $0x15e8] ss:$16 sps:$4 sm:$0xff]  }
 0x2b9   :  { %5926 = vmatprep.subr.bf16.mxu1 %v8462_v41  ;;  %v11092_v41 = vpop.f32.mrf.mxu0 }
 0x2bb   :  { %5954 = vmatpush1.bf16.msra.mxu0 %v8463_v44  ;;  %v11100_v44 = vpop.f32.mrf.mxu1 }
 0x2bc   :  { %5927 = vmatpush2.bf16.msra.mxu1 %v8460_v43  ;;  %5955 = vmatprep.subr.bf16.mxu0 %v8471_v47  ;;  %v8523_v43 = vld [vmem:[%s11511_s1 + $0x16e8] ss:$16 sps:$4 sm:$0xff]   ;;  %v8528_v47 = vld [vmem:[%s11511_s1 + $0x15cc] ss:$16 sps:$4 sm:$0xff]  }
 0x2bd   :  { %5928 = vmatprep.subr.bf16.mxu1 %v8468_v46  ;;  %v11102_v46 = vpop.f32.mrf.mxu0 }
 0x2bf   :  { %5956 = vmatpush1.bf16.msra.mxu0 %v8469_v50  ;;  %v8668_v50 = vld [vmem:[%s11512_s0 + $0x48] ss:$100 sps:$4 sm:$0xff]  }
 0x2c0   :  { %5929 = vmatpush2.bf16.msra.mxu1 %v8466_v49  ;;  %5957 = vmatprep.subr.bf16.mxu0 %v8474_v51  ;;  %v8531_v49 = vld [vmem:[%s11511_s1 + $0x16cc] ss:$16 sps:$4 sm:$0xff]   ;;  %v8526_v51 = vld [vmem:[%s11511_s1 + $0x15c8] ss:$16 sps:$4 sm:$0xff]  }
 0x2c1   :  { %5984 = vmatprep.subr.bf16.mxu1 %v8477_v52  ;;  %v8529_v52 = vld [vmem:[%s11511_s1 + $0x16c8] ss:$16 sps:$4 sm:$0xff]  }
 0x2c3   :  { %5931 = vmatmul.mubr.bf16.vlgmr.msra.gmra.mxu1 %v8666_v59  ;;  %5958 = vmatpush2.bf16.msra.mxu0 %v8472_v54  ;;  %v11119_v54 = vpop.f32.mrf.mxu1  ;;  %v8669_v59 = vld [vmem:[%s11512_s0 + $0x5c] ss:$100 sps:$4 sm:$0xff]  }
 0x2c4   :  { %5985 = vmatpush1.bf16.msra.mxu1 %v8475_v55  ;;  %5959 = vmatprep.subr.bf16.mxu0 %v8480_v56  ;;  %v11121_v55 = vpop.f32.mrf.mxu0  ;;  %v8534_v56 = vld [vmem:[%s11511_s1 + $0x15ac] ss:$16 sps:$4 sm:$0xff]  }
 0x2c5   :  { %5986 = vmatprep.subr.bf16.mxu1 %v8483_v57  ;;  %6016 = vmatprep.mubr.bf16.mxu1 %v8667_v2  ;;  %v8537_v57 = vld [vmem:[%s11511_s1 + $0x16ac] ss:$16 sps:$4 sm:$0xff]  }
 0x2c6   :  { %v11140_v2 = vpop.f32.mrf.mxu0 }
 0x2c7   :  { %5960 = vmatpush2.bf16.msra.mxu0 %v8478_v60  ;;  %v849_v60 = vlaneseq }
 0x2c8   :  { %5987 = vmatpush1.bf16.msra.mxu1 %v8481_v61  ;;  %5961 = vmatprep.subr.bf16.mxu0 %v8486_v0  ;;  %v8532_v61 = vld [vmem:[%s11511_s1 + $0x15a8] ss:$16 sps:$4 sm:$0xff]  }
 0x2c9   :  { %5988 = vmatprep.subr.bf16.mxu1 %v8489_v1  ;;  %v8535_v0 = vld [vmem:[%s11511_s1 + $0x16a8] ss:$16 sps:$4 sm:$0xff]   ;;  %v11138_v1 = vpop.f32.mrf.mxu1 }
 0x2cb   :  { %5962 = vmatpush2.bf16.msra.mxu0 %v8484_v3  ;;  %v8540_v3 = vld [vmem:[%s11511_s1 + $0x158c] ss:$16 sps:$4 sm:$0xff]  }
 0x2cc   :  { %5989 = vmatpush1.bf16.msra.mxu1 %v8487_v4  ;;  %5963 = vmatprep.subr.bf16.mxu0 %v8492_v7  ;;  %v8543_v4 = vld [vmem:[%s11511_s1 + $0x168c] ss:$16 sps:$4 sm:$0xff]   ;;  %v11148_v7 = vshrl.u32 %v849_v60, 7 }
 0x2cd   :  { %5990 = vmatprep.subr.bf16.mxu1 %v8495_v8  ;;  %v8538_v8 = vld [vmem:[%s11511_s1 + $0x1588] ss:$16 sps:$4 sm:$0xff]  }
 0x2cf   :  { %5964 = vmatpush2.bf16.msra.mxu0 %v8490_v9  ;;  %v8541_v9 = vld [vmem:[%s11511_s1 + $0x1688] ss:$16 sps:$4 sm:$0xff]  }
 0x2d0   :  { %5991 = vmatpush1.bf16.msra.mxu1 %v8493_v10  ;;  %5965 = vmatprep.subr.bf16.mxu0 %v8498_v13  ;;  %v11156_v10 = vpop.f32.mrf.mxu1  ;;  %v11158_v13 = vpop.f32.mrf.mxu0 }
 0x2d1   :  { %5992 = vmatprep.subr.bf16.mxu1 %v8501_v14  ;;  %v8546_v14 = vld [vmem:[%s11511_s1 + $0x156c] ss:$16 sps:$4 sm:$0xff]  }
 0x2d3   :  { %5966 = vmatpush2.bf16.msra.mxu0 %v8496_v15  ;;  %v8549_v15 = vld [vmem:[%s11511_s1 + $0x166c] ss:$16 sps:$4 sm:$0xff]  }
 0x2d4   :  { %5993 = vmatpush1.bf16.msra.mxu1 %v8499_v16  ;;  %5967 = vmatprep.subr.bf16.mxu0 %v8504_v19  ;;  %v11166_v16 = vpop.f32.mrf.mxu1  ;;  %v11168_v19 = vpop.f32.mrf.mxu0 }
 0x2d5   :  { %5994 = vmatprep.subr.bf16.mxu1 %v8507_v20  ;;  %v855_v20 = vsub.s32 1, %v11148_v7 }
 0x2d7   :  { %5968 = vmatpush2.bf16.msra.mxu0 %v8502_v23  ;;  %v8544_v23 = vld [vmem:[%s11511_s1 + $0x1568] ss:$16 sps:$4 sm:$0xff]  }
 0x2d8   :  { %5995 = vmatpush1.bf16.msra.mxu1 %v8505_v24  ;;  %5969 = vmatprep.subr.bf16.mxu0 %v8510_v25  ;;  %v8547_v24 = vld [vmem:[%s11511_s1 + $0x1668] ss:$16 sps:$4 sm:$0xff]   ;;  %v11180_v25 = vld [vmem:[%s11514_s2] sm:$0xf] }
 0x2d9   :  { %5996 = vmatprep.subr.bf16.mxu1 %v8513_v26  ;;  %v8552_v26 = vld [vmem:[%s11511_s1 + $0x154c] ss:$16 sps:$4 sm:$0xff]  }
 0x2db   :  { %5970 = vmatpush2.bf16.msra.mxu0 %v8508_v29  ;;  %v8555_v29 = vld [vmem:[%s11511_s1 + $0x164c] ss:$16 sps:$4 sm:$0xff]  }
 0x2dc   :  { %5997 = vmatpush1.bf16.msra.mxu1 %v8511_v30  ;;  %5971 = vmatprep.subr.bf16.mxu0 %v8516_v31  ;;  %v11188_v30 = vpop.f32.mrf.mxu1  ;;  %v11190_v31 = vpop.f32.mrf.mxu0 }
 0x2dd   :  { %5998 = vmatprep.subr.bf16.mxu1 %v8519_v32  ;;  %v856_v32 = vrot.slane %v11180_v25, %v855_v20 }
 0x2df   :  { %5972 = vmatpush2.bf16.msra.mxu0 %v8514_v35  ;;  %v8550_v35 = vld [vmem:[%s11511_s1 + $0x1548] ss:$16 sps:$4 sm:$0xff]  }
 0x2e0   :  { %5999 = vmatpush1.bf16.msra.mxu1 %v8517_v37  ;;  %6027 = vmatprep.subr.bf16.mxu0 %v8525_v39  ;;  %v8553_v37 = vld [vmem:[%s11511_s1 + $0x1648] ss:$16 sps:$4 sm:$0xff]   ;;  %v8561_v39 = vld [vmem:[%s11511_s1 + $0x162c] ss:$16 sps:$4 sm:$0xff]  }
 0x2e1   :  { %6000 = vmatprep.subr.bf16.mxu1 %v8522_v38  ;;  %v8558_v38 = vld [vmem:[%s11511_s1 + $0x152c] ss:$16 sps:$4 sm:$0xff]  }
 0x2e2   :  { %5974 = vmatmul.mubr.bf16.vlgmr.msra.gmra.mxu0 %v8668_v50  ;;  %v8556_v50 = vld [vmem:[%s11511_s1 + $0x1528] ss:$16 sps:$4 sm:$0xff]  }
 0x2e3   :  { %6028 = vmatpush1.bf16.msra.mxu0 %v8523_v43  ;;  %6059 = vmatprep.mubr.bf16.mxu0 %v8669_v59  ;;  %v11206_v43 = vpop.f32.mrf.mxu1 }
 0x2e4   :  { %6001 = vmatpush2.bf16.msra.mxu1 %v8520_v42  ;;  %6029 = vmatprep.subr.bf16.mxu0 %v8531_v49  ;;  %v5036_v42 = vadd.f32 %v10970_v58, %v856_v32  ;;  %v5032_v49 = vadd.f32 %v10942_v48, %v856_v32  ;;  %v8564_v58 = vld [vmem:[%s11511_s1 + $0x150c] ss:$16 sps:$4 sm:$0xff]   ;;  %v8574_v32 = vld [vmem:[%s11511_s1 + $0x17c8] ss:$16 sps:$4 sm:$0xff]  }
 0x2e5   :  { %6002 = vmatprep.subr.bf16.mxu1 %v8528_v47  ;;  %v11208_v47 = vpop.f32.mrf.mxu0  ;;  %v8567_v48 = vld [vmem:[%s11511_s1 + $0x160c] ss:$16 sps:$4 sm:$0xff]  }
 0x2e6   :  { %v5075_v59 = vadd.f32 %v11000_v5, %v5032_v49  ;;  %v8570_v5 = vld [vmem:[%s11511_s1 + $0x17ec] ss:$16 sps:$4 sm:$0xff]   ;;  %v8580_v49 = vld [vmem:[%s11511_s1 + $0x17a8] ss:$16 sps:$4 sm:$0xff]  }
 0x2e7   :  { %6030 = vmatpush1.bf16.msra.mxu0 %v8529_v52  ;;  %v5079_v52 = vadd.f32 %v11032_v17, %v5036_v42 }
 0x2e8   :  { %6003 = vmatpush2.bf16.msra.mxu1 %v8526_v51  ;;  %6031 = vmatprep.subr.bf16.mxu0 %v8537_v57  ;;  %v8559_v51 = vld [vmem:[%s11511_s1 + $0x1628] ss:$16 sps:$4 sm:$0xff]   ;;  %v11224_v57 = vpop.f32.mrf.mxu0 }
 0x2e9   :  { %6004 = vmatprep.subr.bf16.mxu1 %v8534_v56  ;;  %v5336_v56 = vpop.f32.mrf.mxu1  ;;  %v5122_v60 = vadd.f32 %v11034_v18, %v5079_v52  ;;  %v8573_v18 = vld [vmem:[%s11511_s1 + $0x18ec] ss:$16 sps:$4 sm:$0xff]  }
 0x2ea   :  { %v11236_v17 = vpop.f32.mrf.mxu0 }
 0x2eb   :  { %6032 = vmatpush1.bf16.msra.mxu0 %v8535_v0  ;;  %v8565_v0 = vld [vmem:[%s11511_s1 + $0x1608] ss:$16 sps:$4 sm:$0xff]  }
 0x2ec   :  { %6005 = vmatpush2.bf16.msra.mxu1 %v8532_v61  ;;  %6033 = vmatprep.subr.bf16.mxu0 %v8543_v4  ;;  %v8562_v61 = vld [vmem:[%s11511_s1 + $0x1508] ss:$16 sps:$4 sm:$0xff]   ;;  %v5118_v4 = vadd.f32 %v11002_v6, %v5075_v59  ;;  %v11254_v20 = vpop.f32.mrf.mxu0  ;;  %v8576_v6 = vld [vmem:[%s11511_s1 + $0x17cc] ss:$16 sps:$4 sm:$0xff]  }
 0x2ed   :  { %6006 = vmatprep.subr.bf16.mxu1 %v8540_v3  ;;  %v11234_v3 = vpop.f32.mrf.mxu1  ;;  %v8586_v59 = vld [vmem:[%s11511_s1 + $0x1788] ss:$16 sps:$4 sm:$0xff]  }
 0x2ef   :  { %6034 = vmatpush1.bf16.msra.mxu0 %v8541_v9  ;;  %v8568_v9 = vld [vmem:[%s11511_s1 + $0x17e8] ss:$16 sps:$4 sm:$0xff]  }
 0x2f0   :  { %6007 = vmatpush2.bf16.msra.mxu1 %v8538_v8  ;;  %6035 = vmatprep.subr.bf16.mxu0 %v8549_v15  ;;  %v5165_v8 = vadd.f32 %v11090_v40, %v5122_v60  ;;  %v11252_v15 = vpop.f32.mrf.mxu1  ;;  %v8579_v40 = vld [vmem:[%s11511_s1 + $0x18cc] ss:$16 sps:$4 sm:$0xff]   ;;  %v8589_v60 = vld [vmem:[%s11511_s1 + $0x1888] ss:$16 sps:$4 sm:$0xff]  }
 0x2f1   :  { %6008 = vmatprep.subr.bf16.mxu1 %v8546_v14  ;;  %v8571_v14 = vld [vmem:[%s11511_s1 + $0x18e8] ss:$16 sps:$4 sm:$0xff]  }
 0x2f3   :  { %6036 = vmatpush1.bf16.msra.mxu0 %v8547_v24  ;;  %v5208_v24 = vadd.f32 %v11092_v41, %v5165_v8  ;;  %v11276_v41 = vpop.f32.mrf.mxu0 }
 0x2f4   :  { %6009 = vmatpush2.bf16.msra.mxu1 %v8544_v23  ;;  %6037 = vmatprep.subr.bf16.mxu0 %v8555_v29  ;;  %v5161_v23 = vadd.f32 %v11058_v27, %v5118_v4  ;;  %v11274_v27 = vpop.f32.mrf.mxu1 }
 0x2f5   :  { %6010 = vmatprep.subr.bf16.mxu1 %v8552_v26  ;;  %v8670_v26 = vld [vmem:[%s11512_s0 + $0x50] ss:$100 sps:$4 sm:$0xff]  }
 0x2f6   :  { %v5204_v29 = vadd.f32 %v11060_v28, %v5161_v23  ;;  %v8582_v28 = vld [vmem:[%s11511_s1 + $0x17ac] ss:$16 sps:$4 sm:$0xff]  }
 0x2f7   :  { %6038 = vmatpush1.bf16.msra.mxu0 %v8553_v37  ;;  %v8585_v37 = vld [vmem:[%s11511_s1 + $0x18ac] ss:$16 sps:$4 sm:$0xff]  }
 0x2f8   :  { %6011 = vmatpush2.bf16.msra.mxu1 %v8550_v35  ;;  %6039 = vmatprep.subr.bf16.mxu0 %v8561_v39  ;;  %v8577_v35 = vld [vmem:[%s11511_s1 + $0x18c8] ss:$16 sps:$4 sm:$0xff]   ;;  %v5247_v39 = vadd.f32 %v11119_v54, %v5204_v29  ;;  %v8591_v54 = vld [vmem:[%s11511_s1 + $0x188c] ss:$16 sps:$4 sm:$0xff]  }
 0x2f9   :  { %6012 = vmatprep.subr.bf16.mxu1 %v8558_v38  ;;  %v5251_v38 = vadd.f32 %v11156_v10, %v5208_v24  ;;  %v8598_v29 = vld [vmem:[%s11511_s1 + $0x1748] ss:$16 sps:$4 sm:$0xff]  }
 0x2fa   :  { %v5290_v10 = vadd.f32 %v11121_v55, %v5247_v39  ;;  %v8594_v55 = vld [vmem:[%s11511_s1 + $0x176c] ss:$16 sps:$4 sm:$0xff]  }
 0x2fb   :  { %6040 = vmatpush1.bf16.msra.mxu0 %v8559_v51  ;;  %v5294_v42 = vadd.f32 %v11158_v13, %v5251_v38  ;;  %v5422_v51 = vpop.f32.mrf.mxu1 }
 0x2fc   :  { %6013 = vmatpush2.bf16.msra.mxu1 %v8556_v50  ;;  %6041 = vmatprep.subr.bf16.mxu0 %v8567_v48  ;;  %v8583_v50 = vld [vmem:[%s11511_s1 + $0x18a8] ss:$16 sps:$4 sm:$0xff]  }
 0x2fd   :  { %6014 = vmatprep.subr.bf16.mxu1 %v8564_v58  ;;  %v5465_v58 = vpop.f32.mrf.mxu0  ;;  %v11301_v13 = vpop.f32.mrf.mxu1  ;;  %v5337_v52 = vadd.f32 %v5336_v56, %v5294_v42  ;;  %v8597_v56 = vld [vmem:[%s11511_s1 + $0x186c] ss:$16 sps:$4 sm:$0xff]  }
 0x2ff   :  { %6042 = vmatpush1.bf16.msra.mxu0 %v8565_v0  ;;  %v11303_v48 = vpop.f32.mrf.mxu0  ;;  %v5380_v0 = vadd.f32 %v11224_v57, %v5337_v52 }
 0x300   :  { %6015 = vmatpush2.bf16.msra.mxu1 %v8562_v61  ;;  %6043 = vmatprep.subr.bf16.mxu0 %v8570_v5  ;;  %v5333_v61 = vadd.f32 %v11188_v30, %v5290_v10  ;;  %v851_v5 = vsub.s32 0, %v11148_v7  ;;  %v8600_v30 = vld [vmem:[%s11511_s1 + $0x174c] ss:$16 sps:$4 sm:$0xff]  }
 0x301   :  { %6070 = vmatprep.subr.bf16.mxu1 %v8573_v18  ;;  %v5504_v18 = vpop.f32.mrf.mxu1  ;;  %v5547_v4 = vpop.f32.mrf.mxu0  ;;  %v5423_v57 = vadd.f32 %v5422_v51, %v5380_v0 }
 0x302   :  { %v5376_v8 = vadd.f32 %v11190_v31, %v5333_v61  ;;  %v8603_v31 = vld [vmem:[%s11511_s1 + $0x184c] ss:$16 sps:$4 sm:$0xff]  }
 0x303   :  { %6017 = vmatmul.mubr.bf16.vlgmr.msra.gmra.mxu1 %v8670_v26  ;;  %6044 = vmatpush2.bf16.msra.mxu0 %v8568_v9  ;;  %v8592_v9 = vld [vmem:[%s11511_s1 + $0x1768] ss:$16 sps:$4 sm:$0xff]   ;;  %v11336_v23 = vpop.f32.mrf.mxu0  ;;  %v5466_v26 = vadd.f32 %v5465_v58, %v5423_v57 }
 0x304   :  { %6071 = vmatpush1.bf16.msra.mxu1 %v8571_v14  ;;  %6045 = vmatprep.subr.bf16.mxu0 %v8576_v6  ;;  %v8595_v14 = vld [vmem:[%s11511_s1 + $0x1868] ss:$16 sps:$4 sm:$0xff]   ;;  %v852_v6 = vrot.slane %v11180_v25, %v851_v5  ;;  %v5419_v24 = vadd.f32 %v11252_v15, %v5376_v8  ;;  %v8609_v15 = vld [vmem:[%s11511_s1 + $0x182c] ss:$16 sps:$4 sm:$0xff]   ;;  %v8618_v5 = vld [vmem:[%s11513_s3 + $0x70] sm:$0xff]  }
 0x305   :  { %6072 = vmatprep.subr.bf16.mxu1 %v8579_v40  ;;  %6102 = vmatprep.mubr.bf16.mxu1 %v8673_v36  ;;  %v8588_v36 = vld [vmem:[%s11511_s1 + $0x178c] ss:$16 sps:$4 sm:$0xff]   ;;  %v11334_v40 = vpop.f32.mrf.mxu1  ;;  %v5551_v42 = vpop.f32.mrf.mxu0  ;;  %v8672_v8 = vld [vmem:[%s11512_s0 + $0x60] ss:$100 sps:$4 sm:$0xff]  }
 0x306   :  { %v5030_v38 = vadd.f32 %v10934_v45, %v852_v6  ;;  %v8612_v45 = vld [vmem:[%s11511_s1 + $0x170c] ss:$16 sps:$4 sm:$0xff]  }
 0x307   :  { %6046 = vmatpush2.bf16.msra.mxu0 %v8574_v32  ;;  %v8601_v32 = vld [vmem:[%s11511_s1 + $0x1848] ss:$16 sps:$4 sm:$0xff]   ;;  %v5508_v39 = vpop.f32.mrf.mxu1 }
 0x308   :  { %6073 = vmatpush1.bf16.msra.mxu1 %v8577_v35  ;;  %6047 = vmatprep.subr.bf16.mxu0 %v8582_v28  ;;  %v5034_v35 = vadd.f32 %v10956_v53, %v852_v6  ;;  %v8606_v28 = vld [vmem:[%s11511_s1 + $0x172c] ss:$16 sps:$4 sm:$0xff]   ;;  %v8604_v53 = vld [vmem:[%s11511_s1 + $0x1728] ss:$16 sps:$4 sm:$0xff]  }
 0x309   :  { %6074 = vmatprep.subr.bf16.mxu1 %v8585_v37  ;;  %v5462_v37 = vadd.f32 %v11254_v20, %v5419_v24  ;;  %v8615_v20 = vld [vmem:[%s11511_s1 + $0x180c] ss:$16 sps:$4 sm:$0xff]  }
 0x30a   :  { %v5077_v51 = vadd.f32 %v11016_v11, %v5034_v35  ;;  %v8610_v11 = vld [vmem:[%s11511_s1 + $0x1708] ss:$16 sps:$4 sm:$0xff]  }
 0x30b   :  { %6048 = vmatpush2.bf16.msra.mxu0 %v8580_v49  ;;  %v5509_v49 = vadd.f32 %v5508_v39, %v5466_v26  ;;  %v5505_v58 = vadd.f32 %v5504_v18, %v5462_v37  ;;  %v8617_v61 = vld [vmem:[%s11513_s3 + $0x38] sm:$0xff]  }
 0x30c   :  { %6075 = vmatpush1.bf16.msra.mxu1 %v8583_v50  ;;  %6049 = vmatprep.subr.bf16.mxu0 %v8588_v36  ;;  %v8607_v50 = vld [vmem:[%s11511_s1 + $0x1828] ss:$16 sps:$4 sm:$0xff]   ;;  %v5120_v10 = vadd.f32 %v11018_v12, %v5077_v51  ;;  %v8639_v51 = vld [vmem:[%s11513_s3 + $0xa0] sm:$0xff]  }
 0x30d   :  { %6076 = vmatprep.subr.bf16.mxu1 %v8591_v54  ;;  %v5552_v36 = vadd.f32 %v5551_v42, %v5509_v49  ;;  %v5073_v54 = vadd.f32 %v10981_v62, %v5030_v38  ;;  %v5548_v52 = vadd.f32 %v5547_v4, %v5505_v58  ;;  %v8616_v62 = vld [vmem:[%s11513_s3 + $0x78] sm:$0xff]   ;;  %v8635_v42 = vld [vmem:[%s11513_s3 + $0xb0] sm:$0xff]   ;;  %v8636_v49 = vld [vmem:[%s11513_s3 + $0xe8] sm:$0xff]  }
 0x30e   :  { %v8642_v58 = vld [vmem:[%s11513_s3 + $0xd0] sm:$0xff]  }
 0x30f   :  { %6050 = vmatpush2.bf16.msra.mxu0 %v8586_v59  ;;  %v8613_v59 = vld [vmem:[%s11511_s1 + $0x1808] ss:$16 sps:$4 sm:$0xff]   ;;  %v6118_v12 = vmax.f32 %v5552_v36, 0.0  ;;  %v8643_v36 = vld [vmem:[%s11513_s3 + $0x90] sm:$0xff]  }
 0x310   :  { %6077 = vmatpush1.bf16.msra.mxu1 %v8589_v60  ;;  %6051 = vmatprep.subr.bf16.mxu0 %v8594_v55  ;;  %v5116_v60 = vadd.f32 %v10983_v63, %v5073_v54  ;;  %v5163_v55 = vadd.f32 %v11074_v33, %v5120_v10  ;;  %v8671_v33 = vld [vmem:[%s11512_s0 + $0x58] ss:$100 sps:$4 sm:$0xff]   ;;  %v8644_v54 = vld [vmem:[%s11513_s3 + $0xc8] sm:$0xff]  }
 0x311   :  { %6078 = vmatprep.subr.bf16.mxu1 %v8597_v56  ;;  %v6114_v56 = vmax.f32 %v5548_v52, 0.0  ;;  %v8645_v10 = vld [vmem:[%s11513_s3 + $0x88] sm:$0xff]   ;;  %v8646_v52 = vld [vmem:[%s11513_s3 + $0xc0] sm:$0xff]  }
 0x312   :  { %v5159_v0 = vadd.f32 %v11042_v21, %v5116_v60  ;;  %v5206_v63 = vadd.f32 %v11076_v34, %v5163_v55  ;;  %v8619_v21 = vld [vmem:[%s11513_s3 + $0x30] sm:$0xff]   ;;  %v5631_v55 = vpop.f32.mrf.mxu0 }
 0x313   :  { %6052 = vmatpush2.bf16.msra.mxu0 %v8592_v9  ;;  %v6122_v18 = vpack.c.bf16 %v6118_v12, %v6114_v56 }
 0x314   :  { %6079 = vmatpush1.bf16.msra.mxu1 %v8595_v14  ;;  %6053 = vmatprep.subr.bf16.mxu0 %v8600_v30  ;;  %v5202_v4 = vadd.f32 %v11044_v22, %v5159_v0  ;;  %v5249_v34 = vadd.f32 %v11138_v1, %v5206_v63  ;;  %v8620_v22 = vld [vmem:[%s11513_s3 + $0x68] sm:$0xff]   ;;  %v8622_v1 = vld [vmem:[%s11513_s3 + $0x60] sm:$0xff]  }
 0x315   :  { %6080 = vmatprep.subr.bf16.mxu1 %v8603_v31  ;;  %v8621_v30 = vld [vmem:[%s11513_s3 + $0x28] sm:$0xff]  }
 0x316   :  { %v5245_v9 = vadd.f32 %v11100_v44, %v5202_v4  ;;  %v5292_v14 = vadd.f32 %v11140_v2, %v5249_v34  ;;  %v8623_v44 = vld [vmem:[%s11513_s3 + $0x20] sm:$0xff]  }
 0x317   :  { %6054 = vmatpush2.bf16.msra.mxu0 %v8598_v29 }
 0x318   :  { %6081 = vmatpush1.bf16.msra.mxu1 %v8601_v32  ;;  %6055 = vmatprep.subr.bf16.mxu0 %v8606_v28  ;;  %v5288_v31 = vadd.f32 %v11102_v46, %v5245_v9  ;;  %v5335_v57 = vadd.f32 %v11206_v43, %v5292_v14  ;;  %v8624_v46 = vld [vmem:[%s11513_s3 + $0x58] sm:$0xff]  }
 0x319   :  { %6082 = vmatprep.subr.bf16.mxu1 %v8609_v15  ;;  %v8625_v43 = vld [vmem:[%s11513_s3 + $0x18] sm:$0xff]  }
 0x31a   :  { %v5331_v2 = vadd.f32 %v11166_v16, %v5288_v31  ;;  %v5378_v6 = vadd.f32 %v11208_v47, %v5335_v57  ;;  %v8626_v16 = vld [vmem:[%s11513_s3 + $0x50] sm:$0xff]  }
 0x31b   :  { %6056 = vmatpush2.bf16.msra.mxu0 %v8604_v53  ;;  %v8637_v53 = vld [vmem:[%s11513_s3 + $0xa8] sm:$0xff]  }
 0x31c   :  { %6083 = vmatpush1.bf16.msra.mxu1 %v8607_v50  ;;  %6057 = vmatprep.subr.bf16.mxu0 %v8612_v45  ;;  %v5374_v24 = vadd.f32 %v11168_v19, %v5331_v2  ;;  %v5421_v26 = vadd.f32 %v11274_v27, %v5378_v6  ;;  %v8627_v19 = vld [vmem:[%s11513_s3 + $0x10] sm:$0xff]   ;;  %v8628_v27 = vld [vmem:[%s11513_s3 + $0x48] sm:$0xff]   ;;  %v8638_v50 = vld [vmem:[%s11513_s3 + $0xe0] sm:$0xff]  }
 0x31d   :  { %6084 = vmatprep.subr.bf16.mxu1 %v8615_v20  ;;  %v8640_v45 = vld [vmem:[%s11513_s3 + $0xd8] sm:$0xff]  }
 0x31e   :  { %v5417_v47 = vadd.f32 %v11234_v3, %v5374_v24  ;;  %v5464_v29 = vadd.f32 %v11276_v41, %v5421_v26  ;;  %v8629_v3 = vld [vmem:[%s11513_s3 + $0x8] sm:$0xff]   ;;  %v8641_v20 = vld [vmem:[%s11513_s3 + $0x98] sm:$0xff]  }
 0x31f   :  { %6058 = vmatpush2.bf16.msra.mxu0 %v8610_v11  ;;  %v8647_v11 = vld [vmem:[%s11513_s3 + $0x80] sm:$0xff]  }
 0x320   :  { %6085 = vmatpush1.bf16.msra.mxu1 %v8613_v59  ;;  %7334 = vmatprep.subr.bf16.mxu0 %v8616_v62  ;;  %v5460_v32 = vadd.f32 %v11236_v17, %v5417_v47  ;;  %v5507_v35 = vadd.f32 %v11334_v40, %v5464_v29  ;;  %v8630_v17 = vld [vmem:[%s11513_s3 + $0x40] sm:$0xff]   ;;  %v5588_v59 = vpop.f32.mrf.mxu1  ;;  %v859_v47 = vsub.s32 2, %v11148_v7 }
 0x321   :  { %v8631_v40 = vld [vmem:[%s11513_s3] sm:$0xff]  }
 0x322   :  { %6060 = vmatmul.mubr.bf16.vlgmr.msra.gmra.mxu0 %v8671_v33  ;;  %v5503_v41 = vadd.f32 %v11301_v13, %v5460_v32  ;;  %v5550_v28 = vadd.f32 %v11336_v23, %v5507_v35  ;;  %v8632_v13 = vld [vmem:[%s11513_s3 + $0xf8] sm:$0xff]   ;;  %v5590_v60 = vpop.f32.mrf.mxu1 }
 0x323   :  { %6103 = vmatmul.mubr.bf16.vlgmr.msra.gmra.mxu1 %v8672_v8  ;;  %7335 = vmatpush3.bf16.msra.mxu0 %v8617_v61  ;;  %v8633_v23 = vld [vmem:[%s11513_s3 + $0xb8] sm:$0xff]   ;;  %v5633_v61 = vpop.f32.mrf.mxu0 }
 0x324   :  { %6420 = vmatprep.mubr.bf16.mxu0 %v6122_v18  ;;  %7336 = vmatprep.subr.bf16.mxu0 %v8618_v5  ;;  %v5546_v15 = vadd.f32 %v11303_v48, %v5503_v41  ;;  %v6117_v37 = vmax.f32 %v5550_v28, 0.0  ;;  %v8634_v48 = vld [vmem:[%s11513_s3 + $0xf0] sm:$0xff]   ;;  %v5592_v62 = vpop.f32.mrf.mxu1 }
 0x325   :  { %7356 = vmatprep.subr.bf16.mxu1 %v8632_v13  ;;  %v5635_v63 = vpop.f32.mrf.mxu0 }
 0x326   :  { %v6113_v38 = vmax.f32 %v5546_v15, 0.0  ;;  %7357 = vmatpush3.bf16.msra.mxu1 %v8633_v23  ;;  %v5594_v12 = vpop.f32.mrf.mxu1 }
 0x327   :  { %7337 = vmatpush3.bf16.msra.mxu0 %v8619_v21  ;;  %7358 = vmatprep.subr.bf16.mxu1 %v8634_v48  ;;  %v5637_v18 = vpop.f32.mrf.mxu0 }
 0x328   :  { %7338 = vmatprep.subr.bf16.mxu0 %v8620_v22  ;;  %v6121_v39 = vpack.c.bf16 %v6117_v37, %v6113_v38  ;;  %v5674_v56 = vpop.f32.mrf.mxu1 }
 0x329   :  { %v5717_v33 = vpop.f32.mrf.mxu0 }
 0x32a   :  { %7359 = vmatpush3.bf16.msra.mxu1 %v8635_v42  ;;  %v5676_v0 = vpop.f32.mrf.mxu1 }
 0x32b   :  { %7339 = vmatpush3.bf16.msra.mxu0 %v8621_v30  ;;  %7360 = vmatprep.subr.bf16.mxu1 %v8636_v49  ;;  %v5719_v21 = vpop.f32.mrf.mxu0 }
 0x32c   :  { %7340 = vmatprep.subr.bf16.mxu0 %v8622_v1  ;;  %v5678_v5 = vpop.f32.mrf.mxu1 }
 0x32d   :  { %v5721_v22 = vpop.f32.mrf.mxu0 }
 0x32e   :  { %7361 = vmatpush3.bf16.msra.mxu1 %v8637_v53  ;;  %v5680_v4 = vpop.f32.mrf.mxu1 }
 0x32f   :  { %7341 = vmatpush3.bf16.msra.mxu0 %v8623_v44  ;;  %7362 = vmatprep.subr.bf16.mxu1 %v8638_v50  ;;  %v5723_v14 = vpop.f32.mrf.mxu0 }
 0x330   :  { %7342 = vmatprep.subr.bf16.mxu0 %v8624_v46  ;;  %v5760_v8 = vpop.f32.mrf.mxu1 }
 0x331   :  { %v5803_v31 = vpop.f32.mrf.mxu0 }
 0x332   :  { %7363 = vmatpush3.bf16.msra.mxu1 %v8639_v51  ;;  %v5762_v34 = vpop.f32.mrf.mxu1 }
 0x333   :  { %7343 = vmatpush3.bf16.msra.mxu0 %v8625_v43  ;;  %7364 = vmatprep.subr.bf16.mxu1 %v8640_v45  ;;  %v5805_v57 = vpop.f32.mrf.mxu0 }
 0x334   :  { %7344 = vmatprep.subr.bf16.mxu0 %v8626_v16  ;;  %v5764_v9 = vpop.f32.mrf.mxu1  ;;  %v863_v16 = vsub.s32 3, %v11148_v7 }
 0x335   :  { %v5807_v2 = vpop.f32.mrf.mxu0 }
 0x336   :  { %7365 = vmatpush3.bf16.msra.mxu1 %v8641_v20  ;;  %v5766_v30 = vpop.f32.mrf.mxu1  ;;  %v864_v32 = vrot.slane %v11180_v25, %v863_v16 }
 0x337   :  { %7345 = vmatpush3.bf16.msra.mxu0 %v8627_v19  ;;  %7366 = vmatprep.subr.bf16.mxu1 %v8642_v58  ;;  %v5809_v46 = vpop.f32.mrf.mxu0 }
 0x338   :  { %7346 = vmatprep.subr.bf16.mxu0 %v8628_v27  ;;  %v860_v27 = vrot.slane %v11180_v25, %v859_v47  ;;  %v5591_v41 = vadd.f32 %v5590_v60, %v864_v32 }
 0x33a   :  { %7367 = vmatpush3.bf16.msra.mxu1 %v8643_v36  ;;  %v5589_v28 = vadd.f32 %v5588_v59, %v860_v27  ;;  %v5634_v15 = vadd.f32 %v5633_v61, %v5591_v41 }
 0x33b   :  { %7347 = vmatpush3.bf16.msra.mxu0 %v8629_v3  ;;  %7368 = vmatprep.subr.bf16.mxu1 %v8644_v54 }
 0x33c   :  { %7348 = vmatprep.subr.bf16.mxu0 %v8630_v17  ;;  %v5593_v17 = vadd.f32 %v5592_v62, %v860_v27  ;;  %v5677_v23 = vadd.f32 %v5676_v0, %v5634_v15 }
 0x33e   :  { %7369 = vmatpush3.bf16.msra.mxu1 %v8645_v10  ;;  %v5636_v13 = vadd.f32 %v5635_v63, %v5593_v17  ;;  %v5720_v50 = vadd.f32 %v5719_v21, %v5677_v23 }
 0x33f   :  { %7349 = vmatpush3.bf16.msra.mxu0 %v8631_v40  ;;  %7370 = vmatprep.subr.bf16.mxu1 %v8646_v52  ;;  %v5632_v40 = vadd.f32 %v5631_v55, %v5589_v28 }
 0x340   :  { %v5679_v53 = vadd.f32 %v5678_v5, %v5636_v13  ;;  %v5763_v20 = vadd.f32 %v5762_v34, %v5720_v50 }
 0x341   :  { %v5675_v48 = vadd.f32 %v5674_v56, %v5632_v40 }
 0x342   :  { %6421 = vmatmul.mubr.bf16.vlgmr.msra.gmra.mxu0 %v6121_v39  ;;  %7371 = vmatpush3.bf16.msra.mxu1 %v8647_v11  ;;  %v5595_v39 = vadd.f32 %v5594_v12, %v864_v32  ;;  %v5722_v45 = vadd.f32 %v5721_v22, %v5679_v53  ;;  %v5806_v11 = vadd.f32 %v5805_v57, %v5763_v20 }
 0x343   :  { %v5846_v1 = vpop.f32.mrf.mxu1  ;;  %v5718_v51 = vadd.f32 %v5717_v33, %v5675_v48 }
 0x344   :  { %v5638_v49 = vadd.f32 %v5637_v18, %v5595_v39  ;;  %v5765_v52 = vadd.f32 %v5764_v9, %v5722_v45 }
 0x345   :  { %v5848_v44 = vpop.f32.mrf.mxu1  ;;  %v5761_v58 = vadd.f32 %v5760_v8, %v5718_v51  ;;  %v7301_v51 = vld [vmem:[%s11515_s4] ss:$0 sm:$0xff] }
 0x346   :  { %v5681_v25 = vadd.f32 %v5680_v4, %v5638_v49  ;;  %v5808_v62 = vadd.f32 %v5807_v2, %v5765_v52  ;;  %v5849_v12 = vadd.f32 %v5848_v44, %v5806_v11 }
 0x347   :  { %v5850_v6 = vpop.f32.mrf.mxu1  ;;  %v5804_v59 = vadd.f32 %v5803_v31, %v5761_v58 }
 0x348   :  { %v5724_v10 = vadd.f32 %v5723_v14, %v5681_v25  ;;  %v5851_v63 = vadd.f32 %v5850_v6, %v5808_v62 }
 0x349   :  { %v5852_v24 = vpop.f32.mrf.mxu1  ;;  %v5847_v55 = vadd.f32 %v5846_v1, %v5804_v59 }
 0x34a   :  { %v5767_v60 = vadd.f32 %v5766_v30, %v5724_v10 }
 0x34c   :  { %v5810_v0 = vadd.f32 %v5809_v46, %v5767_v60 }
 0x34e   :  { %v5853_v4 = vadd.f32 %v5852_v24, %v5810_v0 }
 0x362   :  { %v5889_v43 = vpop.f32.mrf.mxu0 }
 0x363   :  { %v5890_v18 = vadd.f32 %v5889_v43, %v5847_v55 }
 0x364   :  { %v5891_v29 = vpop.f32.mrf.mxu0 }
 0x365   :  { %v5892_v5 = vadd.f32 %v5891_v29, %v5849_v12 }
 0x366   :  { %v5893_v35 = vpop.f32.mrf.mxu0 }
 0x367   :  { %v5894_v33 = vadd.f32 %v5893_v35, %v5851_v63 }
 0x368   :  { %v5895_v37 = vpop.f32.mrf.mxu0 }
 0x369   :  { %v5896_v14 = vadd.f32 %v5895_v37, %v5853_v4 }
 0x383   :  { %v5932_v26 = vpop.f32.mrf.mxu1 }
 0x384   :  { %v5933_v8 = vadd.f32 %v5932_v26, %v5890_v18 }
 0x385   :  { %v5934_v19 = vpop.f32.mrf.mxu1 }
 0x386   :  { %v5935_v21 = vadd.f32 %v5934_v19, %v5892_v5 }
 0x387   :  { %v5936_v3 = vpop.f32.mrf.mxu1 }
 0x388   :  { %v5937_v9 = vadd.f32 %v5936_v3, %v5894_v33 }
 0x389   :  { %v5938_v38 = vpop.f32.mrf.mxu1 }
 0x38a   :  { %v5939_v44 = vadd.f32 %v5938_v38, %v5896_v14 }
 0x3a2   :  { %v5975_v7 = vpop.f32.mrf.mxu0 }
 0x3a3   :  { %v5976_v31 = vadd.f32 %v5975_v7, %v5933_v8 }
 0x3a4   :  { %v5977_v36 = vpop.f32.mrf.mxu0 }
 0x3a5   :  { %v5978_v57 = vadd.f32 %v5977_v36, %v5935_v21 }
 0x3a6   :  { %v5979_v56 = vpop.f32.mrf.mxu0 }
 0x3a7   :  { %v5980_v1 = vadd.f32 %v5979_v56, %v5937_v9 }
 0x3a8   :  { %v5981_v34 = vpop.f32.mrf.mxu0 }
 0x3a9   :  { %v5982_v29 = vadd.f32 %v5981_v34, %v5939_v44 }
 0x3c3   :  { %v6018_v42 = vpop.f32.mrf.mxu1 }
 0x3c4   :  { %v6019_v47 = vadd.f32 %v6018_v42, %v5976_v31 }
 0x3c5   :  { %v6020_v54 = vpop.f32.mrf.mxu1 }
 0x3c6   :  { %v6021_v16 = vadd.f32 %v6020_v54, %v5978_v57 }
 0x3c7   :  { %v6022_v61 = vpop.f32.mrf.mxu1 }
 0x3c8   :  { %v6023_v43 = vadd.f32 %v6022_v61, %v5980_v1 }
 0x3c9   :  { %v6024_v22 = vpop.f32.mrf.mxu1 }
 0x3ca   :  { %v6025_v27 = vadd.f32 %v6024_v22, %v5982_v29 }
 0x3e2   :  { %v6061_v30 = vpop.f32.mrf.mxu0 }
 0x3e3   :  { %v6104_v2 = vpop.f32.mrf.mxu1  ;;  %v6062_v32 = vadd.f32 %v6061_v30, %v6019_v47 }
 0x3e4   :  { %v6063_v46 = vpop.f32.mrf.mxu0 }
 0x3e5   :  { %v6106_v6 = vpop.f32.mrf.mxu1  ;;  %v6064_v24 = vadd.f32 %v6063_v46, %v6021_v16  ;;  %v6105_v15 = vadd.f32 %v6104_v2, %v6062_v32 }
 0x3e6   :  { %v6065_v19 = vpop.f32.mrf.mxu0 }
 0x3e7   :  { %v6108_v26 = vpop.f32.mrf.mxu1  ;;  %v6066_v35 = vadd.f32 %v6065_v19, %v6023_v43  ;;  %v6107_v3 = vadd.f32 %v6106_v6, %v6064_v24  ;;  %v6115_v23 = vmax.f32 %v6105_v15, 0.0 }
 0x3e8   :  { %v6067_v41 = vpop.f32.mrf.mxu0 }
 0x3e9   :  { %v6109_v28 = vadd.f32 %v6108_v26, %v6066_v35  ;;  %v6068_v17 = vadd.f32 %v6067_v41, %v6025_v27  ;;  %v6110_v40 = vpop.f32.mrf.mxu1  ;;  %v6116_v39 = vmax.f32 %v6107_v3, 0.0 }
 0x3eb   :  { %v6111_v37 = vadd.f32 %v6110_v40, %v6068_v17  ;;  %v6119_v38 = vmax.f32 %v6109_v28, 0.0 }
 0x3ed   :  { %v6120_v13 = vmax.f32 %v6111_v37, 0.0  ;;  %v6123_v7 = vpack.c.bf16 %v6119_v38, %v6115_v23 }
 0x3ef   :  { %v6124_v48 = vpack.c.bf16 %v6120_v13, %v6116_v39 }
 0x3f1   :  { %6461 = vmatprep.mubr.bf16.mxu1 %v6124_v48 }
 0x3f2   :  { %6462 = vmatmul.mubr.bf16.vlgmr.msra.gmra.mxu1 %v6123_v7 }
 0x402   :  { %v7350_v42 = vpop.f32.mrf.mxu0 }
 0x404   :  { %v7351_v49 = vpop.f32.mrf.mxu0 }
 0x405   :  { %v7352_v50 = vadd.f32 %v7351_v49, %v7350_v42 }
 0x406   :  { %v7353_v53 = vpop.f32.mrf.mxu0 }
 0x407   :  { %v6423_v58 = vadd.f32 %v7352_v50, %v7301_v51 }
 0x408   :  { %v7354_v25 = vpop.f32.mrf.mxu0 }
 0x409   :  { %v7355_v36 = vadd.f32 %v7354_v25, %v7353_v53 }
 0x40b   :  { %v6426_v59 = vadd.f32 %v7355_v36, %v7301_v51 }
 0x4b2   :  { %v7372_v45 = vpop.f32.mrf.mxu1 }
 0x4b4   :  { %v7373_v20 = vpop.f32.mrf.mxu1 }
 0x4b5   :  { %v7374_v54 = vadd.f32 %v7373_v20, %v7372_v45 }
 0x4b6   :  { %v7375_v10 = vpop.f32.mrf.mxu1 }
 0x4b7   :  { %v6464_v52 = vadd.f32 %v7374_v54, %v6423_v58 }
 0x4b8   :  { %v7376_v11 = vpop.f32.mrf.mxu1 }
 0x4b9   :  { %6470 = vst [vmem:[%s11516_s5] sm:$0xff] %v6464_v52  ;;  %v7377_v60 = vadd.f32 %v7376_v11, %v7375_v10 }
 0x4bb   :  { %v6467_v62 = vadd.f32 %v7377_v60, %v6426_v59 }
 0x4bd   :  { %6471 = vst [vmem:[%s11516_s5 + $0x8] sm:$0xff] %v6467_v62 }

</bundles_post_ra>
